<compile_context>
chip_gen: v6e
topology: v6e:2x2x1
jax: 0.10.0
libtpu: 0.0.40
codegen_flags: <defaults>
</compile_context>

<pallas_src>
import functools

import jax
import jax.numpy as jnp
from jax.experimental import pallas as pl
from jax.experimental.pallas import tpu as pltpu


def _round_up(x, m):
    return (x + m - 1) // m * m


# ---------------------------------------------------------------------------
# Pallas kernel: both GRU directions fused, single invocation.
# ---------------------------------------------------------------------------
def _bigru_fused_kernel(x_ref, wih_ref, whh_ref, gbias_ref, bhhn_ref,
                        out_ref, gx_scr, *, T, Bp, Hp):
    # ---- phase 1: hoisted, sequence-wide input projection for BOTH
    # directions as ONE bf16 MXU matmul: (T*Bp, Ep) @ (Ep, 6Hp) -> f32.
    # b_ih (all gates) + b_hh (r, z) are folded into gbias.
    gx_scr[...] = (jnp.dot(x_ref[...], wih_ref[...],
                           preferred_element_type=jnp.float32)
                   + gbias_ref[...])

    # n-gate recurrent bias, pre-broadcast to (Bp, Hp) per direction; loaded
    # once before the loop (no per-step broadcast_in_dim).
    bn_f = bhhn_ref[:, 0:Hp]
    bn_b = bhhn_ref[:, Hp:2 * Hp]

    # Hidden state carried in vregs (loop-carried values), h0 = 0.
    h_f = jnp.zeros((Bp, Hp), jnp.float32)
    h_b = jnp.zeros((Bp, Hp), jnp.float32)

    BOFF = 3 * Hp  # lane offset of the backward gate triple inside gx

    # ---- phase 2: sequential recurrence, fully static addressing -----------
    for i in range(T):
        rf = i * Bp                 # forward walks t = 0 .. T-1
        rb = (T - 1 - i) * Bp       # backward walks t = T-1 .. 0

        # Independent recurrent projections -> scheduler interleaves them.
        # Weight loads stay inside the loop (loop-invariant addresses, off the
        # critical path) to avoid holding ~48 vregs of weights live.
        ghf = jnp.dot(h_f.astype(jnp.bfloat16), whh_ref[0],
                      preferred_element_type=jnp.float32)
        ghb = jnp.dot(h_b.astype(jnp.bfloat16), whh_ref[1],
                      preferred_element_type=jnp.float32)

        gxf = gx_scr[rf:rf + Bp, 0:BOFF]            # (Bp, 3Hp), static slice
        gxb = gx_scr[rb:rb + Bp, BOFF:2 * BOFF]

        # PyTorch gate order (r, z, n); each gate is a lane-aligned Hp slice.
        r_f = jax.nn.sigmoid(gxf[:, 0:Hp] + ghf[:, 0:Hp])
        z_f = jax.nn.sigmoid(gxf[:, Hp:2 * Hp] + ghf[:, Hp:2 * Hp])
        n_f = jnp.tanh(gxf[:, 2 * Hp:] + r_f * (ghf[:, 2 * Hp:] + bn_f))
        h_f = (1.0 - z_f) * n_f + z_f * h_f

        r_b = jax.nn.sigmoid(gxb[:, 0:Hp] + ghb[:, 0:Hp])
        z_b = jax.nn.sigmoid(gxb[:, Hp:2 * Hp] + ghb[:, Hp:2 * Hp])
        n_b = jnp.tanh(gxb[:, 2 * Hp:] + r_b * (ghb[:, 2 * Hp:] + bn_b))
        h_b = (1.0 - z_b) * n_b + z_b * h_b

        # Lane-dense, unmasked 128-wide stores at static offsets.
        out_ref[rf:rf + Bp, 0:Hp] = h_f
        out_ref[rb:rb + Bp, Hp:2 * Hp] = h_b


def bidirectional_gru(x_bte, wih, whh, gbias, bhhn, *, hidden_size):
    """x_bte: (B, T, E) f32.  Params are pre-packed, lane-padded tensors.
    Returns (output (B, T, 2H), hidden (2, B, H)) matching torch.nn.GRU
    (batch_first=True, bidirectional=True, h0=0)."""
    B, T, E = x_bte.shape
    H = hidden_size
    Bp = _round_up(B, 8)
    Ep = wih.shape[0]
    Hp = whh.shape[1]

    # time-major, pad batch/feature, flatten to a matmul-friendly slab (bf16).
    x = jnp.transpose(x_bte, (1, 0, 2))                         # (T, B, E)
    x = jnp.pad(x, ((0, 0), (0, Bp - B), (0, Ep - E)))          # (T, Bp, Ep)
    x_flat = x.reshape(T * Bp, Ep).astype(jnp.bfloat16)

    # n-gate recurrent bias pre-broadcast once (outside the kernel).
    bhhn_b = jnp.broadcast_to(bhhn, (Bp, 2 * Hp))

    kernel = functools.partial(_bigru_fused_kernel, T=T, Bp=Bp, Hp=Hp)

    out = pl.pallas_call(
        kernel,
        out_shape=jax.ShapeDtypeStruct((T * Bp, 2 * Hp), jnp.float32),
        grid_spec=pltpu.PrefetchScalarGridSpec(
            num_scalar_prefetch=0,
            grid=(1,),
            in_specs=[
                pl.BlockSpec((T * Bp, Ep), lambda i: (0, 0)),        # x (bf16)
                pl.BlockSpec((Ep, 6 * Hp), lambda i: (0, 0)),        # W_ih^T both dirs
                pl.BlockSpec((2, Hp, 3 * Hp), lambda i: (0, 0, 0)),  # W_hh^T per dir
                pl.BlockSpec((1, 6 * Hp), lambda i: (0, 0)),         # folded bias
                pl.BlockSpec((Bp, 2 * Hp), lambda i: (0, 0)),        # b_hh (n gate)
            ],
            out_specs=pl.BlockSpec((T * Bp, 2 * Hp), lambda i: (0, 0)),
            scratch_shapes=[pltpu.VMEM((T * Bp, 6 * Hp), jnp.float32)],  # gx_all
        ),
        compiler_params=pltpu.CompilerParams(
            dimension_semantics=("arbitrary",)),
    )(x_flat, wih, whh, gbias, bhhn_b)

    out = out.reshape(T, Bp, 2 * Hp)
    out_f = out[:, :B, :H]                                      # (T, B, H)
    out_b = out[:, :B, Hp:Hp + H]
    output = jnp.transpose(jnp.concatenate([out_f, out_b], axis=-1), (1, 0, 2))
    # Bidirectional GRU identity: fwd final hidden = output[t=T-1] fwd half,
    # bwd final hidden = output[t=0] bwd half (h written exactly once each).
    hidden = jnp.stack([out_f[T - 1], out_b[0]], axis=0)        # (2, B, H)
    return output, hidden


# ---------------------------------------------------------------------------
# Parameter packing: lane-pad each gate to Hp, transpose, fold biases.
# ---------------------------------------------------------------------------
def _pack_bigru_params(p_fwd, p_bwd, E, H, Ep, Hp):
    """Gate order (r, z, n).  b_ih (all gates) + b_hh (r, z) fold into the
    input-projection bias; b_hh[n] stays separate (inside the r-multiply).
    Layouts:
      wih:   (Ep, 6Hp)      lanes = [f_r, f_z, f_n, b_r, b_z, b_n]
      whh:   (2, Hp, 3Hp)   per-direction W_hh^T
      gbias: (1, 6Hp)       folded input bias (f32)
      bhhn:  (1, 2Hp)       n-gate recurrent bias per direction (f32)
    """
    wih = jnp.zeros((Ep, 6 * Hp), jnp.float32)
    whh = jnp.zeros((2, Hp, 3 * Hp), jnp.float32)
    gbias = jnp.zeros((1, 6 * Hp), jnp.float32)
    bhhn = jnp.zeros((1, 2 * Hp), jnp.float32)
    for d, (w_ih, w_hh, b_ih, b_hh) in enumerate((p_fwd, p_bwd)):
        co = d * 3 * Hp
        for g in range(3):
            wih = wih.at[:E, co + g * Hp: co + g * Hp + H].set(
                w_ih[g * H:(g + 1) * H, :].T)
            whh = whh.at[d, :H, g * Hp: g * Hp + H].set(
                w_hh[g * H:(g + 1) * H, :].T)
            gb = b_ih[g * H:(g + 1) * H]
            if g < 2:                               # r, z: fold b_hh in too
                gb = gb + b_hh[g * H:(g + 1) * H]
            gbias = gbias.at[0, co + g * Hp: co + g * Hp + H].set(gb)
        bhhn = bhhn.at[0, d * Hp: d * Hp + H].set(b_hh[2 * H:3 * H])
    return (wih.astype(jnp.bfloat16), whh.astype(jnp.bfloat16), gbias, bhhn)


# ---------------------------------------------------------------------------
# Encoder module (parameters built deterministically in-script)
# ---------------------------------------------------------------------------
class Encoder:
    def __init__(self, vocab_length, emb_dim=32, hidden_size=32, dropout_p=0.1,
                 key=jax.random.PRNGKey(42)):
        self.emb_dim = emb_dim
        self.hidden_size = hidden_size
        self.dropout_p = dropout_p

        keys = jax.random.split(key, 9)
        H, E = hidden_size, emb_dim
        k = 1.0 / jnp.sqrt(H)

        # nn.Embedding default init: N(0, 1)
        self.embedding = jax.random.normal(keys[0], (vocab_length, E), jnp.float32)

        def u(kk, shape):
            return jax.random.uniform(kk, shape, jnp.float32, minval=-k, maxval=k)

        # nn.GRU default init: U(-1/sqrt(H), 1/sqrt(H)); gate order (r, z, n)
        self.w_ih_f = u(keys[1], (3 * H, E))
        self.w_hh_f = u(keys[2], (3 * H, H))
        self.b_ih_f = u(keys[3], (3 * H,))
        self.b_hh_f = u(keys[4], (3 * H,))
        self.w_ih_b = u(keys[5], (3 * H, E))
        self.w_hh_b = u(keys[6], (3 * H, H))
        self.b_ih_b = u(keys[7], (3 * H,))
        self.b_hh_b = u(keys[8], (3 * H,))

        # kernel-layout params: packed/padded once here (not per call).
        Ep = _round_up(E, 128)
        Hp = _round_up(H, 128)
        self.wih, self.whh, self.gbias, self.bhhn = _pack_bigru_params(
            (self.w_ih_f, self.w_hh_f, self.b_ih_f, self.b_hh_f),
            (self.w_ih_b, self.w_hh_b, self.b_ih_b, self.b_hh_b),
            E, H, Ep, Hp)

    def __call__(self, input_ids, *, dropout_key=None, training=False):
        # embedding lookup (glue)
        embedded = jnp.take(self.embedding, input_ids, axis=0)      # (B, T, E)

        # dropout (glue). Inverted dropout, matching PyTorch semantics.
        if training and self.dropout_p > 0.0 and dropout_key is not None:
            keep = jax.random.bernoulli(dropout_key, 1.0 - self.dropout_p, embedded.shape)
            embedded = embedded * keep.astype(embedded.dtype) / (1.0 - self.dropout_p)

        return bidirectional_gru(embedded.astype(jnp.float32),
                                 self.wih, self.whh, self.gbias, self.bhhn,
                                 hidden_size=self.hidden_size)


# ---------------------------------------------------------------------------
# Pure-JAX f32 reference GRU (for numerical check of the Pallas kernel)
# ---------------------------------------------------------------------------
def _gru_direction_ref(x_tbe, w_ih, w_hh, b_ih, b_hh, *, reverse):
    T, B, E = x_tbe.shape
    H = w_hh.shape[1]
    xs = x_tbe[::-1] if reverse else x_tbe

    def step(h, x):
        gx = x @ w_ih.T + b_ih
        gh = h @ w_hh.T + b_hh
        r = jax.nn.sigmoid(gx[:, :H] + gh[:, :H])
        z = jax.nn.sigmoid(gx[:, H:2 * H] + gh[:, H:2 * H])
        n = jnp.tanh(gx[:, 2 * H:] + r * gh[:, 2 * H:])
        h_new = (1.0 - z) * n + z * h
        return h_new, h_new

    h_last, ys = jax.lax.scan(step, jnp.zeros((B, H), jnp.float32), xs)
    if reverse:
        ys = ys[::-1]
    return ys, h_last


if __name__ == "__main__":
    VOCAB, EMB, HID = 50, 32, 32
    B, T = 2, 8

    key = jax.random.PRNGKey(0)
    k_ids, k_drop = jax.random.split(key)
    input_ids = jax.random.randint(k_ids, (B, T), 0, VOCAB, dtype=jnp.int32)

    enc = Encoder(VOCAB, emb_dim=EMB, hidden_size=HID, dropout_p=0.1,
                  key=jax.random.PRNGKey(42))

    # eval mode (dropout = identity) so the numerical check is meaningful.
    output, hidden = enc(input_ids, training=False)
    output = jax.block_until_ready(output)
    hidden = jax.block_until_ready(hidden)

    assert output.shape == (B, T, 2 * HID)
    assert hidden.shape == (2, B, HID)

    # --- verify the Pallas bidirectional GRU against a f32 lax.scan reference.
    # Tolerances account for bf16 MXU operands (weights / x / h).
    emb = jnp.take(enc.embedding, input_ids, axis=0)
    x_tbe = jnp.transpose(emb, (1, 0, 2)).astype(jnp.float32)
    of_ref, hf_ref = _gru_direction_ref(x_tbe, enc.w_ih_f, enc.w_hh_f,
                                        enc.b_ih_f, enc.b_hh_f, reverse=False)
    ob_ref, hb_ref = _gru_direction_ref(x_tbe, enc.w_ih_b, enc.w_hh_b,
                                        enc.b_ih_b, enc.b_hh_b, reverse=True)
    ref_out = jnp.transpose(jnp.concatenate([of_ref, ob_ref], -1), (1, 0, 2))
    ref_hid = jnp.stack([hf_ref, hb_ref], 0)
    assert jnp.allclose(output, ref_out, rtol=2e-2, atol=2e-2), "output mismatch"
    assert jnp.allclose(hidden, ref_hid, rtol=2e-2, atol=2e-2), "hidden mismatch"

    # training-mode (dropout active) smoke test
    out_tr, hid_tr = enc(input_ids, dropout_key=k_drop, training=True)
    jax.block_until_ready(out_tr)
    jax.block_until_ready(hid_tr)

    print("KERNEL_OK")
</pallas_src>

<mosaic_0001>
module attributes {stable_mosaic.version = 11 : i64} {
  func.func @_bigru_fused_kernel(%arg0: i32, %arg1: memref<64x128xbf16, #tpu.memory_space<vmem>>, %arg2: memref<128x768xbf16, #tpu.memory_space<vmem>>, %arg3: memref<2x128x384xbf16, #tpu.memory_space<vmem>>, %arg4: memref<1x768xf32, #tpu.memory_space<vmem>>, %arg5: memref<8x256xf32, #tpu.memory_space<vmem>>, %arg6: memref<64x256xf32, #tpu.memory_space<vmem>>, %arg7: memref<64x768xf32, #tpu.memory_space<vmem>>) attributes {dimension_semantics = [#tpu.dimension_semantics<arbitrary>], iteration_bounds = array<i64: 1>, scalar_prefetch = 0 : i64, scratch_operands = 1 : i64, tpu.core_type = #tpu.core_type<tc>, window_params = [{pipeline_mode = #tpu.pipeline_mode<synchronous>, transform_indices = @transform_0, window_bounds = array<i64: 64, 128>}, {pipeline_mode = #tpu.pipeline_mode<synchronous>, transform_indices = @transform_1, window_bounds = array<i64: 128, 768>}, {pipeline_mode = #tpu.pipeline_mode<synchronous>, transform_indices = @transform_2, window_bounds = array<i64: 2, 128, 384>}, {pipeline_mode = #tpu.pipeline_mode<synchronous>, transform_indices = @transform_3, window_bounds = array<i64: 1, 768>}, {pipeline_mode = #tpu.pipeline_mode<synchronous>, transform_indices = @transform_4, window_bounds = array<i64: 8, 256>}, {pipeline_mode = #tpu.pipeline_mode<synchronous>, transform_indices = @transform_5, window_bounds = array<i64: 64, 256>}]} {
    %c0 = arith.constant 0 : index
    %c0_0 = arith.constant 0 : index
    %0 = vector.load %arg1[%c0, %c0_0] : memref<64x128xbf16, #tpu.memory_space<vmem>>, vector<64x128xbf16>
    %c0_1 = arith.constant 0 : index
    %c0_2 = arith.constant 0 : index
    %1 = vector.load %arg2[%c0_1, %c0_2] : memref<128x768xbf16, #tpu.memory_space<vmem>>, vector<128x768xbf16>
    %cst = arith.constant dense<0.000000e+00> : vector<64x768xf32>
    %2 = tpu.matmul %0, %1, %cst {dimension_numbers = #tpu.dot_dimension_numbers<[1], [0], [0], [1], [0, 0, 1, 1], [], []>} : vector<64x128xbf16>, vector<128x768xbf16>, vector<64x768xf32> -> vector<64x768xf32>
    %c0_3 = arith.constant 0 : index
    %c0_4 = arith.constant 0 : index
    %3 = vector.load %arg4[%c0_3, %c0_4] : memref<1x768xf32, #tpu.memory_space<vmem>>, vector<1x768xf32>
    %4 = vector.broadcast %3 : vector<1x768xf32> to vector<64x768xf32>
    %5 = arith.addf %2, %4 : vector<64x768xf32>
    %c0_5 = arith.constant 0 : index
    %c0_6 = arith.constant 0 : index
    %6 = vector.load %arg7[%c0_5, %c0_6] : memref<64x768xf32, #tpu.memory_space<vmem>>, vector<64x768xf32>
    tpu.vector_store %arg7[%c0_5, %c0_6], %5 {strides = array<i32>} : memref<64x768xf32, #tpu.memory_space<vmem>>, vector<64x768xf32>,
    %c0_7 = arith.constant 0 : index
    %c0_8 = arith.constant 0 : index
    %7 = vector.load %arg5[%c0_7, %c0_8] : memref<8x256xf32, #tpu.memory_space<vmem>>, vector<8x128xf32>
    %c0_9 = arith.constant 0 : index
    %c128 = arith.constant 128 : index
    %8 = vector.load %arg5[%c0_9, %c128] : memref<8x256xf32, #tpu.memory_space<vmem>>, vector<8x128xf32>
    %cst_10 = arith.constant 0.000000e+00 : f32
    %9 = vector.broadcast %cst_10 : f32 to vector<8x128xf32>
    %cst_11 = arith.constant 0.000000e+00 : f32
    %10 = vector.broadcast %cst_11 : f32 to vector<8x128xf32>
    %11 = arith.truncf %9 : vector<8x128xf32> to vector<8x128xbf16>
    %c0_12 = arith.constant 0 : index
    %c0_13 = arith.constant 0 : index
    %c0_14 = arith.constant 0 : index
    %12 = vector.load %arg3[%c0_12, %c0_13, %c0_14] : memref<2x128x384xbf16, #tpu.memory_space<vmem>>, vector<1x128x384xbf16>
    %13 = vector.shape_cast %12 : vector<1x128x384xbf16> to vector<128x384xbf16>
    %cst_15 = arith.constant dense<0.000000e+00> : vector<8x384xf32>
    %14 = tpu.matmul %11, %13, %cst_15 {dimension_numbers = #tpu.dot_dimension_numbers<[1], [0], [0], [1], [0, 0, 1, 1], [], []>} : vector<8x128xbf16>, vector<128x384xbf16>, vector<8x384xf32> -> vector<8x384xf32>
    %15 = arith.truncf %10 : vector<8x128xf32> to vector<8x128xbf16>
    %c1 = arith.constant 1 : index
    %c0_16 = arith.constant 0 : index
    %c0_17 = arith.constant 0 : index
    %16 = vector.load %arg3[%c1, %c0_16, %c0_17] : memref<2x128x384xbf16, #tpu.memory_space<vmem>>, vector<1x128x384xbf16>
    %17 = vector.shape_cast %16 : vector<1x128x384xbf16> to vector<128x384xbf16>
    %cst_18 = arith.constant dense<0.000000e+00> : vector<8x384xf32>
    %18 = tpu.matmul %15, %17, %cst_18 {dimension_numbers = #tpu.dot_dimension_numbers<[1], [0], [0], [1], [0, 0, 1, 1], [], []>} : vector<8x128xbf16>, vector<128x384xbf16>, vector<8x384xf32> -> vector<8x384xf32>
    %c0_19 = arith.constant 0 : index
    %c0_20 = arith.constant 0 : index
    %19 = vector.load %arg7[%c0_19, %c0_20] : memref<64x768xf32, #tpu.memory_space<vmem>>, vector<8x384xf32>
    %c56 = arith.constant 56 : index
    %c384 = arith.constant 384 : index
    %20 = vector.load %arg7[%c56, %c384] : memref<64x768xf32, #tpu.memory_space<vmem>>, vector<8x384xf32>
    %21 = vector.extract_strided_slice %19 {offsets = [0, 0], sizes = [8, 128], strides = [1, 1]} : vector<8x384xf32> to vector<8x128xf32>
    %22 = vector.extract_strided_slice %14 {offsets = [0, 0], sizes = [8, 128], strides = [1, 1]} : vector<8x384xf32> to vector<8x128xf32>
    %23 = arith.addf %21, %22 : vector<8x128xf32>
    %24 = arith.negf %23 : vector<8x128xf32>
    %25 = math.exp %24 : vector<8x128xf32>
    %cst_21 = arith.constant 1.000000e+00 : f32
    %26 = vector.broadcast %cst_21 : f32 to vector<8x128xf32>
    %27 = arith.addf %26, %25 : vector<8x128xf32>
    %28 = arith.divf %26, %27 : vector<8x128xf32>
    %29 = vector.extract_strided_slice %19 {offsets = [0, 128], sizes = [8, 128], strides = [1, 1]} : vector<8x384xf32> to vector<8x128xf32>
    %30 = vector.extract_strided_slice %14 {offsets = [0, 128], sizes = [8, 128], strides = [1, 1]} : vector<8x384xf32> to vector<8x128xf32>
    %31 = arith.addf %29, %30 : vector<8x128xf32>
    %32 = arith.negf %31 : vector<8x128xf32>
    %33 = math.exp %32 : vector<8x128xf32>
    %cst_22 = arith.constant 1.000000e+00 : f32
    %34 = vector.broadcast %cst_22 : f32 to vector<8x128xf32>
    %35 = arith.addf %34, %33 : vector<8x128xf32>
    %36 = arith.divf %34, %35 : vector<8x128xf32>
    %37 = vector.extract_strided_slice %19 {offsets = [0, 256], sizes = [8, 128], strides = [1, 1]} : vector<8x384xf32> to vector<8x128xf32>
    %38 = vector.extract_strided_slice %14 {offsets = [0, 256], sizes = [8, 128], strides = [1, 1]} : vector<8x384xf32> to vector<8x128xf32>
    %39 = arith.addf %38, %7 : vector<8x128xf32>
    %40 = arith.mulf %28, %39 : vector<8x128xf32>
    %41 = arith.addf %37, %40 : vector<8x128xf32>
    %42 = math.tanh %41 : vector<8x128xf32>
    %cst_23 = arith.constant 1.000000e+00 : f32
    %43 = vector.broadcast %cst_23 : f32 to vector<8x128xf32>
    %44 = arith.subf %43, %36 : vector<8x128xf32>
    %45 = arith.mulf %44, %42 : vector<8x128xf32>
    %46 = arith.mulf %36, %9 : vector<8x128xf32>
    %47 = arith.addf %45, %46 : vector<8x128xf32>
    %48 = vector.extract_strided_slice %20 {offsets = [0, 0], sizes = [8, 128], strides = [1, 1]} : vector<8x384xf32> to vector<8x128xf32>
    %49 = vector.extract_strided_slice %18 {offsets = [0, 0], sizes = [8, 128], strides = [1, 1]} : vector<8x384xf32> to vector<8x128xf32>
    %50 = arith.addf %48, %49 : vector<8x128xf32>
    %51 = arith.negf %50 : vector<8x128xf32>
    %52 = math.exp %51 : vector<8x128xf32>
    %cst_24 = arith.constant 1.000000e+00 : f32
    %53 = vector.broadcast %cst_24 : f32 to vector<8x128xf32>
    %54 = arith.addf %53, %52 : vector<8x128xf32>
    %55 = arith.divf %53, %54 : vector<8x128xf32>
    %56 = vector.extract_strided_slice %20 {offsets = [0, 128], sizes = [8, 128], strides = [1, 1]} : vector<8x384xf32> to vector<8x128xf32>
    %57 = vector.extract_strided_slice %18 {offsets = [0, 128], sizes = [8, 128], strides = [1, 1]} : vector<8x384xf32> to vector<8x128xf32>
    %58 = arith.addf %56, %57 : vector<8x128xf32>
    %59 = arith.negf %58 : vector<8x128xf32>
    %60 = math.exp %59 : vector<8x128xf32>
    %cst_25 = arith.constant 1.000000e+00 : f32
    %61 = vector.broadcast %cst_25 : f32 to vector<8x128xf32>
    %62 = arith.addf %61, %60 : vector<8x128xf32>
    %63 = arith.divf %61, %62 : vector<8x128xf32>
    %64 = vector.extract_strided_slice %20 {offsets = [0, 256], sizes = [8, 128], strides = [1, 1]} : vector<8x384xf32> to vector<8x128xf32>
    %65 = vector.extract_strided_slice %18 {offsets = [0, 256], sizes = [8, 128], strides = [1, 1]} : vector<8x384xf32> to vector<8x128xf32>
    %66 = arith.addf %65, %8 : vector<8x128xf32>
    %67 = arith.mulf %55, %66 : vector<8x128xf32>
    %68 = arith.addf %64, %67 : vector<8x128xf32>
    %69 = math.tanh %68 : vector<8x128xf32>
    %cst_26 = arith.constant 1.000000e+00 : f32
    %70 = vector.broadcast %cst_26 : f32 to vector<8x128xf32>
    %71 = arith.subf %70, %63 : vector<8x128xf32>
    %72 = arith.mulf %71, %69 : vector<8x128xf32>
    %73 = arith.mulf %63, %10 : vector<8x128xf32>
    %74 = arith.addf %72, %73 : vector<8x128xf32>
    %c0_27 = arith.constant 0 : index
    %c0_28 = arith.constant 0 : index
    %75 = vector.load %arg6[%c0_27, %c0_28] : memref<64x256xf32, #tpu.memory_space<vmem>>, vector<8x128xf32>
    tpu.vector_store %arg6[%c0_27, %c0_28], %47 {strides = array<i32>} : memref<64x256xf32, #tpu.memory_space<vmem>>, vector<8x128xf32>,
    %c56_29 = arith.constant 56 : index
    %c128_30 = arith.constant 128 : index
    %76 = vector.load %arg6[%c56_29, %c128_30] : memref<64x256xf32, #tpu.memory_space<vmem>>, vector<8x128xf32>
    tpu.vector_store %arg6[%c56_29, %c128_30], %74 {strides = array<i32>} : memref<64x256xf32, #tpu.memory_space<vmem>>, vector<8x128xf32>,
    %77 = arith.truncf %47 : vector<8x128xf32> to vector<8x128xbf16>
    %c0_31 = arith.constant 0 : index
    %c0_32 = arith.constant 0 : index
    %c0_33 = arith.constant 0 : index
    %78 = vector.load %arg3[%c0_31, %c0_32, %c0_33] : memref<2x128x384xbf16, #tpu.memory_space<vmem>>, vector<1x128x384xbf16>
    %79 = vector.shape_cast %78 : vector<1x128x384xbf16> to vector<128x384xbf16>
    %cst_34 = arith.constant dense<0.000000e+00> : vector<8x384xf32>
    %80 = tpu.matmul %77, %79, %cst_34 {dimension_numbers = #tpu.dot_dimension_numbers<[1], [0], [0], [1], [0, 0, 1, 1], [], []>} : vector<8x128xbf16>, vector<128x384xbf16>, vector<8x384xf32> -> vector<8x384xf32>
    %81 = arith.truncf %74 : vector<8x128xf32> to vector<8x128xbf16>
    %c1_35 = arith.constant 1 : index
    %c0_36 = arith.constant 0 : index
    %c0_37 = arith.constant 0 : index
    %82 = vector.load %arg3[%c1_35, %c0_36, %c0_37] : memref<2x128x384xbf16, #tpu.memory_space<vmem>>, vector<1x128x384xbf16>
    %83 = vector.shape_cast %82 : vector<1x128x384xbf16> to vector<128x384xbf16>
    %cst_38 = arith.constant dense<0.000000e+00> : vector<8x384xf32>
    %84 = tpu.matmul %81, %83, %cst_38 {dimension_numbers = #tpu.dot_dimension_numbers<[1], [0], [0], [1], [0, 0, 1, 1], [], []>} : vector<8x128xbf16>, vector<128x384xbf16>, vector<8x384xf32> -> vector<8x384xf32>
    %c8 = arith.constant 8 : index
    %c0_39 = arith.constant 0 : index
    %85 = vector.load %arg7[%c8, %c0_39] : memref<64x768xf32, #tpu.memory_space<vmem>>, vector<8x384xf32>
    %c48 = arith.constant 48 : index
    %c384_40 = arith.constant 384 : index
    %86 = vector.load %arg7[%c48, %c384_40] : memref<64x768xf32, #tpu.memory_space<vmem>>, vector<8x384xf32>
    %87 = vector.extract_strided_slice %85 {offsets = [0, 0], sizes = [8, 128], strides = [1, 1]} : vector<8x384xf32> to vector<8x128xf32>
    %88 = vector.extract_strided_slice %80 {offsets = [0, 0], sizes = [8, 128], strides = [1, 1]} : vector<8x384xf32> to vector<8x128xf32>
    %89 = arith.addf %87, %88 : vector<8x128xf32>
    %90 = arith.negf %89 : vector<8x128xf32>
    %91 = math.exp %90 : vector<8x128xf32>
    %cst_41 = arith.constant 1.000000e+00 : f32
    %92 = vector.broadcast %cst_41 : f32 to vector<8x128xf32>
    %93 = arith.addf %92, %91 : vector<8x128xf32>
    %94 = arith.divf %92, %93 : vector<8x128xf32>
    %95 = vector.extract_strided_slice %85 {offsets = [0, 128], sizes = [8, 128], strides = [1, 1]} : vector<8x384xf32> to vector<8x128xf32>
    %96 = vector.extract_strided_slice %80 {offsets = [0, 128], sizes = [8, 128], strides = [1, 1]} : vector<8x384xf32> to vector<8x128xf32>
    %97 = arith.addf %95, %96 : vector<8x128xf32>
    %98 = arith.negf %97 : vector<8x128xf32>
    %99 = math.exp %98 : vector<8x128xf32>
    %cst_42 = arith.constant 1.000000e+00 : f32
    %100 = vector.broadcast %cst_42 : f32 to vector<8x128xf32>
    %101 = arith.addf %100, %99 : vector<8x128xf32>
    %102 = arith.divf %100, %101 : vector<8x128xf32>
    %103 = vector.extract_strided_slice %85 {offsets = [0, 256], sizes = [8, 128], strides = [1, 1]} : vector<8x384xf32> to vector<8x128xf32>
    %104 = vector.extract_strided_slice %80 {offsets = [0, 256], sizes = [8, 128], strides = [1, 1]} : vector<8x384xf32> to vector<8x128xf32>
    %105 = arith.addf %104, %7 : vector<8x128xf32>
    %106 = arith.mulf %94, %105 : vector<8x128xf32>
    %107 = arith.addf %103, %106 : vector<8x128xf32>
    %108 = math.tanh %107 : vector<8x128xf32>
    %cst_43 = arith.constant 1.000000e+00 : f32
    %109 = vector.broadcast %cst_43 : f32 to vector<8x128xf32>
    %110 = arith.subf %109, %102 : vector<8x128xf32>
    %111 = arith.mulf %110, %108 : vector<8x128xf32>
    %112 = arith.mulf %102, %47 : vector<8x128xf32>
    %113 = arith.addf %111, %112 : vector<8x128xf32>
    %114 = vector.extract_strided_slice %86 {offsets = [0, 0], sizes = [8, 128], strides = [1, 1]} : vector<8x384xf32> to vector<8x128xf32>
    %115 = vector.extract_strided_slice %84 {offsets = [0, 0], sizes = [8, 128], strides = [1, 1]} : vector<8x384xf32> to vector<8x128xf32>
    %116 = arith.addf %114, %115 : vector<8x128xf32>
    %117 = arith.negf %116 : vector<8x128xf32>
    %118 = math.exp %117 : vector<8x128xf32>
    %cst_44 = arith.constant 1.000000e+00 : f32
    %119 = vector.broadcast %cst_44 : f32 to vector<8x128xf32>
    %120 = arith.addf %119, %118 : vector<8x128xf32>
    %121 = arith.divf %119, %120 : vector<8x128xf32>
    %122 = vector.extract_strided_slice %86 {offsets = [0, 128], sizes = [8, 128], strides = [1, 1]} : vector<8x384xf32> to vector<8x128xf32>
    %123 = vector.extract_strided_slice %84 {offsets = [0, 128], sizes = [8, 128], strides = [1, 1]} : vector<8x384xf32> to vector<8x128xf32>
    %124 = arith.addf %122, %123 : vector<8x128xf32>
    %125 = arith.negf %124 : vector<8x128xf32>
    %126 = math.exp %125 : vector<8x128xf32>
    %cst_45 = arith.constant 1.000000e+00 : f32
    %127 = vector.broadcast %cst_45 : f32 to vector<8x128xf32>
    %128 = arith.addf %127, %126 : vector<8x128xf32>
    %129 = arith.divf %127, %128 : vector<8x128xf32>
    %130 = vector.extract_strided_slice %86 {offsets = [0, 256], sizes = [8, 128], strides = [1, 1]} : vector<8x384xf32> to vector<8x128xf32>
    %131 = vector.extract_strided_slice %84 {offsets = [0, 256], sizes = [8, 128], strides = [1, 1]} : vector<8x384xf32> to vector<8x128xf32>
    %132 = arith.addf %131, %8 : vector<8x128xf32>
    %133 = arith.mulf %121, %132 : vector<8x128xf32>
    %134 = arith.addf %130, %133 : vector<8x128xf32>
    %135 = math.tanh %134 : vector<8x128xf32>
    %cst_46 = arith.constant 1.000000e+00 : f32
    %136 = vector.broadcast %cst_46 : f32 to vector<8x128xf32>
    %137 = arith.subf %136, %129 : vector<8x128xf32>
    %138 = arith.mulf %137, %135 : vector<8x128xf32>
    %139 = arith.mulf %129, %74 : vector<8x128xf32>
    %140 = arith.addf %138, %139 : vector<8x128xf32>
    %c8_47 = arith.constant 8 : index
    %c0_48 = arith.constant 0 : index
    %141 = vector.load %arg6[%c8_47, %c0_48] : memref<64x256xf32, #tpu.memory_space<vmem>>, vector<8x128xf32>
    tpu.vector_store %arg6[%c8_47, %c0_48], %113 {strides = array<i32>} : memref<64x256xf32, #tpu.memory_space<vmem>>, vector<8x128xf32>,
    %c48_49 = arith.constant 48 : index
    %c128_50 = arith.constant 128 : index
    %142 = vector.load %arg6[%c48_49, %c128_50] : memref<64x256xf32, #tpu.memory_space<vmem>>, vector<8x128xf32>
    tpu.vector_store %arg6[%c48_49, %c128_50], %140 {strides = array<i32>} : memref<64x256xf32, #tpu.memory_space<vmem>>, vector<8x128xf32>,
    %143 = arith.truncf %113 : vector<8x128xf32> to vector<8x128xbf16>
    %c0_51 = arith.constant 0 : index
    %c0_52 = arith.constant 0 : index
    %c0_53 = arith.constant 0 : index
    %144 = vector.load %arg3[%c0_51, %c0_52, %c0_53] : memref<2x128x384xbf16, #tpu.memory_space<vmem>>, vector<1x128x384xbf16>
    %145 = vector.shape_cast %144 : vector<1x128x384xbf16> to vector<128x384xbf16>
    %cst_54 = arith.constant dense<0.000000e+00> : vector<8x384xf32>
    %146 = tpu.matmul %143, %145, %cst_54 {dimension_numbers = #tpu.dot_dimension_numbers<[1], [0], [0], [1], [0, 0, 1, 1], [], []>} : vector<8x128xbf16>, vector<128x384xbf16>, vector<8x384xf32> -> vector<8x384xf32>
    %147 = arith.truncf %140 : vector<8x128xf32> to vector<8x128xbf16>
    %c1_55 = arith.constant 1 : index
    %c0_56 = arith.constant 0 : index
    %c0_57 = arith.constant 0 : index
    %148 = vector.load %arg3[%c1_55, %c0_56, %c0_57] : memref<2x128x384xbf16, #tpu.memory_space<vmem>>, vector<1x128x384xbf16>
    %149 = vector.shape_cast %148 : vector<1x128x384xbf16> to vector<128x384xbf16>
    %cst_58 = arith.constant dense<0.000000e+00> : vector<8x384xf32>
    %150 = tpu.matmul %147, %149, %cst_58 {dimension_numbers = #tpu.dot_dimension_numbers<[1], [0], [0], [1], [0, 0, 1, 1], [], []>} : vector<8x128xbf16>, vector<128x384xbf16>, vector<8x384xf32> -> vector<8x384xf32>
    %c16 = arith.constant 16 : index
    %c0_59 = arith.constant 0 : index
    %151 = vector.load %arg7[%c16, %c0_59] : memref<64x768xf32, #tpu.memory_space<vmem>>, vector<8x384xf32>
    %c40 = arith.constant 40 : index
    %c384_60 = arith.constant 384 : index
    %152 = vector.load %arg7[%c40, %c384_60] : memref<64x768xf32, #tpu.memory_space<vmem>>, vector<8x384xf32>
    %153 = vector.extract_strided_slice %151 {offsets = [0, 0], sizes = [8, 128], strides = [1, 1]} : vector<8x384xf32> to vector<8x128xf32>
    %154 = vector.extract_strided_slice %146 {offsets = [0, 0], sizes = [8, 128], strides = [1, 1]} : vector<8x384xf32> to vector<8x128xf32>
    %155 = arith.addf %153, %154 : vector<8x128xf32>
    %156 = arith.negf %155 : vector<8x128xf32>
    %157 = math.exp %156 : vector<8x128xf32>
    %cst_61 = arith.constant 1.000000e+00 : f32
    %158 = vector.broadcast %cst_61 : f32 to vector<8x128xf32>
    %159 = arith.addf %158, %157 : vector<8x128xf32>
    %160 = arith.divf %158, %159 : vector<8x128xf32>
    %161 = vector.extract_strided_slice %151 {offsets = [0, 128], sizes = [8, 128], strides = [1, 1]} : vector<8x384xf32> to vector<8x128xf32>
    %162 = vector.extract_strided_slice %146 {offsets = [0, 128], sizes = [8, 128], strides = [1, 1]} : vector<8x384xf32> to vector<8x128xf32>
    %163 = arith.addf %161, %162 : vector<8x128xf32>
    %164 = arith.negf %163 : vector<8x128xf32>
    %165 = math.exp %164 : vector<8x128xf32>
    %cst_62 = arith.constant 1.000000e+00 : f32
    %166 = vector.broadcast %cst_62 : f32 to vector<8x128xf32>
    %167 = arith.addf %166, %165 : vector<8x128xf32>
    %168 = arith.divf %166, %167 : vector<8x128xf32>
    %169 = vector.extract_strided_slice %151 {offsets = [0, 256], sizes = [8, 128], strides = [1, 1]} : vector<8x384xf32> to vector<8x128xf32>
    %170 = vector.extract_strided_slice %146 {offsets = [0, 256], sizes = [8, 128], strides = [1, 1]} : vector<8x384xf32> to vector<8x128xf32>
    %171 = arith.addf %170, %7 : vector<8x128xf32>
    %172 = arith.mulf %160, %171 : vector<8x128xf32>
    %173 = arith.addf %169, %172 : vector<8x128xf32>
    %174 = math.tanh %173 : vector<8x128xf32>
    %cst_63 = arith.constant 1.000000e+00 : f32
    %175 = vector.broadcast %cst_63 : f32 to vector<8x128xf32>
    %176 = arith.subf %175, %168 : vector<8x128xf32>
    %177 = arith.mulf %176, %174 : vector<8x128xf32>
    %178 = arith.mulf %168, %113 : vector<8x128xf32>
    %179 = arith.addf %177, %178 : vector<8x128xf32>
    %180 = vector.extract_strided_slice %152 {offsets = [0, 0], sizes = [8, 128], strides = [1, 1]} : vector<8x384xf32> to vector<8x128xf32>
    %181 = vector.extract_strided_slice %150 {offsets = [0, 0], sizes = [8, 128], strides = [1, 1]} : vector<8x384xf32> to vector<8x128xf32>
    %182 = arith.addf %180, %181 : vector<8x128xf32>
    %183 = arith.negf %182 : vector<8x128xf32>
    %184 = math.exp %183 : vector<8x128xf32>
    %cst_64 = arith.constant 1.000000e+00 : f32
    %185 = vector.broadcast %cst_64 : f32 to vector<8x128xf32>
    %186 = arith.addf %185, %184 : vector<8x128xf32>
    %187 = arith.divf %185, %186 : vector<8x128xf32>
    %188 = vector.extract_strided_slice %152 {offsets = [0, 128], sizes = [8, 128], strides = [1, 1]} : vector<8x384xf32> to vector<8x128xf32>
    %189 = vector.extract_strided_slice %150 {offsets = [0, 128], sizes = [8, 128], strides = [1, 1]} : vector<8x384xf32> to vector<8x128xf32>
    %190 = arith.addf %188, %189 : vector<8x128xf32>
    %191 = arith.negf %190 : vector<8x128xf32>
    %192 = math.exp %191 : vector<8x128xf32>
    %cst_65 = arith.constant 1.000000e+00 : f32
    %193 = vector.broadcast %cst_65 : f32 to vector<8x128xf32>
    %194 = arith.addf %193, %192 : vector<8x128xf32>
    %195 = arith.divf %193, %194 : vector<8x128xf32>
    %196 = vector.extract_strided_slice %152 {offsets = [0, 256], sizes = [8, 128], strides = [1, 1]} : vector<8x384xf32> to vector<8x128xf32>
    %197 = vector.extract_strided_slice %150 {offsets = [0, 256], sizes = [8, 128], strides = [1, 1]} : vector<8x384xf32> to vector<8x128xf32>
    %198 = arith.addf %197, %8 : vector<8x128xf32>
    %199 = arith.mulf %187, %198 : vector<8x128xf32>
    %200 = arith.addf %196, %199 : vector<8x128xf32>
    %201 = math.tanh %200 : vector<8x128xf32>
    %cst_66 = arith.constant 1.000000e+00 : f32
    %202 = vector.broadcast %cst_66 : f32 to vector<8x128xf32>
    %203 = arith.subf %202, %195 : vector<8x128xf32>
    %204 = arith.mulf %203, %201 : vector<8x128xf32>
    %205 = arith.mulf %195, %140 : vector<8x128xf32>
    %206 = arith.addf %204, %205 : vector<8x128xf32>
    %c16_67 = arith.constant 16 : index
    %c0_68 = arith.constant 0 : index
    %207 = vector.load %arg6[%c16_67, %c0_68] : memref<64x256xf32, #tpu.memory_space<vmem>>, vector<8x128xf32>
    tpu.vector_store %arg6[%c16_67, %c0_68], %179 {strides = array<i32>} : memref<64x256xf32, #tpu.memory_space<vmem>>, vector<8x128xf32>,
    %c40_69 = arith.constant 40 : index
    %c128_70 = arith.constant 128 : index
    %208 = vector.load %arg6[%c40_69, %c128_70] : memref<64x256xf32, #tpu.memory_space<vmem>>, vector<8x128xf32>
    tpu.vector_store %arg6[%c40_69, %c128_70], %206 {strides = array<i32>} : memref<64x256xf32, #tpu.memory_space<vmem>>, vector<8x128xf32>,
    %209 = arith.truncf %179 : vector<8x128xf32> to vector<8x128xbf16>
    %c0_71 = arith.constant 0 : index
    %c0_72 = arith.constant 0 : index
    %c0_73 = arith.constant 0 : index
    %210 = vector.load %arg3[%c0_71, %c0_72, %c0_73] : memref<2x128x384xbf16, #tpu.memory_space<vmem>>, vector<1x128x384xbf16>
    %211 = vector.shape_cast %210 : vector<1x128x384xbf16> to vector<128x384xbf16>
    %cst_74 = arith.constant dense<0.000000e+00> : vector<8x384xf32>
    %212 = tpu.matmul %209, %211, %cst_74 {dimension_numbers = #tpu.dot_dimension_numbers<[1], [0], [0], [1], [0, 0, 1, 1], [], []>} : vector<8x128xbf16>, vector<128x384xbf16>, vector<8x384xf32> -> vector<8x384xf32>
    %213 = arith.truncf %206 : vector<8x128xf32> to vector<8x128xbf16>
    %c1_75 = arith.constant 1 : index
    %c0_76 = arith.constant 0 : index
    %c0_77 = arith.constant 0 : index
    %214 = vector.load %arg3[%c1_75, %c0_76, %c0_77] : memref<2x128x384xbf16, #tpu.memory_space<vmem>>, vector<1x128x384xbf16>
    %215 = vector.shape_cast %214 : vector<1x128x384xbf16> to vector<128x384xbf16>
    %cst_78 = arith.constant dense<0.000000e+00> : vector<8x384xf32>
    %216 = tpu.matmul %213, %215, %cst_78 {dimension_numbers = #tpu.dot_dimension_numbers<[1], [0], [0], [1], [0, 0, 1, 1], [], []>} : vector<8x128xbf16>, vector<128x384xbf16>, vector<8x384xf32> -> vector<8x384xf32>
    %c24 = arith.constant 24 : index
    %c0_79 = arith.constant 0 : index
    %217 = vector.load %arg7[%c24, %c0_79] : memref<64x768xf32, #tpu.memory_space<vmem>>, vector<8x384xf32>
    %c32 = arith.constant 32 : index
    %c384_80 = arith.constant 384 : index
    %218 = vector.load %arg7[%c32, %c384_80] : memref<64x768xf32, #tpu.memory_space<vmem>>, vector<8x384xf32>
    %219 = vector.extract_strided_slice %217 {offsets = [0, 0], sizes = [8, 128], strides = [1, 1]} : vector<8x384xf32> to vector<8x128xf32>
    %220 = vector.extract_strided_slice %212 {offsets = [0, 0], sizes = [8, 128], strides = [1, 1]} : vector<8x384xf32> to vector<8x128xf32>
    %221 = arith.addf %219, %220 : vector<8x128xf32>
    %222 = arith.negf %221 : vector<8x128xf32>
    %223 = math.exp %222 : vector<8x128xf32>
    %cst_81 = arith.constant 1.000000e+00 : f32
    %224 = vector.broadcast %cst_81 : f32 to vector<8x128xf32>
    %225 = arith.addf %224, %223 : vector<8x128xf32>
    %226 = arith.divf %224, %225 : vector<8x128xf32>
    %227 = vector.extract_strided_slice %217 {offsets = [0, 128], sizes = [8, 128], strides = [1, 1]} : vector<8x384xf32> to vector<8x128xf32>
    %228 = vector.extract_strided_slice %212 {offsets = [0, 128], sizes = [8, 128], strides = [1, 1]} : vector<8x384xf32> to vector<8x128xf32>
    %229 = arith.addf %227, %228 : vector<8x128xf32>
    %230 = arith.negf %229 : vector<8x128xf32>
    %231 = math.exp %230 : vector<8x128xf32>
    %cst_82 = arith.constant 1.000000e+00 : f32
    %232 = vector.broadcast %cst_82 : f32 to vector<8x128xf32>
    %233 = arith.addf %232, %231 : vector<8x128xf32>
    %234 = arith.divf %232, %233 : vector<8x128xf32>
    %235 = vector.extract_strided_slice %217 {offsets = [0, 256], sizes = [8, 128], strides = [1, 1]} : vector<8x384xf32> to vector<8x128xf32>
    %236 = vector.extract_strided_slice %212 {offsets = [0, 256], sizes = [8, 128], strides = [1, 1]} : vector<8x384xf32> to vector<8x128xf32>
    %237 = arith.addf %236, %7 : vector<8x128xf32>
    %238 = arith.mulf %226, %237 : vector<8x128xf32>
    %239 = arith.addf %235, %238 : vector<8x128xf32>
    %240 = math.tanh %239 : vector<8x128xf32>
    %cst_83 = arith.constant 1.000000e+00 : f32
    %241 = vector.broadcast %cst_83 : f32 to vector<8x128xf32>
    %242 = arith.subf %241, %234 : vector<8x128xf32>
    %243 = arith.mulf %242, %240 : vector<8x128xf32>
    %244 = arith.mulf %234, %179 : vector<8x128xf32>
    %245 = arith.addf %243, %244 : vector<8x128xf32>
    %246 = vector.extract_strided_slice %218 {offsets = [0, 0], sizes = [8, 128], strides = [1, 1]} : vector<8x384xf32> to vector<8x128xf32>
    %247 = vector.extract_strided_slice %216 {offsets = [0, 0], sizes = [8, 128], strides = [1, 1]} : vector<8x384xf32> to vector<8x128xf32>
    %248 = arith.addf %246, %247 : vector<8x128xf32>
    %249 = arith.negf %248 : vector<8x128xf32>
    %250 = math.exp %249 : vector<8x128xf32>
    %cst_84 = arith.constant 1.000000e+00 : f32
    %251 = vector.broadcast %cst_84 : f32 to vector<8x128xf32>
    %252 = arith.addf %251, %250 : vector<8x128xf32>
    %253 = arith.divf %251, %252 : vector<8x128xf32>
    %254 = vector.extract_strided_slice %218 {offsets = [0, 128], sizes = [8, 128], strides = [1, 1]} : vector<8x384xf32> to vector<8x128xf32>
    %255 = vector.extract_strided_slice %216 {offsets = [0, 128], sizes = [8, 128], strides = [1, 1]} : vector<8x384xf32> to vector<8x128xf32>
    %256 = arith.addf %254, %255 : vector<8x128xf32>
    %257 = arith.negf %256 : vector<8x128xf32>
    %258 = math.exp %257 : vector<8x128xf32>
    %cst_85 = arith.constant 1.000000e+00 : f32
    %259 = vector.broadcast %cst_85 : f32 to vector<8x128xf32>
    %260 = arith.addf %259, %258 : vector<8x128xf32>
    %261 = arith.divf %259, %260 : vector<8x128xf32>
    %262 = vector.extract_strided_slice %218 {offsets = [0, 256], sizes = [8, 128], strides = [1, 1]} : vector<8x384xf32> to vector<8x128xf32>
    %263 = vector.extract_strided_slice %216 {offsets = [0, 256], sizes = [8, 128], strides = [1, 1]} : vector<8x384xf32> to vector<8x128xf32>
    %264 = arith.addf %263, %8 : vector<8x128xf32>
    %265 = arith.mulf %253, %264 : vector<8x128xf32>
    %266 = arith.addf %262, %265 : vector<8x128xf32>
    %267 = math.tanh %266 : vector<8x128xf32>
    %cst_86 = arith.constant 1.000000e+00 : f32
    %268 = vector.broadcast %cst_86 : f32 to vector<8x128xf32>
    %269 = arith.subf %268, %261 : vector<8x128xf32>
    %270 = arith.mulf %269, %267 : vector<8x128xf32>
    %271 = arith.mulf %261, %206 : vector<8x128xf32>
    %272 = arith.addf %270, %271 : vector<8x128xf32>
    %c24_87 = arith.constant 24 : index
    %c0_88 = arith.constant 0 : index
    %273 = vector.load %arg6[%c24_87, %c0_88] : memref<64x256xf32, #tpu.memory_space<vmem>>, vector<8x128xf32>
    tpu.vector_store %arg6[%c24_87, %c0_88], %245 {strides = array<i32>} : memref<64x256xf32, #tpu.memory_space<vmem>>, vector<8x128xf32>,
    %c32_89 = arith.constant 32 : index
    %c128_90 = arith.constant 128 : index
    %274 = vector.load %arg6[%c32_89, %c128_90] : memref<64x256xf32, #tpu.memory_space<vmem>>, vector<8x128xf32>
    tpu.vector_store %arg6[%c32_89, %c128_90], %272 {strides = array<i32>} : memref<64x256xf32, #tpu.memory_space<vmem>>, vector<8x128xf32>,
    %275 = arith.truncf %245 : vector<8x128xf32> to vector<8x128xbf16>
    %c0_91 = arith.constant 0 : index
    %c0_92 = arith.constant 0 : index
    %c0_93 = arith.constant 0 : index
    %276 = vector.load %arg3[%c0_91, %c0_92, %c0_93] : memref<2x128x384xbf16, #tpu.memory_space<vmem>>, vector<1x128x384xbf16>
    %277 = vector.shape_cast %276 : vector<1x128x384xbf16> to vector<128x384xbf16>
    %cst_94 = arith.constant dense<0.000000e+00> : vector<8x384xf32>
    %278 = tpu.matmul %275, %277, %cst_94 {dimension_numbers = #tpu.dot_dimension_numbers<[1], [0], [0], [1], [0, 0, 1, 1], [], []>} : vector<8x128xbf16>, vector<128x384xbf16>, vector<8x384xf32> -> vector<8x384xf32>
    %279 = arith.truncf %272 : vector<8x128xf32> to vector<8x128xbf16>
    %c1_95 = arith.constant 1 : index
    %c0_96 = arith.constant 0 : index
    %c0_97 = arith.constant 0 : index
    %280 = vector.load %arg3[%c1_95, %c0_96, %c0_97] : memref<2x128x384xbf16, #tpu.memory_space<vmem>>, vector<1x128x384xbf16>
    %281 = vector.shape_cast %280 : vector<1x128x384xbf16> to vector<128x384xbf16>
    %cst_98 = arith.constant dense<0.000000e+00> : vector<8x384xf32>
    %282 = tpu.matmul %279, %281, %cst_98 {dimension_numbers = #tpu.dot_dimension_numbers<[1], [0], [0], [1], [0, 0, 1, 1], [], []>} : vector<8x128xbf16>, vector<128x384xbf16>, vector<8x384xf32> -> vector<8x384xf32>
    %c32_99 = arith.constant 32 : index
    %c0_100 = arith.constant 0 : index
    %283 = vector.load %arg7[%c32_99, %c0_100] : memref<64x768xf32, #tpu.memory_space<vmem>>, vector<8x384xf32>
    %c24_101 = arith.constant 24 : index
    %c384_102 = arith.constant 384 : index
    %284 = vector.load %arg7[%c24_101, %c384_102] : memref<64x768xf32, #tpu.memory_space<vmem>>, vector<8x384xf32>
    %285 = vector.extract_strided_slice %283 {offsets = [0, 0], sizes = [8, 128], strides = [1, 1]} : vector<8x384xf32> to vector<8x128xf32>
    %286 = vector.extract_strided_slice %278 {offsets = [0, 0], sizes = [8, 128], strides = [1, 1]} : vector<8x384xf32> to vector<8x128xf32>
    %287 = arith.addf %285, %286 : vector<8x128xf32>
    %288 = arith.negf %287 : vector<8x128xf32>
    %289 = math.exp %288 : vector<8x128xf32>
    %cst_103 = arith.constant 1.000000e+00 : f32
    %290 = vector.broadcast %cst_103 : f32 to vector<8x128xf32>
    %291 = arith.addf %290, %289 : vector<8x128xf32>
    %292 = arith.divf %290, %291 : vector<8x128xf32>
    %293 = vector.extract_strided_slice %283 {offsets = [0, 128], sizes = [8, 128], strides = [1, 1]} : vector<8x384xf32> to vector<8x128xf32>
    %294 = vector.extract_strided_slice %278 {offsets = [0, 128], sizes = [8, 128], strides = [1, 1]} : vector<8x384xf32> to vector<8x128xf32>
    %295 = arith.addf %293, %294 : vector<8x128xf32>
    %296 = arith.negf %295 : vector<8x128xf32>
    %297 = math.exp %296 : vector<8x128xf32>
    %cst_104 = arith.constant 1.000000e+00 : f32
    %298 = vector.broadcast %cst_104 : f32 to vector<8x128xf32>
    %299 = arith.addf %298, %297 : vector<8x128xf32>
    %300 = arith.divf %298, %299 : vector<8x128xf32>
    %301 = vector.extract_strided_slice %283 {offsets = [0, 256], sizes = [8, 128], strides = [1, 1]} : vector<8x384xf32> to vector<8x128xf32>
    %302 = vector.extract_strided_slice %278 {offsets = [0, 256], sizes = [8, 128], strides = [1, 1]} : vector<8x384xf32> to vector<8x128xf32>
    %303 = arith.addf %302, %7 : vector<8x128xf32>
    %304 = arith.mulf %292, %303 : vector<8x128xf32>
    %305 = arith.addf %301, %304 : vector<8x128xf32>
    %306 = math.tanh %305 : vector<8x128xf32>
    %cst_105 = arith.constant 1.000000e+00 : f32
    %307 = vector.broadcast %cst_105 : f32 to vector<8x128xf32>
    %308 = arith.subf %307, %300 : vector<8x128xf32>
    %309 = arith.mulf %308, %306 : vector<8x128xf32>
    %310 = arith.mulf %300, %245 : vector<8x128xf32>
    %311 = arith.addf %309, %310 : vector<8x128xf32>
    %312 = vector.extract_strided_slice %284 {offsets = [0, 0], sizes = [8, 128], strides = [1, 1]} : vector<8x384xf32> to vector<8x128xf32>
    %313 = vector.extract_strided_slice %282 {offsets = [0, 0], sizes = [8, 128], strides = [1, 1]} : vector<8x384xf32> to vector<8x128xf32>
    %314 = arith.addf %312, %313 : vector<8x128xf32>
    %315 = arith.negf %314 : vector<8x128xf32>
    %316 = math.exp %315 : vector<8x128xf32>
    %cst_106 = arith.constant 1.000000e+00 : f32
    %317 = vector.broadcast %cst_106 : f32 to vector<8x128xf32>
    %318 = arith.addf %317, %316 : vector<8x128xf32>
    %319 = arith.divf %317, %318 : vector<8x128xf32>
    %320 = vector.extract_strided_slice %284 {offsets = [0, 128], sizes = [8, 128], strides = [1, 1]} : vector<8x384xf32> to vector<8x128xf32>
    %321 = vector.extract_strided_slice %282 {offsets = [0, 128], sizes = [8, 128], strides = [1, 1]} : vector<8x384xf32> to vector<8x128xf32>
    %322 = arith.addf %320, %321 : vector<8x128xf32>
    %323 = arith.negf %322 : vector<8x128xf32>
    %324 = math.exp %323 : vector<8x128xf32>
    %cst_107 = arith.constant 1.000000e+00 : f32
    %325 = vector.broadcast %cst_107 : f32 to vector<8x128xf32>
    %326 = arith.addf %325, %324 : vector<8x128xf32>
    %327 = arith.divf %325, %326 : vector<8x128xf32>
    %328 = vector.extract_strided_slice %284 {offsets = [0, 256], sizes = [8, 128], strides = [1, 1]} : vector<8x384xf32> to vector<8x128xf32>
    %329 = vector.extract_strided_slice %282 {offsets = [0, 256], sizes = [8, 128], strides = [1, 1]} : vector<8x384xf32> to vector<8x128xf32>
    %330 = arith.addf %329, %8 : vector<8x128xf32>
    %331 = arith.mulf %319, %330 : vector<8x128xf32>
    %332 = arith.addf %328, %331 : vector<8x128xf32>
    %333 = math.tanh %332 : vector<8x128xf32>
    %cst_108 = arith.constant 1.000000e+00 : f32
    %334 = vector.broadcast %cst_108 : f32 to vector<8x128xf32>
    %335 = arith.subf %334, %327 : vector<8x128xf32>
    %336 = arith.mulf %335, %333 : vector<8x128xf32>
    %337 = arith.mulf %327, %272 : vector<8x128xf32>
    %338 = arith.addf %336, %337 : vector<8x128xf32>
    %c32_109 = arith.constant 32 : index
    %c0_110 = arith.constant 0 : index
    %339 = vector.load %arg6[%c32_109, %c0_110] : memref<64x256xf32, #tpu.memory_space<vmem>>, vector<8x128xf32>
    tpu.vector_store %arg6[%c32_109, %c0_110], %311 {strides = array<i32>} : memref<64x256xf32, #tpu.memory_space<vmem>>, vector<8x128xf32>,
    %c24_111 = arith.constant 24 : index
    %c128_112 = arith.constant 128 : index
    %340 = vector.load %arg6[%c24_111, %c128_112] : memref<64x256xf32, #tpu.memory_space<vmem>>, vector<8x128xf32>
    tpu.vector_store %arg6[%c24_111, %c128_112], %338 {strides = array<i32>} : memref<64x256xf32, #tpu.memory_space<vmem>>, vector<8x128xf32>,
    %341 = arith.truncf %311 : vector<8x128xf32> to vector<8x128xbf16>
    %c0_113 = arith.constant 0 : index
    %c0_114 = arith.constant 0 : index
    %c0_115 = arith.constant 0 : index
    %342 = vector.load %arg3[%c0_113, %c0_114, %c0_115] : memref<2x128x384xbf16, #tpu.memory_space<vmem>>, vector<1x128x384xbf16>
    %343 = vector.shape_cast %342 : vector<1x128x384xbf16> to vector<128x384xbf16>
    %cst_116 = arith.constant dense<0.000000e+00> : vector<8x384xf32>
    %344 = tpu.matmul %341, %343, %cst_116 {dimension_numbers = #tpu.dot_dimension_numbers<[1], [0], [0], [1], [0, 0, 1, 1], [], []>} : vector<8x128xbf16>, vector<128x384xbf16>, vector<8x384xf32> -> vector<8x384xf32>
    %345 = arith.truncf %338 : vector<8x128xf32> to vector<8x128xbf16>
    %c1_117 = arith.constant 1 : index
    %c0_118 = arith.constant 0 : index
    %c0_119 = arith.constant 0 : index
    %346 = vector.load %arg3[%c1_117, %c0_118, %c0_119] : memref<2x128x384xbf16, #tpu.memory_space<vmem>>, vector<1x128x384xbf16>
    %347 = vector.shape_cast %346 : vector<1x128x384xbf16> to vector<128x384xbf16>
    %cst_120 = arith.constant dense<0.000000e+00> : vector<8x384xf32>
    %348 = tpu.matmul %345, %347, %cst_120 {dimension_numbers = #tpu.dot_dimension_numbers<[1], [0], [0], [1], [0, 0, 1, 1], [], []>} : vector<8x128xbf16>, vector<128x384xbf16>, vector<8x384xf32> -> vector<8x384xf32>
    %c40_121 = arith.constant 40 : index
    %c0_122 = arith.constant 0 : index
    %349 = vector.load %arg7[%c40_121, %c0_122] : memref<64x768xf32, #tpu.memory_space<vmem>>, vector<8x384xf32>
    %c16_123 = arith.constant 16 : index
    %c384_124 = arith.constant 384 : index
    %350 = vector.load %arg7[%c16_123, %c384_124] : memref<64x768xf32, #tpu.memory_space<vmem>>, vector<8x384xf32>
    %351 = vector.extract_strided_slice %349 {offsets = [0, 0], sizes = [8, 128], strides = [1, 1]} : vector<8x384xf32> to vector<8x128xf32>
    %352 = vector.extract_strided_slice %344 {offsets = [0, 0], sizes = [8, 128], strides = [1, 1]} : vector<8x384xf32> to vector<8x128xf32>
    %353 = arith.addf %351, %352 : vector<8x128xf32>
    %354 = arith.negf %353 : vector<8x128xf32>
    %355 = math.exp %354 : vector<8x128xf32>
    %cst_125 = arith.constant 1.000000e+00 : f32
    %356 = vector.broadcast %cst_125 : f32 to vector<8x128xf32>
    %357 = arith.addf %356, %355 : vector<8x128xf32>
    %358 = arith.divf %356, %357 : vector<8x128xf32>
    %359 = vector.extract_strided_slice %349 {offsets = [0, 128], sizes = [8, 128], strides = [1, 1]} : vector<8x384xf32> to vector<8x128xf32>
    %360 = vector.extract_strided_slice %344 {offsets = [0, 128], sizes = [8, 128], strides = [1, 1]} : vector<8x384xf32> to vector<8x128xf32>
    %361 = arith.addf %359, %360 : vector<8x128xf32>
    %362 = arith.negf %361 : vector<8x128xf32>
    %363 = math.exp %362 : vector<8x128xf32>
    %cst_126 = arith.constant 1.000000e+00 : f32
    %364 = vector.broadcast %cst_126 : f32 to vector<8x128xf32>
    %365 = arith.addf %364, %363 : vector<8x128xf32>
    %366 = arith.divf %364, %365 : vector<8x128xf32>
    %367 = vector.extract_strided_slice %349 {offsets = [0, 256], sizes = [8, 128], strides = [1, 1]} : vector<8x384xf32> to vector<8x128xf32>
    %368 = vector.extract_strided_slice %344 {offsets = [0, 256], sizes = [8, 128], strides = [1, 1]} : vector<8x384xf32> to vector<8x128xf32>
    %369 = arith.addf %368, %7 : vector<8x128xf32>
    %370 = arith.mulf %358, %369 : vector<8x128xf32>
    %371 = arith.addf %367, %370 : vector<8x128xf32>
    %372 = math.tanh %371 : vector<8x128xf32>
    %cst_127 = arith.constant 1.000000e+00 : f32
    %373 = vector.broadcast %cst_127 : f32 to vector<8x128xf32>
    %374 = arith.subf %373, %366 : vector<8x128xf32>
    %375 = arith.mulf %374, %372 : vector<8x128xf32>
    %376 = arith.mulf %366, %311 : vector<8x128xf32>
    %377 = arith.addf %375, %376 : vector<8x128xf32>
    %378 = vector.extract_strided_slice %350 {offsets = [0, 0], sizes = [8, 128], strides = [1, 1]} : vector<8x384xf32> to vector<8x128xf32>
    %379 = vector.extract_strided_slice %348 {offsets = [0, 0], sizes = [8, 128], strides = [1, 1]} : vector<8x384xf32> to vector<8x128xf32>
    %380 = arith.addf %378, %379 : vector<8x128xf32>
    %381 = arith.negf %380 : vector<8x128xf32>
    %382 = math.exp %381 : vector<8x128xf32>
    %cst_128 = arith.constant 1.000000e+00 : f32
    %383 = vector.broadcast %cst_128 : f32 to vector<8x128xf32>
    %384 = arith.addf %383, %382 : vector<8x128xf32>
    %385 = arith.divf %383, %384 : vector<8x128xf32>
    %386 = vector.extract_strided_slice %350 {offsets = [0, 128], sizes = [8, 128], strides = [1, 1]} : vector<8x384xf32> to vector<8x128xf32>
    %387 = vector.extract_strided_slice %348 {offsets = [0, 128], sizes = [8, 128], strides = [1, 1]} : vector<8x384xf32> to vector<8x128xf32>
    %388 = arith.addf %386, %387 : vector<8x128xf32>
    %389 = arith.negf %388 : vector<8x128xf32>
    %390 = math.exp %389 : vector<8x128xf32>
    %cst_129 = arith.constant 1.000000e+00 : f32
    %391 = vector.broadcast %cst_129 : f32 to vector<8x128xf32>
    %392 = arith.addf %391, %390 : vector<8x128xf32>
    %393 = arith.divf %391, %392 : vector<8x128xf32>
    %394 = vector.extract_strided_slice %350 {offsets = [0, 256], sizes = [8, 128], strides = [1, 1]} : vector<8x384xf32> to vector<8x128xf32>
    %395 = vector.extract_strided_slice %348 {offsets = [0, 256], sizes = [8, 128], strides = [1, 1]} : vector<8x384xf32> to vector<8x128xf32>
    %396 = arith.addf %395, %8 : vector<8x128xf32>
    %397 = arith.mulf %385, %396 : vector<8x128xf32>
    %398 = arith.addf %394, %397 : vector<8x128xf32>
    %399 = math.tanh %398 : vector<8x128xf32>
    %cst_130 = arith.constant 1.000000e+00 : f32
    %400 = vector.broadcast %cst_130 : f32 to vector<8x128xf32>
    %401 = arith.subf %400, %393 : vector<8x128xf32>
    %402 = arith.mulf %401, %399 : vector<8x128xf32>
    %403 = arith.mulf %393, %338 : vector<8x128xf32>
    %404 = arith.addf %402, %403 : vector<8x128xf32>
    %c40_131 = arith.constant 40 : index
    %c0_132 = arith.constant 0 : index
    %405 = vector.load %arg6[%c40_131, %c0_132] : memref<64x256xf32, #tpu.memory_space<vmem>>, vector<8x128xf32>
    tpu.vector_store %arg6[%c40_131, %c0_132], %377 {strides = array<i32>} : memref<64x256xf32, #tpu.memory_space<vmem>>, vector<8x128xf32>,
    %c16_133 = arith.constant 16 : index
    %c128_134 = arith.constant 128 : index
    %406 = vector.load %arg6[%c16_133, %c128_134] : memref<64x256xf32, #tpu.memory_space<vmem>>, vector<8x128xf32>
    tpu.vector_store %arg6[%c16_133, %c128_134], %404 {strides = array<i32>} : memref<64x256xf32, #tpu.memory_space<vmem>>, vector<8x128xf32>,
    %407 = arith.truncf %377 : vector<8x128xf32> to vector<8x128xbf16>
    %c0_135 = arith.constant 0 : index
    %c0_136 = arith.constant 0 : index
    %c0_137 = arith.constant 0 : index
    %408 = vector.load %arg3[%c0_135, %c0_136, %c0_137] : memref<2x128x384xbf16, #tpu.memory_space<vmem>>, vector<1x128x384xbf16>
    %409 = vector.shape_cast %408 : vector<1x128x384xbf16> to vector<128x384xbf16>
    %cst_138 = arith.constant dense<0.000000e+00> : vector<8x384xf32>
    %410 = tpu.matmul %407, %409, %cst_138 {dimension_numbers = #tpu.dot_dimension_numbers<[1], [0], [0], [1], [0, 0, 1, 1], [], []>} : vector<8x128xbf16>, vector<128x384xbf16>, vector<8x384xf32> -> vector<8x384xf32>
    %411 = arith.truncf %404 : vector<8x128xf32> to vector<8x128xbf16>
    %c1_139 = arith.constant 1 : index
    %c0_140 = arith.constant 0 : index
    %c0_141 = arith.constant 0 : index
    %412 = vector.load %arg3[%c1_139, %c0_140, %c0_141] : memref<2x128x384xbf16, #tpu.memory_space<vmem>>, vector<1x128x384xbf16>
    %413 = vector.shape_cast %412 : vector<1x128x384xbf16> to vector<128x384xbf16>
    %cst_142 = arith.constant dense<0.000000e+00> : vector<8x384xf32>
    %414 = tpu.matmul %411, %413, %cst_142 {dimension_numbers = #tpu.dot_dimension_numbers<[1], [0], [0], [1], [0, 0, 1, 1], [], []>} : vector<8x128xbf16>, vector<128x384xbf16>, vector<8x384xf32> -> vector<8x384xf32>
    %c48_143 = arith.constant 48 : index
    %c0_144 = arith.constant 0 : index
    %415 = vector.load %arg7[%c48_143, %c0_144] : memref<64x768xf32, #tpu.memory_space<vmem>>, vector<8x384xf32>
    %c8_145 = arith.constant 8 : index
    %c384_146 = arith.constant 384 : index
    %416 = vector.load %arg7[%c8_145, %c384_146] : memref<64x768xf32, #tpu.memory_space<vmem>>, vector<8x384xf32>
    %417 = vector.extract_strided_slice %415 {offsets = [0, 0], sizes = [8, 128], strides = [1, 1]} : vector<8x384xf32> to vector<8x128xf32>
    %418 = vector.extract_strided_slice %410 {offsets = [0, 0], sizes = [8, 128], strides = [1, 1]} : vector<8x384xf32> to vector<8x128xf32>
    %419 = arith.addf %417, %418 : vector<8x128xf32>
    %420 = arith.negf %419 : vector<8x128xf32>
    %421 = math.exp %420 : vector<8x128xf32>
    %cst_147 = arith.constant 1.000000e+00 : f32
    %422 = vector.broadcast %cst_147 : f32 to vector<8x128xf32>
    %423 = arith.addf %422, %421 : vector<8x128xf32>
    %424 = arith.divf %422, %423 : vector<8x128xf32>
    %425 = vector.extract_strided_slice %415 {offsets = [0, 128], sizes = [8, 128], strides = [1, 1]} : vector<8x384xf32> to vector<8x128xf32>
    %426 = vector.extract_strided_slice %410 {offsets = [0, 128], sizes = [8, 128], strides = [1, 1]} : vector<8x384xf32> to vector<8x128xf32>
    %427 = arith.addf %425, %426 : vector<8x128xf32>
    %428 = arith.negf %427 : vector<8x128xf32>
    %429 = math.exp %428 : vector<8x128xf32>
    %cst_148 = arith.constant 1.000000e+00 : f32
    %430 = vector.broadcast %cst_148 : f32 to vector<8x128xf32>
    %431 = arith.addf %430, %429 : vector<8x128xf32>
    %432 = arith.divf %430, %431 : vector<8x128xf32>
    %433 = vector.extract_strided_slice %415 {offsets = [0, 256], sizes = [8, 128], strides = [1, 1]} : vector<8x384xf32> to vector<8x128xf32>
    %434 = vector.extract_strided_slice %410 {offsets = [0, 256], sizes = [8, 128], strides = [1, 1]} : vector<8x384xf32> to vector<8x128xf32>
    %435 = arith.addf %434, %7 : vector<8x128xf32>
    %436 = arith.mulf %424, %435 : vector<8x128xf32>
    %437 = arith.addf %433, %436 : vector<8x128xf32>
    %438 = math.tanh %437 : vector<8x128xf32>
    %cst_149 = arith.constant 1.000000e+00 : f32
    %439 = vector.broadcast %cst_149 : f32 to vector<8x128xf32>
    %440 = arith.subf %439, %432 : vector<8x128xf32>
    %441 = arith.mulf %440, %438 : vector<8x128xf32>
    %442 = arith.mulf %432, %377 : vector<8x128xf32>
    %443 = arith.addf %441, %442 : vector<8x128xf32>
    %444 = vector.extract_strided_slice %416 {offsets = [0, 0], sizes = [8, 128], strides = [1, 1]} : vector<8x384xf32> to vector<8x128xf32>
    %445 = vector.extract_strided_slice %414 {offsets = [0, 0], sizes = [8, 128], strides = [1, 1]} : vector<8x384xf32> to vector<8x128xf32>
    %446 = arith.addf %444, %445 : vector<8x128xf32>
    %447 = arith.negf %446 : vector<8x128xf32>
    %448 = math.exp %447 : vector<8x128xf32>
    %cst_150 = arith.constant 1.000000e+00 : f32
    %449 = vector.broadcast %cst_150 : f32 to vector<8x128xf32>
    %450 = arith.addf %449, %448 : vector<8x128xf32>
    %451 = arith.divf %449, %450 : vector<8x128xf32>
    %452 = vector.extract_strided_slice %416 {offsets = [0, 128], sizes = [8, 128], strides = [1, 1]} : vector<8x384xf32> to vector<8x128xf32>
    %453 = vector.extract_strided_slice %414 {offsets = [0, 128], sizes = [8, 128], strides = [1, 1]} : vector<8x384xf32> to vector<8x128xf32>
    %454 = arith.addf %452, %453 : vector<8x128xf32>
    %455 = arith.negf %454 : vector<8x128xf32>
    %456 = math.exp %455 : vector<8x128xf32>
    %cst_151 = arith.constant 1.000000e+00 : f32
    %457 = vector.broadcast %cst_151 : f32 to vector<8x128xf32>
    %458 = arith.addf %457, %456 : vector<8x128xf32>
    %459 = arith.divf %457, %458 : vector<8x128xf32>
    %460 = vector.extract_strided_slice %416 {offsets = [0, 256], sizes = [8, 128], strides = [1, 1]} : vector<8x384xf32> to vector<8x128xf32>
    %461 = vector.extract_strided_slice %414 {offsets = [0, 256], sizes = [8, 128], strides = [1, 1]} : vector<8x384xf32> to vector<8x128xf32>
    %462 = arith.addf %461, %8 : vector<8x128xf32>
    %463 = arith.mulf %451, %462 : vector<8x128xf32>
    %464 = arith.addf %460, %463 : vector<8x128xf32>
    %465 = math.tanh %464 : vector<8x128xf32>
    %cst_152 = arith.constant 1.000000e+00 : f32
    %466 = vector.broadcast %cst_152 : f32 to vector<8x128xf32>
    %467 = arith.subf %466, %459 : vector<8x128xf32>
    %468 = arith.mulf %467, %465 : vector<8x128xf32>
    %469 = arith.mulf %459, %404 : vector<8x128xf32>
    %470 = arith.addf %468, %469 : vector<8x128xf32>
    %c48_153 = arith.constant 48 : index
    %c0_154 = arith.constant 0 : index
    %471 = vector.load %arg6[%c48_153, %c0_154] : memref<64x256xf32, #tpu.memory_space<vmem>>, vector<8x128xf32>
    tpu.vector_store %arg6[%c48_153, %c0_154], %443 {strides = array<i32>} : memref<64x256xf32, #tpu.memory_space<vmem>>, vector<8x128xf32>,
    %c8_155 = arith.constant 8 : index
    %c128_156 = arith.constant 128 : index
    %472 = vector.load %arg6[%c8_155, %c128_156] : memref<64x256xf32, #tpu.memory_space<vmem>>, vector<8x128xf32>
    tpu.vector_store %arg6[%c8_155, %c128_156], %470 {strides = array<i32>} : memref<64x256xf32, #tpu.memory_space<vmem>>, vector<8x128xf32>,
    %473 = arith.truncf %443 : vector<8x128xf32> to vector<8x128xbf16>
    %c0_157 = arith.constant 0 : index
    %c0_158 = arith.constant 0 : index
    %c0_159 = arith.constant 0 : index
    %474 = vector.load %arg3[%c0_157, %c0_158, %c0_159] : memref<2x128x384xbf16, #tpu.memory_space<vmem>>, vector<1x128x384xbf16>
    %475 = vector.shape_cast %474 : vector<1x128x384xbf16> to vector<128x384xbf16>
    %cst_160 = arith.constant dense<0.000000e+00> : vector<8x384xf32>
    %476 = tpu.matmul %473, %475, %cst_160 {dimension_numbers = #tpu.dot_dimension_numbers<[1], [0], [0], [1], [0, 0, 1, 1], [], []>} : vector<8x128xbf16>, vector<128x384xbf16>, vector<8x384xf32> -> vector<8x384xf32>
    %477 = arith.truncf %470 : vector<8x128xf32> to vector<8x128xbf16>
    %c1_161 = arith.constant 1 : index
    %c0_162 = arith.constant 0 : index
    %c0_163 = arith.constant 0 : index
    %478 = vector.load %arg3[%c1_161, %c0_162, %c0_163] : memref<2x128x384xbf16, #tpu.memory_space<vmem>>, vector<1x128x384xbf16>
    %479 = vector.shape_cast %478 : vector<1x128x384xbf16> to vector<128x384xbf16>
    %cst_164 = arith.constant dense<0.000000e+00> : vector<8x384xf32>
    %480 = tpu.matmul %477, %479, %cst_164 {dimension_numbers = #tpu.dot_dimension_numbers<[1], [0], [0], [1], [0, 0, 1, 1], [], []>} : vector<8x128xbf16>, vector<128x384xbf16>, vector<8x384xf32> -> vector<8x384xf32>
    %c56_165 = arith.constant 56 : index
    %c0_166 = arith.constant 0 : index
    %481 = vector.load %arg7[%c56_165, %c0_166] : memref<64x768xf32, #tpu.memory_space<vmem>>, vector<8x384xf32>
    %c0_167 = arith.constant 0 : index
    %c384_168 = arith.constant 384 : index
    %482 = vector.load %arg7[%c0_167, %c384_168] : memref<64x768xf32, #tpu.memory_space<vmem>>, vector<8x384xf32>
    %483 = vector.extract_strided_slice %481 {offsets = [0, 0], sizes = [8, 128], strides = [1, 1]} : vector<8x384xf32> to vector<8x128xf32>
    %484 = vector.extract_strided_slice %476 {offsets = [0, 0], sizes = [8, 128], strides = [1, 1]} : vector<8x384xf32> to vector<8x128xf32>
    %485 = arith.addf %483, %484 : vector<8x128xf32>
    %486 = arith.negf %485 : vector<8x128xf32>
    %487 = math.exp %486 : vector<8x128xf32>
    %cst_169 = arith.constant 1.000000e+00 : f32
    %488 = vector.broadcast %cst_169 : f32 to vector<8x128xf32>
    %489 = arith.addf %488, %487 : vector<8x128xf32>
    %490 = arith.divf %488, %489 : vector<8x128xf32>
    %491 = vector.extract_strided_slice %481 {offsets = [0, 128], sizes = [8, 128], strides = [1, 1]} : vector<8x384xf32> to vector<8x128xf32>
    %492 = vector.extract_strided_slice %476 {offsets = [0, 128], sizes = [8, 128], strides = [1, 1]} : vector<8x384xf32> to vector<8x128xf32>
    %493 = arith.addf %491, %492 : vector<8x128xf32>
    %494 = arith.negf %493 : vector<8x128xf32>
    %495 = math.exp %494 : vector<8x128xf32>
    %cst_170 = arith.constant 1.000000e+00 : f32
    %496 = vector.broadcast %cst_170 : f32 to vector<8x128xf32>
    %497 = arith.addf %496, %495 : vector<8x128xf32>
    %498 = arith.divf %496, %497 : vector<8x128xf32>
    %499 = vector.extract_strided_slice %481 {offsets = [0, 256], sizes = [8, 128], strides = [1, 1]} : vector<8x384xf32> to vector<8x128xf32>
    %500 = vector.extract_strided_slice %476 {offsets = [0, 256], sizes = [8, 128], strides = [1, 1]} : vector<8x384xf32> to vector<8x128xf32>
    %501 = arith.addf %500, %7 : vector<8x128xf32>
    %502 = arith.mulf %490, %501 : vector<8x128xf32>
    %503 = arith.addf %499, %502 : vector<8x128xf32>
    %504 = math.tanh %503 : vector<8x128xf32>
    %cst_171 = arith.constant 1.000000e+00 : f32
    %505 = vector.broadcast %cst_171 : f32 to vector<8x128xf32>
    %506 = arith.subf %505, %498 : vector<8x128xf32>
    %507 = arith.mulf %506, %504 : vector<8x128xf32>
    %508 = arith.mulf %498, %443 : vector<8x128xf32>
    %509 = arith.addf %507, %508 : vector<8x128xf32>
    %510 = vector.extract_strided_slice %482 {offsets = [0, 0], sizes = [8, 128], strides = [1, 1]} : vector<8x384xf32> to vector<8x128xf32>
    %511 = vector.extract_strided_slice %480 {offsets = [0, 0], sizes = [8, 128], strides = [1, 1]} : vector<8x384xf32> to vector<8x128xf32>
    %512 = arith.addf %510, %511 : vector<8x128xf32>
    %513 = arith.negf %512 : vector<8x128xf32>
    %514 = math.exp %513 : vector<8x128xf32>
    %cst_172 = arith.constant 1.000000e+00 : f32
    %515 = vector.broadcast %cst_172 : f32 to vector<8x128xf32>
    %516 = arith.addf %515, %514 : vector<8x128xf32>
    %517 = arith.divf %515, %516 : vector<8x128xf32>
    %518 = vector.extract_strided_slice %482 {offsets = [0, 128], sizes = [8, 128], strides = [1, 1]} : vector<8x384xf32> to vector<8x128xf32>
    %519 = vector.extract_strided_slice %480 {offsets = [0, 128], sizes = [8, 128], strides = [1, 1]} : vector<8x384xf32> to vector<8x128xf32>
    %520 = arith.addf %518, %519 : vector<8x128xf32>
    %521 = arith.negf %520 : vector<8x128xf32>
    %522 = math.exp %521 : vector<8x128xf32>
    %cst_173 = arith.constant 1.000000e+00 : f32
    %523 = vector.broadcast %cst_173 : f32 to vector<8x128xf32>
    %524 = arith.addf %523, %522 : vector<8x128xf32>
    %525 = arith.divf %523, %524 : vector<8x128xf32>
    %526 = vector.extract_strided_slice %482 {offsets = [0, 256], sizes = [8, 128], strides = [1, 1]} : vector<8x384xf32> to vector<8x128xf32>
    %527 = vector.extract_strided_slice %480 {offsets = [0, 256], sizes = [8, 128], strides = [1, 1]} : vector<8x384xf32> to vector<8x128xf32>
    %528 = arith.addf %527, %8 : vector<8x128xf32>
    %529 = arith.mulf %517, %528 : vector<8x128xf32>
    %530 = arith.addf %526, %529 : vector<8x128xf32>
    %531 = math.tanh %530 : vector<8x128xf32>
    %cst_174 = arith.constant 1.000000e+00 : f32
    %532 = vector.broadcast %cst_174 : f32 to vector<8x128xf32>
    %533 = arith.subf %532, %525 : vector<8x128xf32>
    %534 = arith.mulf %533, %531 : vector<8x128xf32>
    %535 = arith.mulf %525, %470 : vector<8x128xf32>
    %536 = arith.addf %534, %535 : vector<8x128xf32>
    %c56_175 = arith.constant 56 : index
    %c0_176 = arith.constant 0 : index
    %537 = vector.load %arg6[%c56_175, %c0_176] : memref<64x256xf32, #tpu.memory_space<vmem>>, vector<8x128xf32>
    tpu.vector_store %arg6[%c56_175, %c0_176], %509 {strides = array<i32>} : memref<64x256xf32, #tpu.memory_space<vmem>>, vector<8x128xf32>,
    %c0_177 = arith.constant 0 : index
    %c128_178 = arith.constant 128 : index
    %538 = vector.load %arg6[%c0_177, %c128_178] : memref<64x256xf32, #tpu.memory_space<vmem>>, vector<8x128xf32>
    tpu.vector_store %arg6[%c0_177, %c128_178], %536 {strides = array<i32>} : memref<64x256xf32, #tpu.memory_space<vmem>>, vector<8x128xf32>,
    return
  }
  func.func @transform_0(%arg0: i32) -> (i32, i32) {
    %c0_i32 = arith.constant 0 : i32
    %c0_i32_0 = arith.constant 0 : i32
    %c0_i32_1 = arith.constant 0 : i32
    return %c0_i32, %c0_i32_0 : i32, i32
  }
  func.func @transform_1(%arg0: i32) -> (i32, i32) {
    %c0_i32 = arith.constant 0 : i32
    %c0_i32_0 = arith.constant 0 : i32
    %c0_i32_1 = arith.constant 0 : i32
    return %c0_i32, %c0_i32_0 : i32, i32
  }
  func.func @transform_2(%arg0: i32) -> (i32, i32, i32) {
    %c0_i32 = arith.constant 0 : i32
    %c0_i32_0 = arith.constant 0 : i32
    %c0_i32_1 = arith.constant 0 : i32
    %c0_i32_2 = arith.constant 0 : i32
    return %c0_i32, %c0_i32_0, %c0_i32_1 : i32, i32, i32
  }
  func.func @transform_3(%arg0: i32) -> (i32, i32) {
    %c0_i32 = arith.constant 0 : i32
    %c0_i32_0 = arith.constant 0 : i32
    %c0_i32_1 = arith.constant 0 : i32
    return %c0_i32, %c0_i32_0 : i32, i32
  }
  func.func @transform_4(%arg0: i32) -> (i32, i32) {
    %c0_i32 = arith.constant 0 : i32
    %c0_i32_0 = arith.constant 0 : i32
    %c0_i32_1 = arith.constant 0 : i32
    return %c0_i32, %c0_i32_0 : i32, i32
  }
  func.func @transform_5(%arg0: i32) -> (i32, i32) {
    %c0_i32 = arith.constant 0 : i32
    %c0_i32_0 = arith.constant 0 : i32
    %c0_i32_1 = arith.constant 0 : i32
    return %c0_i32, %c0_i32_0 : i32, i32
  }
}

</mosaic_0001>

<bundles_post_ra>
// kernel: tpu_custom_call.1
= control target key start
LH: loop header
LB: loop body
LE: loop exit
PB: predicated region body
PF: predicated region fallthrough
CT: control target
= control target key end

     0   :  { %10 = vsyncpa [#allocation4], 0  ;;  %s7592_s0 = inlined_call_operand.hbm [shape: bf16[64,128], index: 0, kind: input, shape index: {}]   ;;  %s7593_s1 = inlined_call_operand.hbm [shape: bf16[128,768], index: 1, kind: input, shape index: {}]   ;;  %s7594_s2 = inlined_call_operand.hbm [shape: bf16[2,128,384], index: 2, kind: input, shape index: {}]   ;;  %s7595_s3 = inlined_call_operand.hbm [shape: f32[1,768], index: 3, kind: input, shape index: {}]   ;;  %s7596_s4 = inlined_call_operand.hbm [shape: f32[8,256], index: 4, kind: input, shape index: {}]   ;;  %s7597_s5 = inlined_call_operand.hbm [shape: f32[64,256], index: 5, kind: output, shape index: {}]  }
   0x1   :  { %11 = vsyncpa [#allocation7], 0 }
   0x2   :  { %12 = vsyncpa [#allocation10], 0 }
   0x3   :  { %13 = vsyncpa [#allocation5], 0  ;;  %s6615_s18 = smov [#allocation6]  }
   0x4   :  { %s31_s19 = sshll.u32 %s6615_s18, 4  ;;  %s32_s19 = int_to_ptr.vmem [resolvable:$true] %s31_s19 }
   0x5   :  { %s6495_s20 = scalar_lea.vmem %s32_s19, 6144  ;;  %p6500_p1 = scmp.lt.s32.totalorder %s32_s19, %s32_s19 }
   0x6   :  { %p6496_p0 = scmp.ne.s32.totalorder %s32_s19, %s6495_s20  ;;  %p6501_p2 = scmp.lt.s32.totalorder %s6495_s20, %s6495_s20 }
   0x8   :  { %p6502_p3 = por %p6501_p2, %p6500_p1 }
   0xa   :  { %p6503_p4 = pnand %p6502_p3, %p6496_p0 }
   0xc   :  { %6506 = shalt.err (!%p6503_p4)
}
   0xd   :  { %s6616_s21 = smov 384   ;;  %s6617_s22 = smov 24  }
   0xe   :  { %37 = dma.hbm_to_vmem [thread:$0]  %s7593_s1, 6144, %s32_s19, [#allocation7], %s6616_s21, %s6616_s21, %s6617_s22  }
   0xf   :  { %s6618_s25 = smov [#allocation9]   ;;  %s6619_s27 = smov [#allocation3]  }
  0x10   :  { %s56_s26 = sshll.u32 %s6618_s25, 4  ;;  %s19_s28 = sshll.u32 %s6619_s27, 4  ;;  %s57_s26 = int_to_ptr.vmem [resolvable:$true] %s56_s26  ;;  %s20_s28 = int_to_ptr.vmem [resolvable:$true] %s19_s28 }
  0x11   :  { %s6515_s29 = scalar_lea.vmem %s57_s26, 96  ;;  %p6520_p6 = scmp.lt.s32.totalorder %s57_s26, %s57_s26 }
  0x12   :  { %p6516_p5 = scmp.ne.s32.totalorder %s57_s26, %s6515_s29  ;;  %p6521_p7 = scmp.lt.s32.totalorder %s6515_s29, %s6515_s29 }
  0x14   :  { %p6522_p8 = por %p6521_p7, %p6520_p6 }
  0x16   :  { %p6523_p9 = pnand %p6522_p8, %p6516_p5 }
  0x18   :  { %6526 = shalt.err (!%p6523_p9)
}
  0x19   :  { %59 = dma.hbm_to_vmem [thread:$0]  %s7595_s3, 96, %s57_s26, [#allocation10]  }
  0x1a   :  { %s6535_s7 = scalar_lea.vmem %s20_s28, 512  ;;  %p6540_p11 = scmp.lt.s32.totalorder %s20_s28, %s20_s28 }
  0x1b   :  { %p6536_p10 = scmp.ne.s32.totalorder %s20_s28, %s6535_s7  ;;  %p6541_p12 = scmp.lt.s32.totalorder %s6535_s7, %s6535_s7 }
  0x1d   :  { %p6542_p13 = por %p6541_p12, %p6540_p11 }
  0x1f   :  { %p6543_p0 = pnand %p6542_p13, %p6536_p10 }
  0x21   :  { %6546 = shalt.err (!%p6543_p0)
}
  0x22   :  { %s6620_s1 = smov 64   ;;  %s6621_s8 = smov 4  }
  0x23   :  { %25 = dma.hbm_to_vmem [thread:$0]  %s7592_s0, 512, %s20_s28, [#allocation4], %s6620_s1, %s6620_s1, %s6621_s8  }
  0x24   :  { %s6622_s11 = smov [#allocation8]  }
  0x25   :  { %s43_s12 = sshll.u32 %s6622_s11, 4  ;;  %s44_s12 = int_to_ptr.vmem [resolvable:$true] %s43_s12 }
  0x26   :  { %s6555_s13 = scalar_lea.vmem %s44_s12, 6144  ;;  %p6560_p2 = scmp.lt.s32.totalorder %s44_s12, %s44_s12 }
  0x27   :  { %p6556_p1 = scmp.ne.s32.totalorder %s44_s12, %s6555_s13  ;;  %p6561_p3 = scmp.lt.s32.totalorder %s6555_s13, %s6555_s13 }
  0x29   :  { %p6562_p4 = por %p6561_p3, %p6560_p2 }
  0x2b   :  { %p6563_p5 = pnand %p6562_p4, %p6556_p1 }
  0x2d   :  { %6566 = shalt.err (!%p6563_p5)
}
  0x2e   :  { %s6623_s3 = smov 192   ;;  %s6624_s14 = smov 12  }
  0x2f   :  { %49 = dma.hbm_to_vmem [thread:$0]  %s7594_s2, 6144, %s44_s12, [#allocation7], %s6623_s3, %s6623_s3, %s6624_s14  }
  0x30   :  { %s6625_s17 = smov [#allocation11]  }
  0x31   :  { %s66_s18 = sshll.u32 %s6625_s17, 4  ;;  %s67_s18 = int_to_ptr.vmem [resolvable:$true] %s66_s18 }
  0x32   :  { %s6575_s0 = scalar_lea.vmem %s67_s18, 256  ;;  %p6580_p7 = scmp.lt.s32.totalorder %s67_s18, %s67_s18 }
  0x33   :  { %p6576_p6 = scmp.ne.s32.totalorder %s67_s18, %s6575_s0  ;;  %p6581_p8 = scmp.lt.s32.totalorder %s6575_s0, %s6575_s0 }
  0x35   :  { %p6582_p9 = por %p6581_p8, %p6580_p7 }
  0x37   :  { %p6583_p10 = pnand %p6582_p9, %p6576_p6 }
  0x39   :  { %6586 = shalt.err (!%p6583_p10)
}
  0x3a   :  { %69 = dma.hbm_to_vmem [thread:$0]  %s7596_s4, 256, %s67_s18, [#allocation10]  }
  0x3b   :  { %6607 = dma.done.wait [#allocation4], 512  }
  0x3c   :  { %6608 = vsyncadd [#allocation4], 4294966784 }
  0x3d   :  { %6609 = dma.done.wait [#allocation7], 12288  }
  0x3e   :  { %6610 = vsyncadd [#allocation7], 4294955008 }
  0x3f   :  { %6611 = dma.done.wait [#allocation10], 352  }
  0x40   :  { %6612 = vsyncadd [#allocation10], 4294966944  ;;  %v7598_v0 = vmov 0   ;;  %v5962_v1 = vld [vmem:[#allocation6 + $0x154] ss:$24 sps:$4 sm:$0xff]   ;;  %v6681_v35 = vld [vmem:[#allocation3] sm:$0xff]  }
  0x41   :  { %470 = vmatprep.mubr.bf16.mxu0 %v7598_v0  ;;  %543 = vmatprep.mubr.bf16.mxu1 %v7598_v0  ;;  %v5964_v2 = vld [vmem:[#allocation6 + $0x15c] ss:$24 sps:$4 sm:$0xff]   ;;  %v5966_v3 = vld [vmem:[#allocation6 + $0x150] ss:$24 sps:$4 sm:$0xff]   ;;  %v5970_v6 = vld [vmem:[#allocation6 + $0x12c] ss:$24 sps:$4 sm:$0xff]  }
  0x42   :  { %438 = vmatprep.subr.bf16.mxu0 %v5962_v1  ;;  %v5967_v4 = vld [vmem:[#allocation6 + $0x158] ss:$24 sps:$4 sm:$0xff]   ;;  %511 = vmatprep.subr.bf16.mxu1 %v5964_v2  ;;  %v5968_v5 = vld [vmem:[#allocation6 + $0x124] ss:$24 sps:$4 sm:$0xff]   ;;  %v5973_v8 = vld [vmem:[#allocation6 + $0x128] ss:$24 sps:$4 sm:$0xff]  }
  0x43   :  { %439 = vmatpush1.bf16.msra.mxu0 %v5966_v3  ;;  %512 = vmatpush1.bf16.msra.mxu1 %v5967_v4  ;;  %v5972_v7 = vld [vmem:[#allocation6 + $0x120] ss:$24 sps:$4 sm:$0xff]   ;;  %v5974_v9 = vld [vmem:[#allocation6 + $0xf4] ss:$24 sps:$4 sm:$0xff]   ;;  %v5978_v11 = vld [vmem:[#allocation6 + $0xf0] ss:$24 sps:$4 sm:$0xff]  }
  0x44   :  { %440 = vmatprep.subr.bf16.mxu0 %v5968_v5  ;;  %513 = vmatprep.subr.bf16.mxu1 %v5970_v6  ;;  %v5976_v10 = vld [vmem:[#allocation6 + $0xfc] ss:$24 sps:$4 sm:$0xff]   ;;  %v5979_v12 = vld [vmem:[#allocation6 + $0xf8] ss:$24 sps:$4 sm:$0xff]   ;;  %v5982_v14 = vld [vmem:[#allocation6 + $0xcc] ss:$24 sps:$4 sm:$0xff]  }
  0x45   :  { %v5980_v13 = vld [vmem:[#allocation6 + $0xc4] ss:$24 sps:$4 sm:$0xff]   ;;  %v5984_v15 = vld [vmem:[#allocation6 + $0xc0] ss:$24 sps:$4 sm:$0xff]   ;;  %v5986_v17 = vld [vmem:[#allocation6 + $0x94] ss:$24 sps:$4 sm:$0xff]  }
  0x46   :  { %v5985_v16 = vld [vmem:[#allocation6 + $0xc8] ss:$24 sps:$4 sm:$0xff]   ;;  %v5988_v18 = vld [vmem:[#allocation6 + $0x9c] ss:$24 sps:$4 sm:$0xff]   ;;  %v5991_v20 = vld [vmem:[#allocation6 + $0x98] ss:$24 sps:$4 sm:$0xff]  }
  0x47   :  { %441 = vmatpush1.bf16.msra.mxu0 %v5972_v7  ;;  %514 = vmatpush1.bf16.msra.mxu1 %v5973_v8  ;;  %v5990_v19 = vld [vmem:[#allocation6 + $0x90] ss:$24 sps:$4 sm:$0xff]   ;;  %v5992_v21 = vld [vmem:[#allocation6 + $0x64] ss:$24 sps:$4 sm:$0xff]   ;;  %v5996_v23 = vld [vmem:[#allocation6 + $0x60] ss:$24 sps:$4 sm:$0xff]  }
  0x48   :  { %442 = vmatprep.subr.bf16.mxu0 %v5974_v9  ;;  %515 = vmatprep.subr.bf16.mxu1 %v5976_v10  ;;  %v5994_v22 = vld [vmem:[#allocation6 + $0x6c] ss:$24 sps:$4 sm:$0xff]   ;;  %v5997_v24 = vld [vmem:[#allocation6 + $0x68] ss:$24 sps:$4 sm:$0xff]   ;;  %v6000_v26 = vld [vmem:[#allocation6 + $0x3c] ss:$24 sps:$4 sm:$0xff]  }
  0x49   :  { %v5998_v25 = vld [vmem:[#allocation6 + $0x34] ss:$24 sps:$4 sm:$0xff]   ;;  %v6002_v27 = vld [vmem:[#allocation6 + $0x30] ss:$24 sps:$4 sm:$0xff]   ;;  %v6004_v29 = vld [vmem:[#allocation6 + $0x4] ss:$24 sps:$4 sm:$0xff]  }
  0x4a   :  { %v6003_v28 = vld [vmem:[#allocation6 + $0x38] ss:$24 sps:$4 sm:$0xff]   ;;  %v6006_v30 = vld [vmem:[#allocation6 + $0xc] ss:$24 sps:$4 sm:$0xff]   ;;  %v6009_v32 = vld [vmem:[#allocation6 + $0x8] ss:$24 sps:$4 sm:$0xff]  }
  0x4b   :  { %443 = vmatpush1.bf16.msra.mxu0 %v5978_v11  ;;  %516 = vmatpush1.bf16.msra.mxu1 %v5979_v12  ;;  %v6008_v31 = vld [vmem:[#allocation6] ss:$24 sps:$4 sm:$0xff]   ;;  %v6013_v33 = vld [vmem:[#allocation6 + $0x164] ss:$24 sps:$4 sm:$0xff]   ;;  %v6683_v37 = vld [vmem:[#allocation8 + $0xa8] ss:$12 sps:$4 sm:$0xff]  }
  0x4c   :  { %444 = vmatprep.subr.bf16.mxu0 %v5980_v13  ;;  %517 = vmatprep.subr.bf16.mxu1 %v5982_v14  ;;  %v6679_v34 = vld [vmem:[#allocation8 + $0xac] ss:$12 sps:$4 sm:$0xff]   ;;  %v6686_v39 = vld [vmem:[#allocation8 + $0x94] ss:$12 sps:$4 sm:$0xff]   ;;  %v6017_v40 = vld [vmem:[#allocation6 + $0x130] ss:$24 sps:$4 sm:$0xff]  }
  0x4d   :  { %v6011_v36 = vld [vmem:[#allocation6 + $0x160] ss:$24 sps:$4 sm:$0xff]   ;;  %v6019_v38 = vld [vmem:[#allocation6 + $0x134] ss:$24 sps:$4 sm:$0xff]   ;;  %v6691_v41 = vld [vmem:[#allocation8 + $0x90] ss:$12 sps:$4 sm:$0xff]  }
  0x4e   :  { %v6026_v42 = vld [vmem:[#allocation6 + $0x104] ss:$24 sps:$4 sm:$0xff]   ;;  %v6698_v44 = vld [vmem:[#allocation3 + $0x8] sm:$0xff]   ;;  %v6024_v45 = vld [vmem:[#allocation6 + $0x100] ss:$24 sps:$4 sm:$0xff]   ;;  %v7600_v9 = vmov 0.0  }
  0x4f   :  { %445 = vmatpush1.bf16.msra.mxu0 %v5984_v15  ;;  %518 = vmatpush1.bf16.msra.mxu1 %v5985_v16  ;;  %v6694_v43 = vld [vmem:[#allocation8 + $0x7c] ss:$12 sps:$4 sm:$0xff]   ;;  %v6700_v46 = vld [vmem:[#allocation8 + $0x78] ss:$12 sps:$4 sm:$0xff]   ;;  %v6032_v47 = vld [vmem:[#allocation6 + $0xd4] ss:$24 sps:$4 sm:$0xff]  }
  0x50   :  { %446 = vmatprep.subr.bf16.mxu0 %v5986_v17  ;;  %519 = vmatprep.subr.bf16.mxu1 %v5988_v18  ;;  %v6704_v48 = vld [vmem:[#allocation8 + $0x64] ss:$12 sps:$4 sm:$0xff]   ;;  %v6708_v50 = vld [vmem:[#allocation8 + $0x60] ss:$12 sps:$4 sm:$0xff]   ;;  %v6718_v55 = vld [vmem:[#allocation8 + $0x48] ss:$12 sps:$4 sm:$0xff]  }
  0x51   :  { %v6030_v49 = vld [vmem:[#allocation6 + $0xd0] ss:$24 sps:$4 sm:$0xff]   ;;  %v6039_v51 = vld [vmem:[#allocation6 + $0xa4] ss:$24 sps:$4 sm:$0xff]   ;;  %v6712_v52 = vld [vmem:[#allocation8 + $0x4c] ss:$12 sps:$4 sm:$0xff]  }
  0x52   :  { %v6716_v53 = vld [vmem:[#allocation3 + $0x10] sm:$0xff]   ;;  %v6037_v54 = vld [vmem:[#allocation6 + $0xa0] ss:$24 sps:$4 sm:$0xff]   ;;  %v6052_v60 = vld [vmem:[#allocation6 + $0x44] ss:$24 sps:$4 sm:$0xff]   ;;  %vm6628_vm0 = vmmov 0  }
  0x53   :  { %447 = vmatpush1.bf16.msra.mxu0 %v5990_v19  ;;  %520 = vmatpush1.bf16.msra.mxu1 %v5991_v20  ;;  %v6045_v56 = vld [vmem:[#allocation6 + $0x74] ss:$24 sps:$4 sm:$0xff]   ;;  %v6043_v58 = vld [vmem:[#allocation6 + $0x70] ss:$24 sps:$4 sm:$0xff]   ;;  %v6734_v62 = vld [vmem:[#allocation3 + $0x18] sm:$0xff]   ;;  %s6629_s2 = smov [#allocation12]  }
  0x54   :  { %448 = vmatprep.subr.bf16.mxu0 %v5992_v21  ;;  %521 = vmatprep.subr.bf16.mxu1 %v5994_v22  ;;  %v6722_v57 = vld [vmem:[#allocation8 + $0x34] ss:$12 sps:$4 sm:$0xff]   ;;  %v6727_v59 = vld [vmem:[#allocation8 + $0x30] ss:$12 sps:$4 sm:$0xff]   ;;  %v6736_v1 = vld [vmem:[#allocation8 + $0x18] ss:$12 sps:$4 sm:$0xff]  }
  0x55   :  { %v6730_v61 = vld [vmem:[#allocation8 + $0x1c] ss:$12 sps:$4 sm:$0xff]   ;;  %v6050_v63 = vld [vmem:[#allocation6 + $0x40] ss:$24 sps:$4 sm:$0xff]   ;;  %v6058_v2 = vld [vmem:[#allocation6 + $0x14] ss:$24 sps:$4 sm:$0xff]  }
  0x56   :  { %v6740_v3 = vld [vmem:[#allocation8 + $0x4] ss:$12 sps:$4 sm:$0xff]   ;;  %v6745_v5 = vld [vmem:[#allocation8] ss:$12 sps:$4 sm:$0xff]   ;;  %v6062_v7 = vld [vmem:[#allocation8 + $0x168] ss:$12 sps:$4 sm:$0xff]  }
  0x57   :  { %449 = vmatpush1.bf16.msra.mxu0 %v5996_v23  ;;  %522 = vmatpush1.bf16.msra.mxu1 %v5997_v24  ;;  %v6056_v4 = vld [vmem:[#allocation6 + $0x10] ss:$24 sps:$4 sm:$0xff]   ;;  %v6748_v6 = vld [vmem:[#allocation8 + $0x16c] ss:$12 sps:$4 sm:$0xff]   ;;  %v6068_v10 = vld [vmem:[#allocation8 + $0x154] ss:$12 sps:$4 sm:$0xff]  }
  0x58   :  { %450 = vmatprep.subr.bf16.mxu0 %v5998_v25  ;;  %523 = vmatprep.subr.bf16.mxu1 %v6000_v26  ;;  %v6065_v8 = vld [vmem:[#allocation8 + $0xb0] ss:$12 sps:$4 sm:$0xff]   ;;  %v6069_v12 = vld [vmem:[#allocation8 + $0x98] ss:$12 sps:$4 sm:$0xff]   ;;  %v6073_v15 = vld [vmem:[#allocation8 + $0x80] ss:$12 sps:$4 sm:$0xff]  }
  0x59   :  { %v6066_v11 = vld [vmem:[#allocation8 + $0x150] ss:$12 sps:$4 sm:$0xff]   ;;  %v6070_v14 = vld [vmem:[#allocation8 + $0x138] ss:$12 sps:$4 sm:$0xff]   ;;  %v6074_v17 = vld [vmem:[#allocation8 + $0x120] ss:$12 sps:$4 sm:$0xff]  }
  0x5a   :  { %v6072_v13 = vld [vmem:[#allocation8 + $0x13c] ss:$12 sps:$4 sm:$0xff]   ;;  %v6076_v16 = vld [vmem:[#allocation8 + $0x124] ss:$12 sps:$4 sm:$0xff]   ;;  %v6080_v19 = vld [vmem:[#allocation8 + $0x10c] ss:$12 sps:$4 sm:$0xff]  }
  0x5b   :  { %451 = vmatpush1.bf16.msra.mxu0 %v6002_v27  ;;  %524 = vmatpush1.bf16.msra.mxu1 %v6003_v28  ;;  %v6077_v18 = vld [vmem:[#allocation8 + $0x68] ss:$12 sps:$4 sm:$0xff]   ;;  %v6081_v21 = vld [vmem:[#allocation8 + $0x50] ss:$12 sps:$4 sm:$0xff]   ;;  %v6085_v24 = vld [vmem:[#allocation8 + $0x38] ss:$12 sps:$4 sm:$0xff]  }
  0x5c   :  { %452 = vmatprep.subr.bf16.mxu0 %v6004_v29  ;;  %525 = vmatprep.subr.bf16.mxu1 %v6006_v30  ;;  %v6078_v20 = vld [vmem:[#allocation8 + $0x108] ss:$12 sps:$4 sm:$0xff]   ;;  %v6082_v23 = vld [vmem:[#allocation8 + $0xf0] ss:$12 sps:$4 sm:$0xff]   ;;  %v6086_v26 = vld [vmem:[#allocation8 + $0xd8] ss:$12 sps:$4 sm:$0xff]  }
  0x5d   :  { %v6084_v22 = vld [vmem:[#allocation8 + $0xf4] ss:$12 sps:$4 sm:$0xff]   ;;  %v6088_v25 = vld [vmem:[#allocation8 + $0xdc] ss:$12 sps:$4 sm:$0xff]   ;;  %v6092_v28 = vld [vmem:[#allocation8 + $0xc4] ss:$12 sps:$4 sm:$0xff]  }
  0x5e   :  { %v6089_v27 = vld [vmem:[#allocation8 + $0x20] ss:$12 sps:$4 sm:$0xff]   ;;  %v6093_v30 = vld [vmem:[#allocation8 + $0x8] ss:$12 sps:$4 sm:$0xff]   ;;  %s4999_s4 = sshll.u32 %s6629_s2, 4  ;;  %s5000_s4 = int_to_ptr.vmem [resolvable:$true] %s4999_s4 }
  0x5f   :  { %453 = vmatpush1.bf16.msra.mxu0 %v6008_v31  ;;  %526 = vmatpush1.bf16.msra.mxu1 %v6009_v32  ;;  %v6090_v29 = vld [vmem:[#allocation8 + $0xc0] ss:$12 sps:$4 sm:$0xff]   ;;  %v6094_v31 = vld [vmem:[#allocation8 + $0x170] ss:$12 sps:$4 sm:$0xff]   ;;  %v6095_v32 = vld [vmem:[#allocation8 + $0x158] ss:$12 sps:$4 sm:$0xff]   ;;  %p6592_p12 = scmp.lt.s32.totalorder %s5000_s4, %s5000_s4 }
  0x60   :  { %584 = vmatprep.subr.bf16.mxu0 %v6013_v33  ;;  %867 = vmatprep.subr.bf16.mxu1 %v6679_v34  ;;  %v6096_v33 = vld [vmem:[#allocation8 + $0x140] ss:$12 sps:$4 sm:$0xff]   ;;  %s6587_s21 = scalar_lea.vmem %s5000_s4, 2048 }
  0x61   :  { %p6588_p11 = scmp.ne.s32.totalorder %s5000_s4, %s6587_s21  ;;  %p6593_p13 = scmp.lt.s32.totalorder %s6587_s21, %s6587_s21 }
  0x62   :  { %471 = vmatmul.mubr.bf16.vlgmr.msra.gmra.mxu0 %v6681_v35  ;;  %544 = vmatmul.mubr.bf16.vlgmr.msra.gmra.mxu1 %v6681_v35 }
  0x63   :  { %585 = vmatpush1.bf16.msra.mxu0 %v6011_v36  ;;  %868 = vmatpush1.bf16.msra.mxu1 %v6683_v37  ;;  %v6099_v36 = vld [vmem:[#allocation8 + $0xf8] ss:$12 sps:$4 sm:$0xff]   ;;  %p6594_p0 = por %p6593_p13, %p6592_p12 }
  0x64   :  { %586 = vmatprep.subr.bf16.mxu0 %v6019_v38  ;;  %869 = vmatprep.subr.bf16.mxu1 %v6686_v39  ;;  %v6101_v38 = vld [vmem:[#allocation8 + $0xc8] ss:$12 sps:$4 sm:$0xff]  }
  0x65   :  { %480 = vmatprep.mubr.bf16.mxu0 %v7598_v0  ;;  %553 = vmatprep.mubr.bf16.mxu1 %v7598_v0  ;;  %p6595_p1 = pnand %p6594_p0, %p6588_p11 }
  0x67   :  { %587 = vmatpush1.bf16.msra.mxu0 %v6017_v40  ;;  %870 = vmatpush1.bf16.msra.mxu1 %v6691_v41  ;;  %v6103_v40 = vld [vmem:[#allocation8 + $0x98] ss:$12 sps:$4 sm:$0xff]  }
  0x68   :  { %588 = vmatprep.subr.bf16.mxu0 %v6026_v42  ;;  %871 = vmatprep.subr.bf16.mxu1 %v6694_v43  ;;  %v6105_v42 = vld [vmem:[#allocation8 + $0x68] ss:$12 sps:$4 sm:$0xff]  }
  0x6a   :  { %481 = vmatmul.mubr.bf16.gmra.mxu0 %v6698_v44  ;;  %554 = vmatmul.mubr.bf16.gmra.mxu1 %v6698_v44 }
  0x6b   :  { %589 = vmatpush1.bf16.msra.mxu0 %v6024_v45  ;;  %872 = vmatpush1.bf16.msra.mxu1 %v6700_v46  ;;  %v6108_v45 = vld [vmem:[#allocation8 + $0x20] ss:$12 sps:$4 sm:$0xff]  }
  0x6c   :  { %590 = vmatprep.subr.bf16.mxu0 %v6032_v47  ;;  %873 = vmatprep.subr.bf16.mxu1 %v6704_v48  ;;  %v144_v47 = vlaneseq }
  0x6d   :  { %490 = vmatprep.mubr.bf16.mxu0 %v7598_v0  ;;  %563 = vmatprep.mubr.bf16.mxu1 %v7598_v0 }
  0x6f   :  { %591 = vmatpush1.bf16.msra.mxu0 %v6030_v49  ;;  %874 = vmatpush1.bf16.msra.mxu1 %v6708_v50 }
  0x70   :  { %592 = vmatprep.subr.bf16.mxu0 %v6039_v51  ;;  %875 = vmatprep.subr.bf16.mxu1 %v6712_v52 }
  0x72   :  { %491 = vmatmul.mubr.bf16.gmra.mxu0 %v6716_v53  ;;  %564 = vmatmul.mubr.bf16.gmra.mxu1 %v6716_v53 }
  0x73   :  { %593 = vmatpush1.bf16.msra.mxu0 %v6037_v54  ;;  %876 = vmatpush1.bf16.msra.mxu1 %v6718_v55 }
  0x74   :  { %594 = vmatprep.subr.bf16.mxu0 %v6045_v56  ;;  %877 = vmatprep.subr.bf16.mxu1 %v6722_v57 }
  0x75   :  { %500 = vmatprep.mubr.bf16.mxu0 %v7598_v0  ;;  %573 = vmatprep.mubr.bf16.mxu1 %v7598_v0 }
  0x77   :  { %595 = vmatpush1.bf16.msra.mxu0 %v6043_v58  ;;  %878 = vmatpush1.bf16.msra.mxu1 %v6727_v59 }
  0x78   :  { %596 = vmatprep.subr.bf16.mxu0 %v6052_v60  ;;  %879 = vmatprep.subr.bf16.mxu1 %v6730_v61 }
  0x7a   :  { %501 = vmatmul.mubr.bf16.gmra.mxu0 %v6734_v62  ;;  %574 = vmatmul.mubr.bf16.gmra.mxu1 %v6734_v62 }
  0x7b   :  { %597 = vmatpush1.bf16.msra.mxu0 %v6050_v63  ;;  %880 = vmatpush1.bf16.msra.mxu1 %v6736_v1 }
  0x7c   :  { %598 = vmatprep.subr.bf16.mxu0 %v6058_v2  ;;  %881 = vmatprep.subr.bf16.mxu1 %v6740_v3 }
  0x7d   :  { %616 = vmatprep.mubr.bf16.mxu0 %v7598_v0  ;;  %899 = vmatprep.mubr.bf16.mxu1 %v7598_v0 }
  0x7f   :  { %599 = vmatpush1.bf16.msra.mxu0 %v6056_v4  ;;  %882 = vmatpush1.bf16.msra.mxu1 %v6745_v5 }
  0x80   :  { %5625 = vmatprep.subr.bf16.mxu0 %v7600_v9  ;;  %1109 = vmatprep.subr.bf16.mxu1 %v6748_v6 }
  0x82   :  { %617 = vmatmul.mubr.bf16.vlgmr.msra.gmra.mxu0 %v6681_v35  ;;  %900 = vmatmul.mubr.bf16.vlgmr.msra.gmra.mxu1 %v7598_v0  ;;  %v6098_v35 = vld [vmem:[#allocation8 + $0x110] ss:$12 sps:$4 sm:$0xff]  }
  0x83   :  { %5626 = vmatpush3.bf16.msra.mxu0 %v6065_v8  ;;  %1110 = vmatpush1.bf16.msra.mxu1 %v6062_v7 }
  0x84   :  { %5627 = vmatprep.subr.bf16.mxu0 %v7600_v9  ;;  %1111 = vmatprep.subr.bf16.mxu1 %v6068_v10 }
  0x85   :  { %626 = vmatprep.mubr.bf16.mxu0 %v7598_v0  ;;  %1141 = vmatprep.mubr.bf16.mxu1 %v7598_v0 }
  0x87   :  { %5628 = vmatpush3.bf16.msra.mxu0 %v6069_v12  ;;  %1112 = vmatpush1.bf16.msra.mxu1 %v6066_v11 }
  0x88   :  { %5629 = vmatprep.subr.bf16.mxu0 %v7600_v9  ;;  %1113 = vmatprep.subr.bf16.mxu1 %v6072_v13 }
  0x8a   :  { %627 = vmatmul.mubr.bf16.gmra.mxu0 %v6698_v44  ;;  %v6107_v44 = vld [vmem:[#allocation8 + $0x38] ss:$12 sps:$4 sm:$0xff]  }
  0x8b   :  { %5630 = vmatpush3.bf16.msra.mxu0 %v6073_v15  ;;  %1114 = vmatpush1.bf16.msra.mxu1 %v6070_v14 }
  0x8c   :  { %5631 = vmatprep.subr.bf16.mxu0 %v7600_v9  ;;  %1115 = vmatprep.subr.bf16.mxu1 %v6076_v16 }
  0x8d   :  { %636 = vmatprep.mubr.bf16.mxu0 %v7598_v0 }
  0x8f   :  { %5632 = vmatpush3.bf16.msra.mxu0 %v6077_v18  ;;  %1116 = vmatpush1.bf16.msra.mxu1 %v6074_v17 }
  0x90   :  { %5633 = vmatprep.subr.bf16.mxu0 %v7600_v9  ;;  %1117 = vmatprep.subr.bf16.mxu1 %v6080_v19 }
  0x92   :  { %637 = vmatmul.mubr.bf16.gmra.mxu0 %v6716_v53 }
  0x93   :  { %5634 = vmatpush3.bf16.msra.mxu0 %v6081_v21  ;;  %1118 = vmatpush1.bf16.msra.mxu1 %v6078_v20 }
  0x94   :  { %5635 = vmatprep.subr.bf16.mxu0 %v7600_v9  ;;  %1119 = vmatprep.subr.bf16.mxu1 %v6084_v22 }
  0x95   :  { %646 = vmatprep.mubr.bf16.mxu0 %v7598_v0 }
  0x97   :  { %5636 = vmatpush3.bf16.msra.mxu0 %v6085_v24  ;;  %1120 = vmatpush1.bf16.msra.mxu1 %v6082_v23 }
  0x98   :  { %5637 = vmatprep.subr.bf16.mxu0 %v7600_v9  ;;  %1121 = vmatprep.subr.bf16.mxu1 %v6088_v25 }
  0x9a   :  { %647 = vmatmul.mubr.bf16.gmra.mxu0 %v6734_v62 }
  0x9b   :  { %5638 = vmatpush3.bf16.msra.mxu0 %v6089_v27  ;;  %1122 = vmatpush1.bf16.msra.mxu1 %v6086_v26 }
  0x9c   :  { %5639 = vmatprep.subr.bf16.mxu0 %v7600_v9  ;;  %1123 = vmatprep.subr.bf16.mxu1 %v6092_v28 }
  0x9d   :  { %5641 = vmatprep.mubr.msk.bf16.mxu0 %vm6628_vm0, %v7600_v9 }
  0x9f   :  { %5640 = vmatpush3.bf16.msra.mxu0 %v6093_v30  ;;  %1124 = vmatpush1.bf16.msra.mxu1 %v6090_v29 }
  0xa0   :  { %5645 = vmatprep.subr.bf16.mxu0 %v7600_v9  ;;  %1403 = vmatprep.subr.bf16.mxu1 %v6679_v34  ;;  %v6097_v34 = vld [vmem:[#allocation8 + $0x128] ss:$12 sps:$4 sm:$0xff]  }
  0xa2   :  { %5642 = vmatmul.mubr.bf16.vlgmr.msra.gmra.mxu0 %v7598_v0  ;;  %1142 = vmatmul.mubr.bf16.vlgmr.msra.gmra.mxu1 %v7598_v0 }
  0xa3   :  { %5646 = vmatpush3.bf16.msra.mxu0 %v6094_v31  ;;  %5661 = vmatprep.mubr.msk.bf16.mxu0 %vm6628_vm0, %v7600_v9 }
  0xa4   :  { %5647 = vmatprep.subr.bf16.mxu0 %v7600_v9  ;;  %1404 = vmatpush1.bf16.msra.mxu1 %v6683_v37  ;;  %v6100_v37 = vld [vmem:[#allocation8 + $0xe0] ss:$12 sps:$4 sm:$0xff]  }
  0xa5   :  { %1405 = vmatprep.subr.bf16.mxu1 %v6686_v39  ;;  %1435 = vmatprep.mubr.bf16.mxu1 %v7598_v0  ;;  %v6102_v39 = vld [vmem:[#allocation8 + $0xb0] ss:$12 sps:$4 sm:$0xff]  }
  0xa7   :  { %5648 = vmatpush3.bf16.msra.mxu0 %v6095_v32 }
  0xa8   :  { %5649 = vmatprep.subr.bf16.mxu0 %v7600_v9  ;;  %1406 = vmatpush1.bf16.msra.mxu1 %v6691_v41  ;;  %v6104_v41 = vld [vmem:[#allocation8 + $0x80] ss:$12 sps:$4 sm:$0xff]  }
  0xa9   :  { %1407 = vmatprep.subr.bf16.mxu1 %v6694_v43  ;;  %v6106_v43 = vld [vmem:[#allocation8 + $0x50] ss:$12 sps:$4 sm:$0xff]  }
  0xab   :  { %5650 = vmatpush3.bf16.msra.mxu0 %v6096_v33 }
  0xac   :  { %5651 = vmatprep.subr.bf16.mxu0 %v7600_v9  ;;  %1408 = vmatpush1.bf16.msra.mxu1 %v6700_v46  ;;  %v6109_v46 = vld [vmem:[#allocation8 + $0x8] ss:$12 sps:$4 sm:$0xff]  }
  0xad   :  { %1409 = vmatprep.subr.bf16.mxu1 %v6704_v48  ;;  %v6815_v48 = vshrl.u32 %v144_v47, 7 }
  0xaf   :  { %5652 = vmatpush3.bf16.msra.mxu0 %v6097_v34  ;;  %v158_v49 = vsub.s32 3, %v6815_v48  ;;  %v146_v51 = vsub.s32 0, %v6815_v48  ;;  %v150_v56 = vsub.s32 1, %v6815_v48 }
  0xb0   :  { %5653 = vmatprep.subr.bf16.mxu0 %v7600_v9  ;;  %1410 = vmatpush1.bf16.msra.mxu1 %v6708_v50  ;;  %v6818_v50 = vld [vmem:[#allocation9] sm:$0x3f] }
  0xb1   :  { %1411 = vmatprep.subr.bf16.mxu1 %v6712_v52  ;;  %v154_v52 = vsub.s32 2, %v6815_v48  ;;  %v6823_v53 = vrot.slane %v6818_v50, %v158_v49 }
  0xb3   :  { %5654 = vmatpush3.bf16.msra.mxu0 %v6098_v35  ;;  %v6834_v60 = vrot.slane %v6818_v50, %v154_v52  ;;  %v166_v52 = vsub.s32 5, %v6815_v48 }
  0xb4   :  { %5655 = vmatprep.subr.bf16.mxu0 %v7600_v9  ;;  %1412 = vmatpush1.bf16.msra.mxu1 %v6718_v55 }
  0xb5   :  { %1413 = vmatprep.subr.bf16.mxu1 %v6722_v57 }
  0xb7   :  { %5656 = vmatpush3.bf16.msra.mxu0 %v6099_v36 }
  0xb8   :  { %5657 = vmatprep.subr.bf16.mxu0 %v7600_v9  ;;  %1414 = vmatpush1.bf16.msra.mxu1 %v6727_v59  ;;  %v147_v59 = vrot.slane %v6818_v50, %v146_v51 }
  0xb9   :  { %1415 = vmatprep.subr.bf16.mxu1 %v6730_v61 }
  0xbb   :  { %5658 = vmatpush3.bf16.msra.mxu0 %v6100_v37 }
  0xbc   :  { %5659 = vmatprep.subr.bf16.mxu0 %v7600_v9  ;;  %1416 = vmatpush1.bf16.msra.mxu1 %v6736_v1  ;;  %v6840_v1 = vrot.slane %v6818_v50, %v150_v56 }
  0xbd   :  { %1417 = vmatprep.subr.bf16.mxu1 %v6740_v3 }
  0xbf   :  { %5660 = vmatpush3.bf16.msra.mxu0 %v6101_v38 }
  0xc0   :  { %5665 = vmatprep.subr.bf16.mxu0 %v7600_v9  ;;  %1418 = vmatpush1.bf16.msra.mxu1 %v6745_v5 }
  0xc1   :  { %1645 = vmatprep.subr.bf16.mxu1 %v6748_v6 }
  0xc2   :  { %5662 = vmatmul.mubr.bf16.vlgmr.msra.gmra.mxu0 %v7598_v0 }
  0xc3   :  { %5681 = vmatprep.mubr.msk.bf16.mxu0 %vm6628_vm0, %v7600_v9  ;;  %5666 = vmatpush3.bf16.msra.mxu0 %v6102_v39 }
  0xc4   :  { %5667 = vmatprep.subr.bf16.mxu0 %v7600_v9 }
  0xc7   :  { %5668 = vmatpush3.bf16.msra.mxu0 %v6103_v40 }
  0xc8   :  { %5669 = vmatprep.subr.bf16.mxu0 %v7600_v9 }
  0xcb   :  { %5670 = vmatpush3.bf16.msra.mxu0 %v6104_v41 }
  0xcc   :  { %5671 = vmatprep.subr.bf16.mxu0 %v7600_v9 }
  0xcf   :  { %5672 = vmatpush3.bf16.msra.mxu0 %v6105_v42 }
  0xd0   :  { %5673 = vmatprep.subr.bf16.mxu0 %v7600_v9 }
  0xd3   :  { %5674 = vmatpush3.bf16.msra.mxu0 %v6106_v43 }
  0xd4   :  { %5675 = vmatprep.subr.bf16.mxu0 %v7600_v9 }
  0xd7   :  { %5676 = vmatpush3.bf16.msra.mxu0 %v6107_v44 }
  0xd8   :  { %5677 = vmatprep.subr.bf16.mxu0 %v7600_v9 }
  0xdb   :  { %5678 = vmatpush3.bf16.msra.mxu0 %v6108_v45  ;;  %v162_v45 = vsub.s32 4, %v6815_v48 }
  0xdc   :  { %5679 = vmatprep.subr.bf16.mxu0 %v7600_v9 }
  0xdf   :  { %5680 = vmatpush3.bf16.msra.mxu0 %v6109_v46 }
  0xe0   :  { %5685 = vmatprep.subr.bf16.mxu0 %v7600_v9 }
 0x122   :  { %v6825_v54 = vpop.f32.mrf.mxu0  ;;  %v6827_v55 = vpop.f32.mrf.mxu1 }
 0x124   :  { %v6830_v57 = vpop.f32.mrf.mxu0  ;;  %v547_v58 = vpop.f32.mrf.mxu1 }
 0x125   :  { %v6837_v61 = vadd.f32 %v547_v58, %v6823_v53 }
 0x126   :  { %v476_v62 = vpop.f32.mrf.mxu0  ;;  %v549_v63 = vpop.f32.mrf.mxu1 }
 0x127   :  { %7602 = vst [vmem:[#allocation17_spill] sm:$0xff] %v6837_v61  ;;  %v6842_v2 = vadd.f32 %v476_v62, %v147_v59  ;;  %v6845_v3 = vadd.f32 %v549_v63, %v6834_v60 }
 0x128   :  { %v478_v4 = vpop.f32.mrf.mxu0  ;;  %v551_v5 = vpop.f32.mrf.mxu1 }
 0x129   :  { %v6848_v6 = vadd.f32 %v478_v4, %v6840_v1  ;;  %v6851_v7 = vadd.f32 %v551_v5, %v6823_v53  ;;  %v6916_v4 = vrot.slane %v6818_v50, %v162_v45 }
 0x12a   :  { %v482_v8 = vpop.f32.mrf.mxu0  ;;  %v555_v10 = vpop.f32.mrf.mxu1 }
 0x12b   :  { %7603 = vst [vmem:[#allocation18_spill] sm:$0xff] %v6851_v7  ;;  %v6853_v11 = vadd.f32 %v482_v8, %v147_v59  ;;  %v6856_v12 = vadd.f32 %v555_v10, %v6834_v60  ;;  %v473_v10 = vadd.f32 %v6825_v54, %v147_v59 }
 0x12c   :  { %v484_v13 = vpop.f32.mrf.mxu0  ;;  %v557_v14 = vpop.f32.mrf.mxu1 }
 0x12d   :  { %v6859_v15 = vadd.f32 %v484_v13, %v6840_v1  ;;  %v6862_v16 = vadd.f32 %v557_v14, %v6823_v53  ;;  %v6923_v14 = vrot.slane %v6818_v50, %v166_v52 }
 0x12e   :  { %v486_v17 = vpop.f32.mrf.mxu0  ;;  %v559_v18 = vpop.f32.mrf.mxu1 }
 0x12f   :  { %7604 = vst [vmem:[#allocation19_spill] sm:$0xff] %v6862_v16  ;;  %v6864_v19 = vadd.f32 %v486_v17, %v147_v59  ;;  %v6867_v20 = vadd.f32 %v559_v18, %v6834_v60 }
 0x130   :  { %v488_v21 = vpop.f32.mrf.mxu0  ;;  %v561_v22 = vpop.f32.mrf.mxu1 }
 0x131   :  { %7605 = vst [vmem:[#allocation20_spill] sm:$0xff] %v6867_v20  ;;  %v6870_v23 = vadd.f32 %v488_v21, %v6840_v1  ;;  %v6873_v24 = vadd.f32 %v561_v22, %v6823_v53 }
 0x132   :  { %v492_v25 = vpop.f32.mrf.mxu0  ;;  %v565_v26 = vpop.f32.mrf.mxu1 }
 0x133   :  { %7606 = vst [vmem:[#allocation21_spill] sm:$0xff] %v6873_v24  ;;  %v6875_v27 = vadd.f32 %v492_v25, %v147_v59  ;;  %v6878_v28 = vadd.f32 %v565_v26, %v6834_v60 }
 0x134   :  { %v494_v29 = vpop.f32.mrf.mxu0  ;;  %v567_v30 = vpop.f32.mrf.mxu1 }
 0x135   :  { %7607 = vst [vmem:[#allocation22_spill] sm:$0xff] %v6875_v27  ;;  %7608 = vst [vmem:[#allocation23_spill] sm:$0xff] %v6878_v28  ;;  %v6881_v31 = vadd.f32 %v494_v29, %v6840_v1  ;;  %v6884_v32 = vadd.f32 %v567_v30, %v6823_v53 }
 0x136   :  { %v496_v33 = vpop.f32.mrf.mxu0  ;;  %v569_v34 = vpop.f32.mrf.mxu1 }
 0x137   :  { %7609 = vst [vmem:[#allocation24_spill] sm:$0xff] %v6881_v31  ;;  %7610 = vst [vmem:[#allocation25_spill] sm:$0xff] %v6884_v32  ;;  %v6886_v35 = vadd.f32 %v496_v33, %v147_v59  ;;  %v6889_v36 = vadd.f32 %v569_v34, %v6834_v60 }
 0x138   :  { %v498_v37 = vpop.f32.mrf.mxu0  ;;  %v571_v38 = vpop.f32.mrf.mxu1 }
 0x139   :  { %7611 = vst [vmem:[#allocation26_spill] sm:$0xff] %v6886_v35  ;;  %7612 = vst [vmem:[#allocation27_spill] sm:$0xff] %v6889_v36  ;;  %v6892_v39 = vadd.f32 %v498_v37, %v6840_v1  ;;  %v6895_v40 = vadd.f32 %v571_v38, %v6823_v53 }
 0x13a   :  { %v502_v41 = vpop.f32.mrf.mxu0  ;;  %v575_v42 = vpop.f32.mrf.mxu1 }
 0x13b   :  { %7613 = vst [vmem:[#allocation28_spill] sm:$0xff] %v6892_v39  ;;  %v6897_v43 = vadd.f32 %v502_v41, %v147_v59  ;;  %v6900_v44 = vadd.f32 %v575_v42, %v6834_v60 }
 0x13c   :  { %v504_v46 = vpop.f32.mrf.mxu0  ;;  %v577_v47 = vpop.f32.mrf.mxu1 }
 0x13d   :  { %7614 = vst [vmem:[#allocation29_spill] sm:$0xff] %v6897_v43  ;;  %7615 = vst [vmem:[#allocation30_spill] sm:$0xff] %v6900_v44  ;;  %v6904_v49 = vadd.f32 %v504_v46, %v6840_v1  ;;  %v6907_v51 = vadd.f32 %v577_v47, %v6823_v53 }
 0x13e   :  { %v506_v56 = vpop.f32.mrf.mxu0  ;;  %v579_v58 = vpop.f32.mrf.mxu1 }
 0x13f   :  { %7616 = vst [vmem:[#allocation31_spill] sm:$0xff] %v6904_v49  ;;  %v6910_v62 = vadd.f32 %v506_v56, %v147_v59  ;;  %v6913_v63 = vadd.f32 %v579_v58, %v6834_v60  ;;  %v475_v59 = vadd.f32 %v6830_v57, %v6840_v1 }
 0x140   :  { %v508_v5 = vpop.f32.mrf.mxu0  ;;  %v581_v8 = vpop.f32.mrf.mxu1 }
 0x141   :  { %7617 = vst [vmem:[#allocation32_spill] sm:$0xff] %v6910_v62  ;;  %7618 = vst [vmem:[#allocation33_spill] sm:$0xff] %v6913_v63  ;;  %v6920_v13 = vadd.f32 %v508_v5, %v6840_v1 }
 0x142   :  { %v618_v48 = vpop.f32.mrf.mxu0  ;;  %v901_v17 = vpop.f32.mrf.mxu1 }
 0x143   :  { %7619 = vst [vmem:[#allocation34_spill] sm:$0xff] %v6920_v13  ;;  %v6926_v18 = vadd.f32 %v618_v48, %v6916_v4  ;;  %v1196_v21 = vadd.f32 %v901_v17, %v473_v10 }
 0x144   :  { %v620_v22 = vpop.f32.mrf.mxu0  ;;  %v903_v25 = vpop.f32.mrf.mxu1 }
 0x145   :  { %7620 = vst [vmem:[#allocation35_spill] sm:$0xff] %v6926_v18  ;;  %v5113_v26 = vmul.f32 -1.442695, %v1196_v21  ;;  %v6929_v29 = vadd.f32 %v620_v22, %v6923_v14  ;;  %v1203_v37 = vadd.f32 %v903_v25, %v475_v59 }
 0x146   :  { %v622_v30 = vpop.f32.mrf.mxu0  ;;  %v905_v54 = vpop.f32.mrf.mxu1 }
 0x147   :  { %7621 = vst [vmem:[#allocation36_spill] sm:$0xff] %v6929_v29  ;;  %6310 = vpow2.f32 %v5113_v26  ;;  %v6934_v50 = vadd.f32 %v622_v30, %v6916_v4  ;;  %v5114_v46 = vmul.f32 -1.442695, %v1203_v37 }
 0x148   :  { %v624_v33 = vpop.f32.mrf.mxu0  ;;  %v906_v34 = vpop.f32.mrf.mxu1 }
 0x149   :  { %7622 = vst [vmem:[#allocation37_spill] sm:$0xff] %v6934_v50  ;;  %v6937_v38 = vadd.f32 %v624_v33, %v6923_v14  ;;  %6312 = vpow2.f32 %v5114_v46  ;;  %v6971_v46 = vld [vmem:[#allocation11] sm:$0xff] }
 0x14a   :  { %v628_v41 = vpop.f32.mrf.mxu0 }
 0x14b   :  { %7623 = vst [vmem:[#allocation38_spill] sm:$0xff] %v6937_v38  ;;  %v6940_v42 = vadd.f32 %v628_v41, %v6916_v4 }
 0x14c   :  { %v630_v45 = vpop.f32.mrf.mxu0 }
 0x14d   :  { %7624 = vst [vmem:[#allocation39_spill] sm:$0xff] %v6940_v42  ;;  %v6943_v47 = vadd.f32 %v630_v45, %v6923_v14 }
 0x14e   :  { %v632_v57 = vpop.f32.mrf.mxu0 }
 0x14f   :  { %7625 = vst [vmem:[#allocation40_spill] sm:$0xff] %v6943_v47  ;;  %v6946_v1 = vadd.f32 %v632_v57, %v6916_v4  ;;  %v582_v57 = vadd.f32 %v581_v8, %v6823_v53 }
 0x150   :  { %v634_v52 = vpop.f32.mrf.mxu0 }
 0x151   :  { %7626 = vst [vmem:[#allocation41_spill] sm:$0xff] %v6946_v1  ;;  %v6949_v56 = vadd.f32 %v634_v52, %v6923_v14 }
 0x152   :  { %v638_v58 = vpop.f32.mrf.mxu0 }
 0x153   :  { %7627 = vst [vmem:[#allocation42_spill] sm:$0xff] %v6949_v56  ;;  %v6952_v5 = vadd.f32 %v638_v58, %v6916_v4 }
 0x154   :  { %v6311_v10 = vpop.eup %6310  ;;  %v640_v48 = vpop.f32.mrf.mxu0 }
 0x155   :  { %7628 = vst [vmem:[#allocation43_spill] sm:$0xff] %v6952_v5  ;;  %v1200_v17 = vadd.f32 1.0, %v6311_v10  ;;  %v6955_v21 = vadd.f32 %v640_v48, %v6923_v14 }
 0x156   :  { %v642_v22 = vpop.f32.mrf.mxu0  ;;  %v6313_v37 = vpop.eup %6312 }
 0x157   :  { %7629 = vst [vmem:[#allocation44_spill] sm:$0xff] %v6955_v21  ;;  %6314 = vrcp.f32 %v1200_v17  ;;  %v6958_v25 = vadd.f32 %v642_v22, %v6916_v4  ;;  %v1207_v52 = vadd.f32 1.0, %v6313_v37 }
 0x158   :  { %v644_v26 = vpop.f32.mrf.mxu0 }
 0x159   :  { %v6961_v30 = vadd.f32 %v644_v26, %v6923_v14  ;;  %6316 = vrcp.f32 %v1207_v52 }
 0x15a   :  { %v648_v54 = vpop.f32.mrf.mxu0 }
 0x15b   :  { %v6964_v59 = vadd.f32 %v648_v54, %v6916_v4 }
 0x15c   :  { %v650_v33 = vpop.f32.mrf.mxu0 }
 0x15d   :  { %v6967_v34 = vadd.f32 %v650_v33, %v6923_v14  ;;  %v546_v33 = vadd.f32 %v6827_v55, %v6834_v60 }
 0x15e   :  { %v652_v41 = vpop.f32.mrf.mxu0 }
 0x15f   :  { %v653_v63 = vadd.f32 %v652_v41, %v6916_v4  ;;  %v6111_v4 = vld [vmem:[#allocation8 + $0x158] ss:$12 sps:$4 sm:$0xff]   ;;  %v6471_v41 = vld [vmem:[#allocation8 + $0x154] ss:$12 sps:$4 sm:$0xff]  }
 0x160   :  { %v6969_v45 = vpop.f32.mrf.mxu0 }
 0x162   :  { %v942_v58 = vpop.f32.mrf.mxu0  ;;  %v1143_v10 = vpop.f32.mrf.mxu1 }
 0x163   :  { %v1210_v48 = vadd.f32 %v942_v58, %v6971_v46  ;;  %v1218_v17 = vadd.f32 %v1143_v10, %v582_v57 }
 0x164   :  { %v6315_v22 = vpop.eup %6314  ;;  %v5643_v26 = vpop.f32.mrf.mxu0 }
 0x165   :  { %v1145_v54 = vpop.f32.mrf.mxu1  ;;  %v1211_v0 = vmul.f32 %v6315_v22, %v1210_v48  ;;  %v5115_v9 = vmul.f32 -1.442695, %v1218_v17  ;;  %v7631_v48 = vmov 0  }
 0x166   :  { %v945_v29 = vpop.f32.mrf.mxu0  ;;  %v1225_v58 = vadd.f32 %v1145_v54, %v653_v63  ;;  %v6317_v10 = vpop.eup %6316  ;;  %v6470_v63 = vld [vmem:[#allocation8 + $0x168] ss:$12 sps:$4 sm:$0xff]   ;;  %v6472_v54 = vld [vmem:[#allocation8 + $0x150] ss:$12 sps:$4 sm:$0xff]  }
 0x167   :  { %v1147_v18 = vpop.f32.mrf.mxu1  ;;  %v1212_v53 = vadd.f32 %v1211_v0, %v546_v33  ;;  %6318 = vpow2.f32 %v5115_v9  ;;  %v1214_v13 = vsub.f32 1.0, %v6317_v10  ;;  %v1216_v52 = vmul.f32 0.0, %v6317_v10  ;;  %v6112_v33 = vld [vmem:[#allocation8 + $0x140] ss:$12 sps:$4 sm:$0xff]  }
 0x168   :  { %v5644_v8 = vpop.f32.mrf.mxu0  ;;  %v5116_v57 = vmul.f32 -1.442695, %v1225_v58  ;;  %v6110_v18 = vld [vmem:[#allocation8 + $0x170] ss:$12 sps:$4 sm:$0xff]  }
 0x169   :  { %v1148_v37 = vpop.f32.mrf.mxu1  ;;  %6320 = vtanh.f32 %v1212_v53  ;;  %v6473_v8 = vld [vmem:[#allocation8 + $0x13c] ss:$12 sps:$4 sm:$0xff]  }
 0x16a   :  { %6322 = vpow2.f32 %v5116_v57  ;;  %v655_v57 = vadd.f32 %v6969_v45, %v6923_v14  ;;  %v6478_v14 = vld [vmem:[#allocation8 + $0x108] ss:$12 sps:$4 sm:$0xff]   ;;  %v6115_v45 = vld [vmem:[#allocation8 + $0xf8] ss:$12 sps:$4 sm:$0xff]  }
 0x174   :  { %v6319_v26 = vpop.eup %6318 }
 0x175   :  { %v1222_v61 = vadd.f32 1.0, %v6319_v26 }
 0x176   :  { %v6321_v55 = vpop.eup %6320 }
 0x177   :  { %6324 = vrcp.f32 %v1222_v61  ;;  %v1215_v60 = vmul.f32 %v6321_v55, %v1214_v13  ;;  %v6323_v9 = vpop.eup %6322  ;;  %v7630_v61 = vmov 0.0   ;;  %v6984_v13 = vld [vmem:[#allocation11 + $0x8] sm:$0xff]  ;;  %v6474_v55 = vld [vmem:[#allocation8 + $0x138] ss:$12 sps:$4 sm:$0xff]  }
 0x178   :  { %v1229_v17 = vadd.f32 1.0, %v6323_v9  ;;  %v6476_v9 = vld [vmem:[#allocation8 + $0x120] ss:$12 sps:$4 sm:$0xff]  }
 0x179   :  { %v6978_v29 = vadd.f32 %v1216_v52, %v1215_v60  ;;  %v6113_v60 = vld [vmem:[#allocation8 + $0x128] ss:$12 sps:$4 sm:$0xff]  }
 0x17a   :  { %6326 = vrcp.f32 %v1229_v17 }
 0x17b   :  { %1240 = vst [vmem:[#allocation12] sm:$0xff] %v6978_v29  ;;  %v1242_v0 = vpack.c.bf16 %v6978_v29, %v6978_v29 }
 0x17d   :  { %1436 = vmatmul.mubr.bf16.vlgmr.msra.gmra.mxu1 %v1242_v0  ;;  %5682 = vmatmul.mubr.bf16.vlgmr.msra.gmra.mxu0 %v1242_v0 }
 0x17e   :  { %1646 = vmatpush1.bf16.msra.mxu1 %v6470_v63  ;;  %5686 = vmatpush3.bf16.msra.mxu0 %v6110_v18  ;;  %v6475_v18 = vld [vmem:[#allocation8 + $0x124] ss:$12 sps:$4 sm:$0xff]  }
 0x17f   :  { %1647 = vmatprep.subr.bf16.mxu1 %v6471_v41  ;;  %5687 = vmatprep.subr.bf16.mxu0 %v7630_v61  ;;  %v6114_v63 = vld [vmem:[#allocation8 + $0x110] ss:$12 sps:$4 sm:$0xff]   ;;  %v6479_v41 = vld [vmem:[#allocation8 + $0xf4] ss:$12 sps:$4 sm:$0xff]  }
 0x180   :  { %1677 = vmatprep.mubr.bf16.mxu1 %v7631_v48  ;;  %5701 = vmatprep.mubr.msk.bf16.mxu0 %vm6628_vm0, %v7630_v61 }
 0x182   :  { %v1184_v22 = vpop.f32.mrf.mxu0  ;;  %1648 = vmatpush1.bf16.msra.mxu1 %v6472_v54  ;;  %5688 = vmatpush3.bf16.msra.mxu0 %v6111_v4  ;;  %v6477_v4 = vld [vmem:[#allocation8 + $0x10c] ss:$12 sps:$4 sm:$0xff]  }
 0x183   :  { %v1232_v53 = vadd.f32 %v1184_v22, %v6984_v13  ;;  %1649 = vmatprep.subr.bf16.mxu1 %v6473_v8  ;;  %5689 = vmatprep.subr.bf16.mxu0 %v7630_v61  ;;  %v6480_v22 = vld [vmem:[#allocation8 + $0xf0] ss:$12 sps:$4 sm:$0xff]   ;;  %v6116_v54 = vld [vmem:[#allocation8 + $0xe0] ss:$12 sps:$4 sm:$0xff]  }
 0x184   :  { %v6325_v37 = vpop.eup %6324  ;;  %v5663_v58 = vpop.f32.mrf.mxu0 }
 0x185   :  { %v1233_v10 = vmul.f32 %v6325_v37, %v1232_v53  ;;  %v6482_v37 = vld [vmem:[#allocation8 + $0xd8] ss:$12 sps:$4 sm:$0xff]   ;;  %v6117_v58 = vld [vmem:[#allocation8 + $0xc8] ss:$12 sps:$4 sm:$0xff]  }
 0x186   :  { %v1187_v26 = vpop.f32.mrf.mxu0  ;;  %1650 = vmatpush1.bf16.msra.mxu1 %v6474_v55  ;;  %5690 = vmatpush3.bf16.msra.mxu0 %v6112_v33  ;;  %v6481_v33 = vld [vmem:[#allocation8 + $0xdc] ss:$12 sps:$4 sm:$0xff]  }
 0x187   :  { %v1234_v52 = vadd.f32 %v1233_v10, %v655_v57  ;;  %1651 = vmatprep.subr.bf16.mxu1 %v6475_v18  ;;  %5691 = vmatprep.subr.bf16.mxu0 %v7630_v61  ;;  %v6327_v17 = vpop.eup %6326  ;;  %v6483_v57 = vld [vmem:[#allocation8 + $0xc4] ss:$12 sps:$4 sm:$0xff]   ;;  %v7007_v18 = vld [vmem:[#allocation8 + $0xac] ss:$12 sps:$4 sm:$0xff]  }
 0x188   :  { %v5664_v0 = vpop.f32.mrf.mxu0  ;;  %v1236_v53 = vsub.f32 1.0, %v6327_v17  ;;  %v1238_v26 = vmul.f32 0.0, %v6327_v17  ;;  %v6129_v17 = vld [vmem:[#allocation8 + $0x80] ss:$12 sps:$4 sm:$0xff]  }
 0x189   :  { %6328 = vtanh.f32 %v1234_v52  ;;  %v7009_v0 = vld [vmem:[#allocation8 + $0xa8] ss:$12 sps:$4 sm:$0xff]  }
 0x18a   :  { %1652 = vmatpush1.bf16.msra.mxu1 %v6476_v9  ;;  %5692 = vmatpush3.bf16.msra.mxu0 %v6113_v60  ;;  %v6484_v60 = vld [vmem:[#allocation8 + $0xc0] ss:$12 sps:$4 sm:$0xff]   ;;  %v6121_v9 = vld [vmem:[#allocation8 + $0xb0] ss:$12 sps:$4 sm:$0xff]  }
 0x18b   :  { %1653 = vmatprep.subr.bf16.mxu1 %v6477_v4  ;;  %5693 = vmatprep.subr.bf16.mxu0 %v7630_v61  ;;  %v7016_v4 = vld [vmem:[#allocation8 + $0x90] ss:$12 sps:$4 sm:$0xff]  }
 0x18e   :  { %1654 = vmatpush1.bf16.msra.mxu1 %v6478_v14  ;;  %5694 = vmatpush3.bf16.msra.mxu0 %v6114_v63  ;;  %v7013_v63 = vld [vmem:[#allocation8 + $0x94] ss:$12 sps:$4 sm:$0xff]   ;;  %v6125_v14 = vld [vmem:[#allocation8 + $0x98] ss:$12 sps:$4 sm:$0xff]  }
 0x18f   :  { %1655 = vmatprep.subr.bf16.mxu1 %v6479_v41  ;;  %5695 = vmatprep.subr.bf16.mxu0 %v7630_v61  ;;  %v7023_v41 = vld [vmem:[#allocation8 + $0x78] ss:$12 sps:$4 sm:$0xff]  }
 0x192   :  { %1656 = vmatpush1.bf16.msra.mxu1 %v6480_v22  ;;  %5696 = vmatpush3.bf16.msra.mxu0 %v6115_v45  ;;  %v7020_v45 = vld [vmem:[#allocation8 + $0x7c] ss:$12 sps:$4 sm:$0xff]   ;;  %v7027_v22 = vld [vmem:[#allocation8 + $0x64] ss:$12 sps:$4 sm:$0xff]  }
 0x193   :  { %1657 = vmatprep.subr.bf16.mxu1 %v6481_v33  ;;  %5697 = vmatprep.subr.bf16.mxu0 %v7630_v61  ;;  %v6133_v33 = vld [vmem:[#allocation8 + $0x68] ss:$12 sps:$4 sm:$0xff]  }
 0x196   :  { %v6329_v8 = vpop.eup %6328  ;;  %1658 = vmatpush1.bf16.msra.mxu1 %v6482_v37  ;;  %5698 = vmatpush3.bf16.msra.mxu0 %v6116_v54  ;;  %v7030_v54 = vld [vmem:[#allocation8 + $0x60] ss:$12 sps:$4 sm:$0xff]   ;;  %v6137_v37 = vld [vmem:[#allocation8 + $0x50] ss:$12 sps:$4 sm:$0xff]  }
 0x197   :  { %1659 = vmatprep.subr.bf16.mxu1 %v6483_v57  ;;  %5699 = vmatprep.subr.bf16.mxu0 %v7630_v61  ;;  %v1237_v10 = vmul.f32 %v6329_v8, %v1236_v53  ;;  %v7034_v53 = vld [vmem:[#allocation8 + $0x4c] ss:$12 sps:$4 sm:$0xff]   ;;  %v7037_v8 = vld [vmem:[#allocation8 + $0x48] ss:$12 sps:$4 sm:$0xff]   ;;  %v7044_v57 = vld [vmem:[#allocation8 + $0x30] ss:$12 sps:$4 sm:$0xff]  }
 0x199   :  { %v6998_v55 = vadd.f32 %v1238_v26, %v1237_v10  ;;  %v6141_v10 = vld [vmem:[#allocation8 + $0x38] ss:$12 sps:$4 sm:$0xff]   ;;  %v7048_v26 = vld [vmem:[#allocation8 + $0x1c] ss:$12 sps:$4 sm:$0xff]  }
 0x19a   :  { %1660 = vmatpush1.bf16.msra.mxu1 %v6484_v60  ;;  %5700 = vmatpush3.bf16.msra.mxu0 %v6117_v58  ;;  %v7041_v58 = vld [vmem:[#allocation8 + $0x34] ss:$12 sps:$4 sm:$0xff]   ;;  %v7051_v60 = vld [vmem:[#allocation8 + $0x18] ss:$12 sps:$4 sm:$0xff]  }
 0x19b   :  { %1241 = vst [vmem:[#allocation12 + $0x78] sm:$0xff] %v6998_v55  ;;  %v1484_v52 = vpack.c.bf16 %v6998_v55, %v6998_v55  ;;  %5705 = vmatprep.subr.bf16.mxu0 %v7630_v61  ;;  %1939 = vmatprep.subr.bf16.mxu1 %v7007_v18 }
 0x19d   :  { %1678 = vmatmul.mubr.bf16.vlgmr.msra.gmra.mxu1 %v1484_v52  ;;  %5702 = vmatmul.mubr.bf16.vlgmr.msra.gmra.mxu0 %v1484_v52  ;;  %v6145_v52 = vld [vmem:[#allocation8 + $0x20] ss:$12 sps:$4 sm:$0xff]  }
 0x19e   :  { %1971 = vmatprep.mubr.bf16.mxu1 %v7631_v48  ;;  %5721 = vmatprep.mubr.msk.bf16.mxu0 %vm6628_vm0, %v7630_v61 }
 0x19f   :  { %1940 = vmatpush1.bf16.msra.mxu1 %v7009_v0  ;;  %5706 = vmatpush3.bf16.msra.mxu0 %v6121_v9  ;;  %v7055_v9 = vld [vmem:[#allocation8 + $0x4] ss:$12 sps:$4 sm:$0xff]  }
 0x1a0   :  { %5707 = vmatprep.subr.bf16.mxu0 %v7630_v61  ;;  %1941 = vmatprep.subr.bf16.mxu1 %v7013_v63 }
 0x1a3   :  { %1942 = vmatpush1.bf16.msra.mxu1 %v7016_v4  ;;  %5708 = vmatpush3.bf16.msra.mxu0 %v6125_v14  ;;  %v7058_v14 = vld [vmem:[#allocation8] ss:$12 sps:$4 sm:$0xff]  }
 0x1a4   :  { %5709 = vmatprep.subr.bf16.mxu0 %v7630_v61  ;;  %1943 = vmatprep.subr.bf16.mxu1 %v7020_v45 }
 0x1a7   :  { %1944 = vmatpush1.bf16.msra.mxu1 %v7023_v41  ;;  %5710 = vmatpush3.bf16.msra.mxu0 %v6129_v17  ;;  %v6149_v17 = vld [vmem:[#allocation8 + $0x8] ss:$12 sps:$4 sm:$0xff]  }
 0x1a8   :  { %5711 = vmatprep.subr.bf16.mxu0 %v7630_v61  ;;  %1945 = vmatprep.subr.bf16.mxu1 %v7027_v22 }
 0x1ab   :  { %1946 = vmatpush1.bf16.msra.mxu1 %v7030_v54  ;;  %5712 = vmatpush3.bf16.msra.mxu0 %v6133_v33  ;;  %v7062_v33 = vld [vmem:[#allocation8 + $0x16c] ss:$12 sps:$4 sm:$0xff]  }
 0x1ac   :  { %5713 = vmatprep.subr.bf16.mxu0 %v7630_v61  ;;  %1947 = vmatprep.subr.bf16.mxu1 %v7034_v53 }
 0x1af   :  { %1948 = vmatpush1.bf16.msra.mxu1 %v7037_v8  ;;  %5714 = vmatpush3.bf16.msra.mxu0 %v6137_v37 }
 0x1b0   :  { %5715 = vmatprep.subr.bf16.mxu0 %v7630_v61  ;;  %1949 = vmatprep.subr.bf16.mxu1 %v7041_v58 }
 0x1b3   :  { %1950 = vmatpush1.bf16.msra.mxu1 %v7044_v57  ;;  %5716 = vmatpush3.bf16.msra.mxu0 %v6141_v10 }
 0x1b4   :  { %5717 = vmatprep.subr.bf16.mxu0 %v7630_v61  ;;  %1951 = vmatprep.subr.bf16.mxu1 %v7048_v26 }
 0x1b7   :  { %1952 = vmatpush1.bf16.msra.mxu1 %v7051_v60  ;;  %5718 = vmatpush3.bf16.msra.mxu0 %v6145_v52 }
 0x1b8   :  { %5719 = vmatprep.subr.bf16.mxu0 %v7630_v61  ;;  %1953 = vmatprep.subr.bf16.mxu1 %v7055_v9 }
 0x1bb   :  { %1954 = vmatpush1.bf16.msra.mxu1 %v7058_v14  ;;  %5720 = vmatpush3.bf16.msra.mxu0 %v6149_v17 }
 0x1bc   :  { %5725 = vmatprep.subr.bf16.mxu0 %v7630_v61  ;;  %2181 = vmatprep.subr.bf16.mxu1 %v7062_v33 }
 0x23d   :  { %v1437_v37 = vpop.f32.mrf.mxu1  ;;  %v1478_v10 = vpop.f32.mrf.mxu0 }
 0x23e   :  { %v1732_v52 = vadd.f32 %v1437_v37, %v6842_v2  ;;  %v1746_v2 = vadd.f32 %v1478_v10, %v6971_v46 }
 0x23f   :  { %v1439_v62 = vpop.f32.mrf.mxu1  ;;  %v5683_v38 = vpop.f32.mrf.mxu0 }
 0x240   :  { %v5165_v50 = vmul.f32 -1.442695, %v1732_v52  ;;  %v1739_v17 = vadd.f32 %v1439_v62, %v6848_v6 }
 0x241   :  { %v1441_v44 = vpop.f32.mrf.mxu1  ;;  %v1481_v7 = vpop.f32.mrf.mxu0 }
 0x242   :  { %6330 = vpow2.f32 %v5165_v50  ;;  %v5166_v47 = vmul.f32 -1.442695, %v1739_v17 }
 0x243   :  { %v1442_v49 = vpop.f32.mrf.mxu1  ;;  %v5684_v43 = vpop.f32.mrf.mxu0 }
 0x244   :  { %6332 = vpow2.f32 %v5166_v47 }
 0x24f   :  { %v6331_v42 = vpop.eup %6330 }
 0x250   :  { %v1736_v36 = vadd.f32 1.0, %v6331_v42 }
 0x251   :  { %v6333_v16 = vpop.eup %6332 }
 0x252   :  { %6334 = vrcp.f32 %v1736_v36  ;;  %v1743_v39 = vadd.f32 1.0, %v6333_v16 }
 0x254   :  { %6336 = vrcp.f32 %v1743_v39 }
 0x25d   :  { %v1679_v35 = vpop.f32.mrf.mxu1  ;;  %v1720_v56 = vpop.f32.mrf.mxu0 }
 0x25e   :  { %v1754_v38 = vadd.f32 %v1679_v35, %v6907_v51 }
 0x25f   :  { %v6335_v44 = vpop.eup %6334  ;;  %v1681_v7 = vpop.f32.mrf.mxu1 }
 0x260   :  { %v5703_v50 = vpop.f32.mrf.mxu0  ;;  %v1747_v49 = vmul.f32 %v6335_v44, %v1746_v2  ;;  %v5167_v43 = vmul.f32 -1.442695, %v1754_v38  ;;  %v1761_v16 = vadd.f32 %v1681_v7, %v6964_v59  ;;  %v6153_v44 = vld [vmem:[#allocation8 + $0x170] ss:$12 sps:$4 sm:$0xff]   ;;  %v7080_v7 = vld [vmem:[#allocation8 + $0x154] ss:$12 sps:$4 sm:$0xff]  }
 0x261   :  { %v1683_v6 = vpop.f32.mrf.mxu1  ;;  %v6337_v10 = vpop.eup %6336 }
 0x262   :  { %v1723_v62 = vpop.f32.mrf.mxu0  ;;  %v1748_v47 = vadd.f32 %v1747_v49, %v6845_v3  ;;  %6338 = vpow2.f32 %v5167_v43  ;;  %v5168_v37 = vmul.f32 -1.442695, %v1761_v16  ;;  %v1750_v52 = vsub.f32 1.0, %v6337_v10  ;;  %v7075_v3 = vld [vmem:[#allocation8 + $0x168] ss:$12 sps:$4 sm:$0xff]  }
 0x263   :  { %v1684_v36 = vpop.f32.mrf.mxu1  ;;  %v1752_v2 = vmul.f32 %v6337_v10, %v6978_v29  ;;  %v7083_v49 = vld [vmem:[#allocation8 + $0x150] ss:$12 sps:$4 sm:$0xff]   ;;  %v6157_v29 = vld [vmem:[#allocation8 + $0x158] ss:$12 sps:$4 sm:$0xff]   ;;  %v7101_v10 = vld [vmem:[#allocation8 + $0x120] ss:$12 sps:$4 sm:$0xff]  }
 0x264   :  { %v5704_v42 = vpop.f32.mrf.mxu0  ;;  %6340 = vtanh.f32 %v1748_v47  ;;  %v7087_v43 = vld [vmem:[#allocation8 + $0x13c] ss:$12 sps:$4 sm:$0xff]   ;;  %v7093_v62 = vld [vmem:[#allocation8 + $0x138] ss:$12 sps:$4 sm:$0xff]   ;;  %v6161_v47 = vld [vmem:[#allocation8 + $0x140] ss:$12 sps:$4 sm:$0xff]   ;;  %v1768_v36 = vadd.f32 %v1720_v56, %v6984_v13 }
 0x265   :  { %6342 = vpow2.f32 %v5168_v37  ;;  %v7098_v42 = vld [vmem:[#allocation8 + $0x124] ss:$12 sps:$4 sm:$0xff]   ;;  %v7106_v56 = vld [vmem:[#allocation8 + $0x10c] ss:$12 sps:$4 sm:$0xff]  }
 0x26f   :  { %v6339_v35 = vpop.eup %6338 }
 0x270   :  { %v1758_v51 = vadd.f32 1.0, %v6339_v35  ;;  %v6165_v35 = vld [vmem:[#allocation8 + $0x128] ss:$12 sps:$4 sm:$0xff]  }
 0x271   :  { %v6341_v17 = vpop.eup %6340 }
 0x272   :  { %6344 = vrcp.f32 %v1758_v51  ;;  %v1751_v39 = vmul.f32 %v6341_v17, %v1750_v52  ;;  %v6343_v50 = vpop.eup %6342  ;;  %v7109_v52 = vld [vmem:[#allocation8 + $0x108] ss:$12 sps:$4 sm:$0xff]   ;;  %v6169_v17 = vld [vmem:[#allocation8 + $0x110] ss:$12 sps:$4 sm:$0xff]  }
 0x273   :  { %v1765_v6 = vadd.f32 1.0, %v6343_v50  ;;  %v7123_v50 = vld [vmem:[#allocation8 + $0xd8] ss:$12 sps:$4 sm:$0xff]  }
 0x274   :  { %v7073_v38 = vadd.f32 %v1752_v2, %v1751_v39  ;;  %v7113_v39 = vld [vmem:[#allocation8 + $0xf4] ss:$12 sps:$4 sm:$0xff]   ;;  %v6173_v2 = vld [vmem:[#allocation8 + $0xf8] ss:$12 sps:$4 sm:$0xff]  }
 0x275   :  { %6346 = vrcp.f32 %v1765_v6  ;;  %v7127_v6 = vld [vmem:[#allocation8 + $0xc4] ss:$12 sps:$4 sm:$0xff]  }
 0x276   :  { %1776 = vst [vmem:[#allocation12 + $0x10] sm:$0xff] %v7073_v38  ;;  %v1778_v59 = vpack.c.bf16 %v7073_v38, %v7073_v38 }
 0x278   :  { %1972 = vmatmul.mubr.bf16.vlgmr.msra.gmra.mxu1 %v1778_v59  ;;  %5722 = vmatmul.mubr.bf16.vlgmr.msra.gmra.mxu0 %v1778_v59 }
 0x279   :  { %2182 = vmatpush1.bf16.msra.mxu1 %v7075_v3  ;;  %5726 = vmatpush3.bf16.msra.mxu0 %v6153_v44  ;;  %v7120_v44 = vld [vmem:[#allocation8 + $0xdc] ss:$12 sps:$4 sm:$0xff]  }
 0x27a   :  { %2183 = vmatprep.subr.bf16.mxu1 %v7080_v7  ;;  %5727 = vmatprep.subr.bf16.mxu0 %v7630_v61 }
 0x27b   :  { %2213 = vmatprep.mubr.bf16.mxu1 %v7631_v48  ;;  %5741 = vmatprep.mubr.msk.bf16.mxu0 %vm6628_vm0, %v7630_v61 }
 0x27d   :  { %2184 = vmatpush1.bf16.msra.mxu1 %v7083_v49  ;;  %5728 = vmatpush3.bf16.msra.mxu0 %v6157_v29  ;;  %v6177_v29 = vld [vmem:[#allocation8 + $0xe0] ss:$12 sps:$4 sm:$0xff]  }
 0x27e   :  { %2185 = vmatprep.subr.bf16.mxu1 %v7087_v43  ;;  %5729 = vmatprep.subr.bf16.mxu0 %v7630_v61 }
 0x27f   :  { %v6345_v16 = vpop.eup %6344 }
 0x280   :  { %v1769_v37 = vmul.f32 %v6345_v16, %v1768_v36  ;;  %v7130_v16 = vld [vmem:[#allocation8 + $0xc0] ss:$12 sps:$4 sm:$0xff]  }
 0x281   :  { %2186 = vmatpush1.bf16.msra.mxu1 %v7093_v62  ;;  %5730 = vmatpush3.bf16.msra.mxu0 %v6161_v47 }
 0x282   :  { %v1770_v51 = vadd.f32 %v1769_v37, %v6967_v34  ;;  %2187 = vmatprep.subr.bf16.mxu1 %v7098_v42  ;;  %5731 = vmatprep.subr.bf16.mxu0 %v7630_v61  ;;  %v7116_v34 = vld [vmem:[#allocation8 + $0xf0] ss:$12 sps:$4 sm:$0xff]   ;;  %v6347_v59 = vpop.eup %6346  ;;  %v6181_v37 = vld [vmem:[#allocation8 + $0xc8] ss:$12 sps:$4 sm:$0xff]  }
 0x283   :  { %v1772_v47 = vsub.f32 1.0, %v6347_v59 }
 0x284   :  { %6348 = vtanh.f32 %v1770_v51  ;;  %v1774_v51 = vmul.f32 %v6347_v59, %v6998_v55  ;;  %v6182_v55 = vld [vmem:[#allocation8 + $0xb0] ss:$12 sps:$4 sm:$0xff]   ;;  %v6183_v59 = vld [vmem:[#allocation8 + $0x98] ss:$12 sps:$4 sm:$0xff]  }
 0x285   :  { %2188 = vmatpush1.bf16.msra.mxu1 %v7101_v10  ;;  %5732 = vmatpush3.bf16.msra.mxu0 %v6165_v35 }
 0x286   :  { %2189 = vmatprep.subr.bf16.mxu1 %v7106_v56  ;;  %5733 = vmatprep.subr.bf16.mxu0 %v7630_v61 }
 0x289   :  { %2190 = vmatpush1.bf16.msra.mxu1 %v7109_v52  ;;  %5734 = vmatpush3.bf16.msra.mxu0 %v6169_v17 }
 0x28a   :  { %2191 = vmatprep.subr.bf16.mxu1 %v7113_v39  ;;  %5735 = vmatprep.subr.bf16.mxu0 %v7630_v61 }
 0x28d   :  { %2192 = vmatpush1.bf16.msra.mxu1 %v7116_v34  ;;  %5736 = vmatpush3.bf16.msra.mxu0 %v6173_v2 }
 0x28e   :  { %2193 = vmatprep.subr.bf16.mxu1 %v7120_v44  ;;  %5737 = vmatprep.subr.bf16.mxu0 %v7630_v61 }
 0x291   :  { %v6349_v36 = vpop.eup %6348  ;;  %2194 = vmatpush1.bf16.msra.mxu1 %v7123_v50  ;;  %5738 = vmatpush3.bf16.msra.mxu0 %v6177_v29  ;;  %v6184_v29 = vld [vmem:[#allocation8 + $0x80] ss:$12 sps:$4 sm:$0xff]  }
 0x292   :  { %2195 = vmatprep.subr.bf16.mxu1 %v7127_v6  ;;  %5739 = vmatprep.subr.bf16.mxu0 %v7630_v61  ;;  %v1773_v35 = vmul.f32 %v6349_v36, %v1772_v47  ;;  %v6185_v47 = vld [vmem:[#allocation8 + $0x68] ss:$12 sps:$4 sm:$0xff]   ;;  %v6186_v36 = vld [vmem:[#allocation8 + $0x50] ss:$12 sps:$4 sm:$0xff]  }
 0x294   :  { %v7135_v17 = vadd.f32 %v1774_v51, %v1773_v35  ;;  %v6188_v35 = vld [vmem:[#allocation8 + $0x20] ss:$12 sps:$4 sm:$0xff]   ;;  %v6189_v51 = vld [vmem:[#allocation8 + $0x8] ss:$12 sps:$4 sm:$0xff]  }
 0x295   :  { %2196 = vmatpush1.bf16.msra.mxu1 %v7130_v16  ;;  %5740 = vmatpush3.bf16.msra.mxu0 %v6181_v37  ;;  %v6187_v37 = vld [vmem:[#allocation8 + $0x38] ss:$12 sps:$4 sm:$0xff]  }
 0x296   :  { %1777 = vst [vmem:[#allocation12 + $0x68] sm:$0xff] %v7135_v17  ;;  %v2020_v2 = vpack.c.bf16 %v7135_v17, %v7135_v17  ;;  %2475 = vmatprep.subr.bf16.mxu1 %v7007_v18  ;;  %5745 = vmatprep.subr.bf16.mxu0 %v7630_v61 }
 0x298   :  { %2214 = vmatmul.mubr.bf16.vlgmr.msra.gmra.mxu1 %v2020_v2  ;;  %5742 = vmatmul.mubr.bf16.vlgmr.msra.gmra.mxu0 %v2020_v2 }
 0x299   :  { %2476 = vmatpush1.bf16.msra.mxu1 %v7009_v0  ;;  %2507 = vmatprep.mubr.bf16.mxu1 %v7631_v48 }
 0x29a   :  { %2477 = vmatprep.subr.bf16.mxu1 %v7013_v63  ;;  %5761 = vmatprep.mubr.msk.bf16.mxu0 %vm6628_vm0, %v7630_v61 }
 0x29b   :  { %5746 = vmatpush3.bf16.msra.mxu0 %v6182_v55 }
 0x29c   :  { %5747 = vmatprep.subr.bf16.mxu0 %v7630_v61 }
 0x29d   :  { %2478 = vmatpush1.bf16.msra.mxu1 %v7016_v4 }
 0x29e   :  { %2479 = vmatprep.subr.bf16.mxu1 %v7020_v45 }
 0x29f   :  { %5748 = vmatpush3.bf16.msra.mxu0 %v6183_v59 }
 0x2a0   :  { %5749 = vmatprep.subr.bf16.mxu0 %v7630_v61 }
 0x2a1   :  { %2480 = vmatpush1.bf16.msra.mxu1 %v7023_v41 }
 0x2a2   :  { %2481 = vmatprep.subr.bf16.mxu1 %v7027_v22 }
 0x2a3   :  { %5750 = vmatpush3.bf16.msra.mxu0 %v6184_v29 }
 0x2a4   :  { %5751 = vmatprep.subr.bf16.mxu0 %v7630_v61 }
 0x2a5   :  { %2482 = vmatpush1.bf16.msra.mxu1 %v7030_v54 }
 0x2a6   :  { %2483 = vmatprep.subr.bf16.mxu1 %v7034_v53 }
 0x2a7   :  { %5752 = vmatpush3.bf16.msra.mxu0 %v6185_v47 }
 0x2a8   :  { %5753 = vmatprep.subr.bf16.mxu0 %v7630_v61 }
 0x2a9   :  { %2484 = vmatpush1.bf16.msra.mxu1 %v7037_v8 }
 0x2aa   :  { %2485 = vmatprep.subr.bf16.mxu1 %v7041_v58 }
 0x2ab   :  { %5754 = vmatpush3.bf16.msra.mxu0 %v6186_v36 }
 0x2ac   :  { %5755 = vmatprep.subr.bf16.mxu0 %v7630_v61 }
 0x2ad   :  { %2486 = vmatpush1.bf16.msra.mxu1 %v7044_v57 }
 0x2ae   :  { %2487 = vmatprep.subr.bf16.mxu1 %v7048_v26 }
 0x2af   :  { %5756 = vmatpush3.bf16.msra.mxu0 %v6187_v37 }
 0x2b0   :  { %5757 = vmatprep.subr.bf16.mxu0 %v7630_v61 }
 0x2b1   :  { %2488 = vmatpush1.bf16.msra.mxu1 %v7051_v60 }
 0x2b2   :  { %2489 = vmatprep.subr.bf16.mxu1 %v7055_v9 }
 0x2b3   :  { %5758 = vmatpush3.bf16.msra.mxu0 %v6188_v35 }
 0x2b4   :  { %5759 = vmatprep.subr.bf16.mxu0 %v7630_v61 }
 0x2b5   :  { %2490 = vmatpush1.bf16.msra.mxu1 %v7058_v14 }
 0x2b6   :  { %2717 = vmatprep.subr.bf16.mxu1 %v7062_v33 }
 0x2b7   :  { %5760 = vmatpush3.bf16.msra.mxu0 %v6189_v51 }
 0x2b8   :  { %5765 = vmatprep.subr.bf16.mxu0 %v7630_v61 }
 0x338   :  { %v1973_v2 = vpop.f32.mrf.mxu1  ;;  %v2014_v55 = vpop.f32.mrf.mxu0 }
 0x339   :  { %v2268_v59 = vadd.f32 %v1973_v2, %v6853_v11  ;;  %v2282_v11 = vadd.f32 %v2014_v55, %v6971_v46 }
 0x33a   :  { %v1975_v29 = vpop.f32.mrf.mxu1  ;;  %v5723_v47 = vpop.f32.mrf.mxu0 }
 0x33b   :  { %v5217_v36 = vmul.f32 -1.442695, %v2268_v59  ;;  %v2275_v35 = vadd.f32 %v1975_v29, %v6859_v15 }
 0x33c   :  { %v1977_v1 = vpop.f32.mrf.mxu1  ;;  %v2017_v28 = vpop.f32.mrf.mxu0 }
 0x33d   :  { %6350 = vpow2.f32 %v5217_v36  ;;  %v5218_v31 = vmul.f32 -1.442695, %v2275_v35 }
 0x33e   :  { %v1978_v37 = vpop.f32.mrf.mxu1  ;;  %v5724_v24 = vpop.f32.mrf.mxu0 }
 0x33f   :  { %6352 = vpow2.f32 %v5218_v31 }
 0x34a   :  { %v6351_v27 = vpop.eup %6350 }
 0x34b   :  { %v2272_v51 = vadd.f32 1.0, %v6351_v27 }
 0x34c   :  { %v6353_v21 = vpop.eup %6352 }
 0x34d   :  { %6354 = vrcp.f32 %v2272_v51  ;;  %v2279_v5 = vadd.f32 1.0, %v6353_v21 }
 0x34f   :  { %6356 = vrcp.f32 %v2279_v5 }
 0x358   :  { %v2215_v20 = vpop.f32.mrf.mxu1  ;;  %v2256_v32 = vpop.f32.mrf.mxu0 }
 0x359   :  { %v2290_v2 = vadd.f32 %v2215_v20, %v6895_v40 }
 0x35a   :  { %v6355_v1 = vpop.eup %6354  ;;  %v2217_v28 = vpop.f32.mrf.mxu1 }
 0x35b   :  { %v5743_v59 = vpop.f32.mrf.mxu0  ;;  %v2283_v47 = vmul.f32 %v6355_v1, %v2282_v11  ;;  %v5219_v24 = vmul.f32 -1.442695, %v2290_v2  ;;  %v2297_v21 = vadd.f32 %v2217_v28, %v6958_v25  ;;  %v6191_v28 = vld [vmem:[#allocation8 + $0x158] ss:$12 sps:$4 sm:$0xff]  }
 0x35c   :  { %v2219_v15 = vpop.f32.mrf.mxu1  ;;  %v6357_v55 = vpop.eup %6356  ;;  %v6192_v59 = vld [vmem:[#allocation8 + $0x140] ss:$12 sps:$4 sm:$0xff]  }
 0x35d   :  { %v2259_v29 = vpop.f32.mrf.mxu0  ;;  %v2284_v31 = vadd.f32 %v2283_v47, %v6856_v12  ;;  %6358 = vpow2.f32 %v5219_v24  ;;  %v5220_v37 = vmul.f32 -1.442695, %v2297_v21  ;;  %v2286_v35 = vsub.f32 1.0, %v6357_v55  ;;  %v6190_v12 = vld [vmem:[#allocation8 + $0x170] ss:$12 sps:$4 sm:$0xff]  }
 0x35e   :  { %v2220_v27 = vpop.f32.mrf.mxu1  ;;  %v2288_v11 = vmul.f32 %v6357_v55, %v7073_v38  ;;  %v2304_v47 = vadd.f32 %v2256_v32, %v6984_v13  ;;  %v6193_v29 = vld [vmem:[#allocation8 + $0x128] ss:$12 sps:$4 sm:$0xff]   ;;  %v6194_v32 = vld [vmem:[#allocation8 + $0x110] ss:$12 sps:$4 sm:$0xff]  }
 0x35f   :  { %v5744_v36 = vpop.f32.mrf.mxu0  ;;  %6360 = vtanh.f32 %v2284_v31  ;;  %v6195_v27 = vld [vmem:[#allocation8 + $0xf8] ss:$12 sps:$4 sm:$0xff]   ;;  %v6197_v55 = vld [vmem:[#allocation8 + $0xc8] ss:$12 sps:$4 sm:$0xff]  }
 0x360   :  { %6362 = vpow2.f32 %v5220_v37  ;;  %v6196_v36 = vld [vmem:[#allocation8 + $0xe0] ss:$12 sps:$4 sm:$0xff]  }
 0x36a   :  { %v6359_v20 = vpop.eup %6358 }
 0x36b   :  { %v2294_v40 = vadd.f32 1.0, %v6359_v20 }
 0x36c   :  { %v6361_v51 = vpop.eup %6360 }
 0x36d   :  { %6364 = vrcp.f32 %v2294_v40  ;;  %v2287_v5 = vmul.f32 %v6361_v51, %v2286_v35  ;;  %v6363_v25 = vpop.eup %6362 }
 0x36e   :  { %v2301_v38 = vadd.f32 1.0, %v6363_v25 }
 0x36f   :  { %v7177_v2 = vadd.f32 %v2288_v11, %v2287_v5 }
 0x370   :  { %6366 = vrcp.f32 %v2301_v38 }
 0x371   :  { %2312 = vst [vmem:[#allocation12 + $0x20] sm:$0xff] %v7177_v2  ;;  %v2314_v1 = vpack.c.bf16 %v7177_v2, %v7177_v2 }
 0x373   :  { %2508 = vmatmul.mubr.bf16.vlgmr.msra.gmra.mxu1 %v2314_v1  ;;  %5762 = vmatmul.mubr.bf16.vlgmr.msra.gmra.mxu0 %v2314_v1 }
 0x374   :  { %2718 = vmatpush1.bf16.msra.mxu1 %v7075_v3  ;;  %5766 = vmatpush3.bf16.msra.mxu0 %v6190_v12 }
 0x375   :  { %2719 = vmatprep.subr.bf16.mxu1 %v7080_v7  ;;  %5767 = vmatprep.subr.bf16.mxu0 %v7630_v61 }
 0x376   :  { %2749 = vmatprep.mubr.bf16.mxu1 %v7631_v48  ;;  %5781 = vmatprep.mubr.msk.bf16.mxu0 %vm6628_vm0, %v7630_v61 }
 0x378   :  { %2720 = vmatpush1.bf16.msra.mxu1 %v7083_v49  ;;  %5768 = vmatpush3.bf16.msra.mxu0 %v6191_v28 }
 0x379   :  { %2721 = vmatprep.subr.bf16.mxu1 %v7087_v43  ;;  %5769 = vmatprep.subr.bf16.mxu0 %v7630_v61 }
 0x37a   :  { %v6365_v24 = vpop.eup %6364 }
 0x37b   :  { %v2305_v15 = vmul.f32 %v6365_v24, %v2304_v47  ;;  %v7632_v47 = vld [vmem:[#allocation25_spill] sm:$0xff] }
 0x37c   :  { %2722 = vmatpush1.bf16.msra.mxu1 %v7093_v62  ;;  %5770 = vmatpush3.bf16.msra.mxu0 %v6192_v59 }
 0x37d   :  { %v2306_v31 = vadd.f32 %v2305_v15, %v6961_v30  ;;  %2723 = vmatprep.subr.bf16.mxu1 %v7098_v42  ;;  %5771 = vmatprep.subr.bf16.mxu0 %v7630_v61  ;;  %v6367_v30 = vpop.eup %6366 }
 0x37e   :  { %v2308_v21 = vsub.f32 1.0, %v6367_v30  ;;  %v2310_v40 = vmul.f32 %v6367_v30, %v7135_v17 }
 0x37f   :  { %6368 = vtanh.f32 %v2306_v31 }
 0x380   :  { %2724 = vmatpush1.bf16.msra.mxu1 %v7101_v10  ;;  %5772 = vmatpush3.bf16.msra.mxu0 %v6193_v29 }
 0x381   :  { %2725 = vmatprep.subr.bf16.mxu1 %v7106_v56  ;;  %5773 = vmatprep.subr.bf16.mxu0 %v7630_v61 }
 0x384   :  { %2726 = vmatpush1.bf16.msra.mxu1 %v7109_v52  ;;  %5774 = vmatpush3.bf16.msra.mxu0 %v6194_v32 }
 0x385   :  { %2727 = vmatprep.subr.bf16.mxu1 %v7113_v39  ;;  %5775 = vmatprep.subr.bf16.mxu0 %v7630_v61 }
 0x388   :  { %2728 = vmatpush1.bf16.msra.mxu1 %v7116_v34  ;;  %5776 = vmatpush3.bf16.msra.mxu0 %v6195_v27 }
 0x389   :  { %2729 = vmatprep.subr.bf16.mxu1 %v7120_v44  ;;  %5777 = vmatprep.subr.bf16.mxu0 %v7630_v61 }
 0x38c   :  { %v6369_v37 = vpop.eup %6368  ;;  %2730 = vmatpush1.bf16.msra.mxu1 %v7123_v50  ;;  %5778 = vmatpush3.bf16.msra.mxu0 %v6196_v36  ;;  %v7633_v36 = vld [vmem:[#allocation20_spill] sm:$0xff] }
 0x38d   :  { %2731 = vmatprep.subr.bf16.mxu1 %v7127_v6  ;;  %5779 = vmatprep.subr.bf16.mxu0 %v7630_v61  ;;  %v2309_v20 = vmul.f32 %v6369_v37, %v2308_v21 }
 0x38f   :  { %v7209_v35 = vadd.f32 %v2310_v40, %v2309_v20  ;;  %v7634_v20 = vld [vmem:[#allocation43_spill] sm:$0xff] }
 0x390   :  { %2732 = vmatpush1.bf16.msra.mxu1 %v7130_v16  ;;  %5780 = vmatpush3.bf16.msra.mxu0 %v6197_v55 }
 0x391   :  { %2313 = vst [vmem:[#allocation12 + $0x58] sm:$0xff] %v7209_v35  ;;  %v2556_v51 = vpack.c.bf16 %v7209_v35, %v7209_v35  ;;  %3011 = vmatprep.subr.bf16.mxu1 %v7007_v18  ;;  %5785 = vmatprep.subr.bf16.mxu0 %v7630_v61  ;;  %v6198_v18 = vld [vmem:[#allocation8 + $0xb0] ss:$12 sps:$4 sm:$0xff]  }
 0x393   :  { %2750 = vmatmul.mubr.bf16.vlgmr.msra.gmra.mxu1 %v2556_v51  ;;  %5782 = vmatmul.mubr.bf16.vlgmr.msra.gmra.mxu0 %v2556_v51 }
 0x394   :  { %3012 = vmatpush1.bf16.msra.mxu1 %v7009_v0  ;;  %3043 = vmatprep.mubr.bf16.mxu1 %v7631_v48  ;;  %v6199_v0 = vld [vmem:[#allocation8 + $0x98] ss:$12 sps:$4 sm:$0xff]  }
 0x395   :  { %3013 = vmatprep.subr.bf16.mxu1 %v7013_v63  ;;  %5801 = vmatprep.mubr.msk.bf16.mxu0 %vm6628_vm0, %v7630_v61  ;;  %v6200_v63 = vld [vmem:[#allocation8 + $0x80] ss:$12 sps:$4 sm:$0xff]  }
 0x396   :  { %5786 = vmatpush3.bf16.msra.mxu0 %v6198_v18 }
 0x397   :  { %5787 = vmatprep.subr.bf16.mxu0 %v7630_v61 }
 0x398   :  { %3014 = vmatpush1.bf16.msra.mxu1 %v7016_v4  ;;  %v6201_v4 = vld [vmem:[#allocation8 + $0x68] ss:$12 sps:$4 sm:$0xff]  }
 0x399   :  { %3015 = vmatprep.subr.bf16.mxu1 %v7020_v45  ;;  %v6202_v45 = vld [vmem:[#allocation8 + $0x50] ss:$12 sps:$4 sm:$0xff]  }
 0x39a   :  { %5788 = vmatpush3.bf16.msra.mxu0 %v6199_v0 }
 0x39b   :  { %5789 = vmatprep.subr.bf16.mxu0 %v7630_v61 }
 0x39c   :  { %3016 = vmatpush1.bf16.msra.mxu1 %v7023_v41  ;;  %v6203_v41 = vld [vmem:[#allocation8 + $0x38] ss:$12 sps:$4 sm:$0xff]  }
 0x39d   :  { %3017 = vmatprep.subr.bf16.mxu1 %v7027_v22  ;;  %v6204_v22 = vld [vmem:[#allocation8 + $0x20] ss:$12 sps:$4 sm:$0xff]  }
 0x39e   :  { %5790 = vmatpush3.bf16.msra.mxu0 %v6200_v63 }
 0x39f   :  { %5791 = vmatprep.subr.bf16.mxu0 %v7630_v61 }
 0x3a0   :  { %3018 = vmatpush1.bf16.msra.mxu1 %v7030_v54  ;;  %v6205_v54 = vld [vmem:[#allocation8 + $0x8] ss:$12 sps:$4 sm:$0xff]  }
 0x3a1   :  { %3019 = vmatprep.subr.bf16.mxu1 %v7034_v53 }
 0x3a2   :  { %5792 = vmatpush3.bf16.msra.mxu0 %v6201_v4 }
 0x3a3   :  { %5793 = vmatprep.subr.bf16.mxu0 %v7630_v61 }
 0x3a4   :  { %3020 = vmatpush1.bf16.msra.mxu1 %v7037_v8 }
 0x3a5   :  { %3021 = vmatprep.subr.bf16.mxu1 %v7041_v58 }
 0x3a6   :  { %5794 = vmatpush3.bf16.msra.mxu0 %v6202_v45 }
 0x3a7   :  { %5795 = vmatprep.subr.bf16.mxu0 %v7630_v61 }
 0x3a8   :  { %3022 = vmatpush1.bf16.msra.mxu1 %v7044_v57 }
 0x3a9   :  { %3023 = vmatprep.subr.bf16.mxu1 %v7048_v26 }
 0x3aa   :  { %5796 = vmatpush3.bf16.msra.mxu0 %v6203_v41 }
 0x3ab   :  { %5797 = vmatprep.subr.bf16.mxu0 %v7630_v61 }
 0x3ac   :  { %3024 = vmatpush1.bf16.msra.mxu1 %v7051_v60 }
 0x3ad   :  { %3025 = vmatprep.subr.bf16.mxu1 %v7055_v9 }
 0x3ae   :  { %5798 = vmatpush3.bf16.msra.mxu0 %v6204_v22 }
 0x3af   :  { %5799 = vmatprep.subr.bf16.mxu0 %v7630_v61 }
 0x3b0   :  { %3026 = vmatpush1.bf16.msra.mxu1 %v7058_v14 }
 0x3b1   :  { %3253 = vmatprep.subr.bf16.mxu1 %v7062_v33 }
 0x3b2   :  { %5800 = vmatpush3.bf16.msra.mxu0 %v6205_v54  ;;  %v6206_v54 = vld [vmem:[#allocation8 + $0x170] ss:$12 sps:$4 sm:$0xff]  }
 0x3b3   :  { %5805 = vmatprep.subr.bf16.mxu0 %v7630_v61 }
 0x433   :  { %v2509_v53 = vpop.f32.mrf.mxu1  ;;  %v2550_v8 = vpop.f32.mrf.mxu0 }
 0x434   :  { %v2804_v58 = vadd.f32 %v2509_v53, %v6864_v19  ;;  %v2818_v19 = vadd.f32 %v2550_v8, %v6971_v46 }
 0x435   :  { %v2511_v57 = vpop.f32.mrf.mxu1  ;;  %v5763_v26 = vpop.f32.mrf.mxu0 }
 0x436   :  { %v5269_v60 = vmul.f32 -1.442695, %v2804_v58  ;;  %v2811_v5 = vadd.f32 %v2511_v57, %v6870_v23  ;;  %v6207_v58 = vld [vmem:[#allocation8 + $0x158] ss:$12 sps:$4 sm:$0xff]   ;;  %v6208_v57 = vld [vmem:[#allocation8 + $0x140] ss:$12 sps:$4 sm:$0xff]  }
 0x437   :  { %v2513_v9 = vpop.f32.mrf.mxu1  ;;  %v2553_v14 = vpop.f32.mrf.mxu0 }
 0x438   :  { %6370 = vpow2.f32 %v5269_v60  ;;  %v5270_v11 = vmul.f32 -1.442695, %v2811_v5  ;;  %v6209_v60 = vld [vmem:[#allocation8 + $0x128] ss:$12 sps:$4 sm:$0xff]  }
 0x439   :  { %v2514_v33 = vpop.f32.mrf.mxu1  ;;  %v5764_v17 = vpop.f32.mrf.mxu0  ;;  %v7635_v9 = vld [vmem:[#allocation44_spill] sm:$0xff]  ;;  %v7306_v5 = vld [vmem:[#allocation8 + $0x7c] ss:$12 sps:$4 sm:$0xff]  }
 0x43a   :  { %6372 = vpow2.f32 %v5270_v11  ;;  %v7302_v33 = vld [vmem:[#allocation8 + $0x90] ss:$12 sps:$4 sm:$0xff]   ;;  %v6221_v17 = vld [vmem:[#allocation8 + $0x98] ss:$12 sps:$4 sm:$0xff]  }
 0x43b   :  { %v7309_v11 = vld [vmem:[#allocation8 + $0x78] ss:$12 sps:$4 sm:$0xff]  }
 0x445   :  { %v6371_v12 = vpop.eup %6370 }
 0x446   :  { %v2808_v1 = vadd.f32 1.0, %v6371_v12  ;;  %v6225_v12 = vld [vmem:[#allocation8 + $0x80] ss:$12 sps:$4 sm:$0xff]  }
 0x447   :  { %v6373_v25 = vpop.eup %6372 }
 0x448   :  { %6374 = vrcp.f32 %v2808_v1  ;;  %v2815_v28 = vadd.f32 1.0, %v6373_v25  ;;  %v7313_v1 = vld [vmem:[#allocation8 + $0x64] ss:$12 sps:$4 sm:$0xff]   ;;  %v7316_v25 = vld [vmem:[#allocation8 + $0x60] ss:$12 sps:$4 sm:$0xff]  }
 0x44a   :  { %6376 = vrcp.f32 %v2815_v28  ;;  %v6229_v28 = vld [vmem:[#allocation8 + $0x68] ss:$12 sps:$4 sm:$0xff]  }
 0x453   :  { %v2751_v38 = vpop.f32.mrf.mxu1  ;;  %v2792_v59 = vpop.f32.mrf.mxu0 }
 0x454   :  { %v2826_v24 = vadd.f32 %v2751_v38, %v7632_v47  ;;  %v2840_v26 = vadd.f32 %v2792_v59, %v6984_v13  ;;  %v6210_v13 = vld [vmem:[#allocation8 + $0x110] ss:$12 sps:$4 sm:$0xff]   ;;  %v7320_v38 = vld [vmem:[#allocation8 + $0x4c] ss:$12 sps:$4 sm:$0xff]   ;;  %v7323_v59 = vld [vmem:[#allocation8 + $0x48] ss:$12 sps:$4 sm:$0xff]  }
 0x455   :  { %v6375_v15 = vpop.eup %6374  ;;  %v2753_v29 = vpop.f32.mrf.mxu1  ;;  %v7327_v47 = vld [vmem:[#allocation8 + $0x34] ss:$12 sps:$4 sm:$0xff]  }
 0x456   :  { %v5783_v31 = vpop.f32.mrf.mxu0  ;;  %v2819_v32 = vmul.f32 %v6375_v15, %v2818_v19  ;;  %v5271_v27 = vmul.f32 -1.442695, %v2826_v24  ;;  %v2833_v40 = vadd.f32 %v2753_v29, %v7634_v20  ;;  %v6233_v19 = vld [vmem:[#allocation8 + $0x50] ss:$12 sps:$4 sm:$0xff]   ;;  %v6237_v15 = vld [vmem:[#allocation8 + $0x38] ss:$12 sps:$4 sm:$0xff]  }
 0x457   :  { %v2755_v23 = vpop.f32.mrf.mxu1  ;;  %v6377_v46 = vpop.eup %6376  ;;  %v7330_v24 = vld [vmem:[#allocation8 + $0x30] ss:$12 sps:$4 sm:$0xff]   ;;  %v7337_v31 = vld [vmem:[#allocation8 + $0x18] ss:$12 sps:$4 sm:$0xff]  }
 0x458   :  { %v2795_v30 = vpop.f32.mrf.mxu0  ;;  %v2820_v21 = vadd.f32 %v2819_v32, %v7633_v36  ;;  %6378 = vpow2.f32 %v5271_v27  ;;  %v5272_v51 = vmul.f32 -1.442695, %v2833_v40  ;;  %v2822_v63 = vsub.f32 1.0, %v6377_v46  ;;  %v7334_v29 = vld [vmem:[#allocation8 + $0x1c] ss:$12 sps:$4 sm:$0xff]  }
 0x459   :  { %v2756_v37 = vpop.f32.mrf.mxu1  ;;  %v2824_v41 = vmul.f32 %v6377_v46, %v7177_v2  ;;  %v6241_v32 = vld [vmem:[#allocation8 + $0x20] ss:$12 sps:$4 sm:$0xff]   ;;  %v7341_v27 = vld [vmem:[#allocation8 + $0x4] ss:$12 sps:$4 sm:$0xff]   ;;  %v6245_v30 = vld [vmem:[#allocation8 + $0x8] ss:$12 sps:$4 sm:$0xff]  }
 0x45a   :  { %v5784_v55 = vpop.f32.mrf.mxu0  ;;  %6380 = vtanh.f32 %v2820_v21  ;;  %v7344_v23 = vld [vmem:[#allocation8] ss:$12 sps:$4 sm:$0xff]  }
 0x45b   :  { %6382 = vpow2.f32 %v5272_v51  ;;  %v7348_v36 = vld [vmem:[#allocation8 + $0x16c] ss:$12 sps:$4 sm:$0xff]   ;;  %v7636_v55 = vld [vmem:[#allocation22_spill] sm:$0xff] }
 0x465   :  { %v6379_v18 = vpop.eup %6378 }
 0x466   :  { %v2830_v0 = vadd.f32 1.0, %v6379_v18 }
 0x467   :  { %v6381_v4 = vpop.eup %6380 }
 0x468   :  { %6384 = vrcp.f32 %v2830_v0  ;;  %v2823_v45 = vmul.f32 %v6381_v4, %v2822_v63  ;;  %v6383_v8 = vpop.eup %6382 }
 0x469   :  { %v2837_v2 = vadd.f32 1.0, %v6383_v8 }
 0x46a   :  { %v7251_v22 = vadd.f32 %v2824_v41, %v2823_v45  ;;  %v7637_v45 = vld [vmem:[#allocation24_spill] sm:$0xff] }
 0x46b   :  { %6386 = vrcp.f32 %v2837_v2 }
 0x46c   :  { %2848 = vst [vmem:[#allocation12 + $0x30] sm:$0xff] %v7251_v22  ;;  %v2850_v53 = vpack.c.bf16 %v7251_v22, %v7251_v22 }
 0x46e   :  { %3044 = vmatmul.mubr.bf16.vlgmr.msra.gmra.mxu1 %v2850_v53  ;;  %5802 = vmatmul.mubr.bf16.vlgmr.msra.gmra.mxu0 %v2850_v53 }
 0x46f   :  { %3254 = vmatpush1.bf16.msra.mxu1 %v7075_v3  ;;  %5806 = vmatpush3.bf16.msra.mxu0 %v6206_v54 }
 0x470   :  { %3255 = vmatprep.subr.bf16.mxu1 %v7080_v7  ;;  %5807 = vmatprep.subr.bf16.mxu0 %v7630_v61 }
 0x471   :  { %3285 = vmatprep.mubr.bf16.mxu1 %v7631_v48  ;;  %5821 = vmatprep.mubr.msk.bf16.mxu0 %vm6628_vm0, %v7630_v61 }
 0x473   :  { %3256 = vmatpush1.bf16.msra.mxu1 %v7083_v49  ;;  %5808 = vmatpush3.bf16.msra.mxu0 %v6207_v58  ;;  %v6211_v49 = vld [vmem:[#allocation8 + $0xf8] ss:$12 sps:$4 sm:$0xff]  }
 0x474   :  { %3257 = vmatprep.subr.bf16.mxu1 %v7087_v43  ;;  %5809 = vmatprep.subr.bf16.mxu0 %v7630_v61 }
 0x475   :  { %v6385_v3 = vpop.eup %6384 }
 0x476   :  { %v2841_v7 = vmul.f32 %v6385_v3, %v2840_v26  ;;  %v7354_v3 = vld [vmem:[#allocation11] sm:$0xff] }
 0x477   :  { %3258 = vmatpush1.bf16.msra.mxu1 %v7093_v62  ;;  %5810 = vmatpush3.bf16.msra.mxu0 %v6208_v57  ;;  %v6212_v62 = vld [vmem:[#allocation8 + $0xe0] ss:$12 sps:$4 sm:$0xff]  }
 0x478   :  { %v2842_v14 = vadd.f32 %v2841_v7, %v7635_v9  ;;  %3259 = vmatprep.subr.bf16.mxu1 %v7098_v42  ;;  %5811 = vmatprep.subr.bf16.mxu0 %v7630_v61  ;;  %v6387_v43 = vpop.eup %6386 }
 0x479   :  { %v2844_v42 = vsub.f32 1.0, %v6387_v43 }
 0x47a   :  { %6388 = vtanh.f32 %v2842_v14 }
 0x47b   :  { %3260 = vmatpush1.bf16.msra.mxu1 %v7101_v10  ;;  %5812 = vmatpush3.bf16.msra.mxu0 %v6209_v60  ;;  %v7638_v60 = vld [vmem:[#allocation21_spill] sm:$0xff] }
 0x47c   :  { %3261 = vmatprep.subr.bf16.mxu1 %v7106_v56  ;;  %5813 = vmatprep.subr.bf16.mxu0 %v7630_v61  ;;  %v6213_v56 = vld [vmem:[#allocation8 + $0xc8] ss:$12 sps:$4 sm:$0xff]  }
 0x47f   :  { %3262 = vmatpush1.bf16.msra.mxu1 %v7109_v52  ;;  %5814 = vmatpush3.bf16.msra.mxu0 %v6210_v13 }
 0x480   :  { %3263 = vmatprep.subr.bf16.mxu1 %v7113_v39  ;;  %5815 = vmatprep.subr.bf16.mxu0 %v7630_v61  ;;  %v2846_v39 = vmul.f32 %v6387_v43, %v7209_v35  ;;  %v7299_v35 = vld [vmem:[#allocation8 + $0x94] ss:$12 sps:$4 sm:$0xff]  }
 0x483   :  { %3264 = vmatpush1.bf16.msra.mxu1 %v7116_v34  ;;  %5816 = vmatpush3.bf16.msra.mxu0 %v6211_v49 }
 0x484   :  { %3265 = vmatprep.subr.bf16.mxu1 %v7120_v44  ;;  %5817 = vmatprep.subr.bf16.mxu0 %v7630_v61 }
 0x487   :  { %v6389_v10 = vpop.eup %6388  ;;  %3266 = vmatpush1.bf16.msra.mxu1 %v7123_v50  ;;  %5818 = vmatpush3.bf16.msra.mxu0 %v6212_v62  ;;  %v7293_v50 = vld [vmem:[#allocation8 + $0xac] ss:$12 sps:$4 sm:$0xff]  }
 0x488   :  { %3267 = vmatprep.subr.bf16.mxu1 %v7127_v6  ;;  %5819 = vmatprep.subr.bf16.mxu0 %v7630_v61  ;;  %v2845_v52 = vmul.f32 %v6389_v10, %v2844_v42  ;;  %v7295_v6 = vld [vmem:[#allocation8 + $0xa8] ss:$12 sps:$4 sm:$0xff]  }
 0x48a   :  { %v7283_v34 = vadd.f32 %v2846_v39, %v2845_v52 }
 0x48b   :  { %3268 = vmatpush1.bf16.msra.mxu1 %v7130_v16  ;;  %5820 = vmatpush3.bf16.msra.mxu0 %v6213_v56  ;;  %v6217_v16 = vld [vmem:[#allocation8 + $0xb0] ss:$12 sps:$4 sm:$0xff]   ;;  %v7639_v56 = vld [vmem:[#allocation23_spill] sm:$0xff] }
 0x48c   :  { %2849 = vst [vmem:[#allocation12 + $0x48] sm:$0xff] %v7283_v34  ;;  %v3092_v44 = vpack.c.bf16 %v7283_v34, %v7283_v34  ;;  %5825 = vmatprep.subr.bf16.mxu0 %v7630_v61  ;;  %3547 = vmatprep.subr.bf16.mxu1 %v7293_v50 }
 0x48e   :  { %3286 = vmatmul.mubr.bf16.vlgmr.msra.gmra.mxu1 %v3092_v44  ;;  %5822 = vmatmul.mubr.bf16.vlgmr.msra.gmra.mxu0 %v3092_v44 }
 0x48f   :  { %3579 = vmatprep.mubr.bf16.mxu1 %v7631_v48  ;;  %5841 = vmatprep.mubr.msk.bf16.mxu0 %vm6628_vm0, %v7630_v61 }
 0x490   :  { %3548 = vmatpush1.bf16.msra.mxu1 %v7295_v6  ;;  %5826 = vmatpush3.bf16.msra.mxu0 %v6217_v16  ;;  %v7640_v16 = vld [vmem:[#allocation41_spill] sm:$0xff] }
 0x491   :  { %5827 = vmatprep.subr.bf16.mxu0 %v7630_v61  ;;  %3549 = vmatprep.subr.bf16.mxu1 %v7299_v35 }
 0x494   :  { %3550 = vmatpush1.bf16.msra.mxu1 %v7302_v33  ;;  %5828 = vmatpush3.bf16.msra.mxu0 %v6221_v17 }
 0x495   :  { %5829 = vmatprep.subr.bf16.mxu0 %v7630_v61  ;;  %3551 = vmatprep.subr.bf16.mxu1 %v7306_v5 }
 0x498   :  { %3552 = vmatpush1.bf16.msra.mxu1 %v7309_v11  ;;  %5830 = vmatpush3.bf16.msra.mxu0 %v6225_v12 }
 0x499   :  { %5831 = vmatprep.subr.bf16.mxu0 %v7630_v61  ;;  %3553 = vmatprep.subr.bf16.mxu1 %v7313_v1 }
 0x49c   :  { %3554 = vmatpush1.bf16.msra.mxu1 %v7316_v25  ;;  %5832 = vmatpush3.bf16.msra.mxu0 %v6229_v28 }
 0x49d   :  { %5833 = vmatprep.subr.bf16.mxu0 %v7630_v61  ;;  %3555 = vmatprep.subr.bf16.mxu1 %v7320_v38 }
 0x4a0   :  { %3556 = vmatpush1.bf16.msra.mxu1 %v7323_v59  ;;  %5834 = vmatpush3.bf16.msra.mxu0 %v6233_v19 }
 0x4a1   :  { %5835 = vmatprep.subr.bf16.mxu0 %v7630_v61  ;;  %3557 = vmatprep.subr.bf16.mxu1 %v7327_v47 }
 0x4a4   :  { %3558 = vmatpush1.bf16.msra.mxu1 %v7330_v24  ;;  %5836 = vmatpush3.bf16.msra.mxu0 %v6237_v15 }
 0x4a5   :  { %5837 = vmatprep.subr.bf16.mxu0 %v7630_v61  ;;  %3559 = vmatprep.subr.bf16.mxu1 %v7334_v29 }
 0x4a8   :  { %3560 = vmatpush1.bf16.msra.mxu1 %v7337_v31  ;;  %5838 = vmatpush3.bf16.msra.mxu0 %v6241_v32 }
 0x4a9   :  { %5839 = vmatprep.subr.bf16.mxu0 %v7630_v61  ;;  %3561 = vmatprep.subr.bf16.mxu1 %v7341_v27 }
 0x4ac   :  { %3562 = vmatpush1.bf16.msra.mxu1 %v7344_v23  ;;  %5840 = vmatpush3.bf16.msra.mxu0 %v6245_v30 }
 0x4ad   :  { %5845 = vmatprep.subr.bf16.mxu0 %v7630_v61  ;;  %3789 = vmatprep.subr.bf16.mxu1 %v7348_v36 }
 0x52e   :  { %v3045_v21 = vpop.f32.mrf.mxu1  ;;  %v3086_v37 = vpop.f32.mrf.mxu0 }
 0x52f   :  { %v3340_v20 = vadd.f32 %v3045_v21, %v7636_v55  ;;  %v3354_v7 = vadd.f32 %v7354_v3, %v3086_v37 }
 0x530   :  { %v3047_v40 = vpop.f32.mrf.mxu1  ;;  %v5803_v51 = vpop.f32.mrf.mxu0 }
 0x531   :  { %v5321_v46 = vmul.f32 -1.442695, %v3340_v20  ;;  %v3347_v41 = vadd.f32 %v3047_v40, %v7637_v45  ;;  %v7363_v20 = vld [vmem:[#allocation8 + $0x168] ss:$12 sps:$4 sm:$0xff]   ;;  %v6249_v40 = vld [vmem:[#allocation8 + $0x170] ss:$12 sps:$4 sm:$0xff]  }
 0x532   :  { %v3049_v18 = vpop.f32.mrf.mxu1  ;;  %v3089_v0 = vpop.f32.mrf.mxu0  ;;  %v7381_v45 = vld [vmem:[#allocation8 + $0x138] ss:$12 sps:$4 sm:$0xff]  }
 0x533   :  { %6390 = vpow2.f32 %v5321_v46  ;;  %v5322_v54 = vmul.f32 -1.442695, %v3347_v41  ;;  %v7368_v46 = vld [vmem:[#allocation8 + $0x154] ss:$12 sps:$4 sm:$0xff]   ;;  %v7371_v0 = vld [vmem:[#allocation8 + $0x150] ss:$12 sps:$4 sm:$0xff]  }
 0x534   :  { %v3050_v63 = vpop.f32.mrf.mxu1  ;;  %v5804_v4 = vpop.f32.mrf.mxu0  ;;  %v6257_v41 = vld [vmem:[#allocation8 + $0x140] ss:$12 sps:$4 sm:$0xff]  }
 0x535   :  { %6392 = vpow2.f32 %v5322_v54  ;;  %v7375_v63 = vld [vmem:[#allocation8 + $0x13c] ss:$12 sps:$4 sm:$0xff]   ;;  %v7383_v54 = vld [vmem:[#allocation11 + $0x8] sm:$0xff] }
 0x540   :  { %v6391_v53 = vpop.eup %6390 }
 0x541   :  { %v3344_v8 = vadd.f32 1.0, %v6391_v53 }
 0x542   :  { %v6393_v58 = vpop.eup %6392 }
 0x543   :  { %6394 = vrcp.f32 %v3344_v8  ;;  %v3351_v2 = vadd.f32 1.0, %v6393_v58  ;;  %v7388_v8 = vld [vmem:[#allocation8 + $0x124] ss:$12 sps:$4 sm:$0xff]  }
 0x545   :  { %6396 = vrcp.f32 %v3351_v2 }
 0x54e   :  { %v3287_v57 = vpop.f32.mrf.mxu1  ;;  %v3328_v26 = vpop.f32.mrf.mxu0 }
 0x54f   :  { %v3362_v9 = vadd.f32 %v3287_v57, %v7638_v60  ;;  %v3376_v53 = vadd.f32 %v7383_v54, %v3328_v26  ;;  %v7391_v57 = vld [vmem:[#allocation8 + $0x120] ss:$12 sps:$4 sm:$0xff]  }
 0x550   :  { %v6395_v14 = vpop.eup %6394  ;;  %v3289_v13 = vpop.f32.mrf.mxu1  ;;  %v7641_v60 = vld [vmem:[#allocation42_spill] sm:$0xff]  ;;  %v7396_v26 = vld [vmem:[#allocation8 + $0x10c] ss:$12 sps:$4 sm:$0xff]  }
 0x551   :  { %v5823_v49 = vpop.f32.mrf.mxu0  ;;  %v3355_v43 = vmul.f32 %v6395_v14, %v3354_v7  ;;  %v5323_v62 = vmul.f32 -1.442695, %v3362_v9  ;;  %v3369_v17 = vadd.f32 %v3289_v13, %v7640_v16  ;;  %v6261_v7 = vld [vmem:[#allocation8 + $0x128] ss:$12 sps:$4 sm:$0xff]   ;;  %v6265_v13 = vld [vmem:[#allocation8 + $0x110] ss:$12 sps:$4 sm:$0xff]  }
 0x552   :  { %v3291_v42 = vpop.f32.mrf.mxu1  ;;  %v6397_v28 = vpop.eup %6396  ;;  %v7399_v14 = vld [vmem:[#allocation8 + $0x108] ss:$12 sps:$4 sm:$0xff]  }
 0x553   :  { %v3331_v10 = vpop.f32.mrf.mxu0  ;;  %v3356_v52 = vadd.f32 %v3355_v43, %v7639_v56  ;;  %6398 = vpow2.f32 %v5323_v62  ;;  %v5324_v12 = vmul.f32 -1.442695, %v3369_v17  ;;  %v3358_v32 = vsub.f32 1.0, %v6397_v28  ;;  %v7403_v49 = vld [vmem:[#allocation8 + $0xf4] ss:$12 sps:$4 sm:$0xff]  }
 0x554   :  { %v3292_v39 = vpop.f32.mrf.mxu1  ;;  %v3360_v37 = vmul.f32 %v6397_v28, %v7251_v22  ;;  %v6253_v22 = vld [vmem:[#allocation8 + $0x158] ss:$12 sps:$4 sm:$0xff]   ;;  %v7406_v43 = vld [vmem:[#allocation8 + $0xf0] ss:$12 sps:$4 sm:$0xff]   ;;  %v7420_v17 = vld [vmem:[#allocation8 + $0xc0] ss:$12 sps:$4 sm:$0xff]  }
 0x555   :  { %v5824_v44 = vpop.f32.mrf.mxu0  ;;  %6400 = vtanh.f32 %v3356_v52  ;;  %v6269_v62 = vld [vmem:[#allocation8 + $0xf8] ss:$12 sps:$4 sm:$0xff]   ;;  %v7410_v42 = vld [vmem:[#allocation8 + $0xdc] ss:$12 sps:$4 sm:$0xff]   ;;  %v6273_v52 = vld [vmem:[#allocation8 + $0xe0] ss:$12 sps:$4 sm:$0xff]  }
 0x556   :  { %6402 = vpow2.f32 %v5324_v12  ;;  %v7413_v56 = vld [vmem:[#allocation8 + $0xd8] ss:$12 sps:$4 sm:$0xff]   ;;  %v6277_v12 = vld [vmem:[#allocation8 + $0xc8] ss:$12 sps:$4 sm:$0xff]  }
 0x557   :  { %v7417_v39 = vld [vmem:[#allocation8 + $0xc4] ss:$12 sps:$4 sm:$0xff]  }
 0x560   :  { %v6399_v19 = vpop.eup %6398 }
 0x561   :  { %v3366_v15 = vadd.f32 1.0, %v6399_v19 }
 0x562   :  { %v6401_v30 = vpop.eup %6400 }
 0x563   :  { %6404 = vrcp.f32 %v3366_v15  ;;  %v3359_v21 = vmul.f32 %v6401_v30, %v3358_v32  ;;  %v6403_v18 = vpop.eup %6402  ;;  %v6279_v30 = vld [vmem:[#allocation8 + $0x98] ss:$12 sps:$4 sm:$0xff]  }
 0x564   :  { %v3373_v4 = vadd.f32 1.0, %v6403_v18  ;;  %v6284_v18 = vld [vmem:[#allocation8 + $0x20] ss:$12 sps:$4 sm:$0xff]  }
 0x565   :  { %v7361_v55 = vadd.f32 %v3360_v37, %v3359_v21  ;;  %v6280_v21 = vld [vmem:[#allocation8 + $0x80] ss:$12 sps:$4 sm:$0xff]   ;;  %v6281_v37 = vld [vmem:[#allocation8 + $0x68] ss:$12 sps:$4 sm:$0xff]  }
 0x566   :  { %6406 = vrcp.f32 %v3373_v4 }
 0x567   :  { %3384 = vst [vmem:[#allocation12 + $0x40] sm:$0xff] %v7361_v55  ;;  %v3386_v51 = vpack.c.bf16 %v7361_v55, %v7361_v55 }
 0x569   :  { %3580 = vmatmul.mubr.bf16.vlgmr.msra.gmra.mxu1 %v3386_v51  ;;  %5842 = vmatmul.mubr.bf16.vlgmr.msra.gmra.mxu0 %v3386_v51  ;;  %v6283_v51 = vld [vmem:[#allocation8 + $0x38] ss:$12 sps:$4 sm:$0xff]  }
 0x56a   :  { %3790 = vmatpush1.bf16.msra.mxu1 %v7363_v20  ;;  %5846 = vmatpush3.bf16.msra.mxu0 %v6249_v40  ;;  %v6282_v40 = vld [vmem:[#allocation8 + $0x50] ss:$12 sps:$4 sm:$0xff]  }
 0x56b   :  { %3791 = vmatprep.subr.bf16.mxu1 %v7368_v46  ;;  %5847 = vmatprep.subr.bf16.mxu0 %v7630_v61 }
 0x56c   :  { %3821 = vmatprep.mubr.bf16.mxu1 %v7631_v48  ;;  %5861 = vmatprep.mubr.msk.bf16.mxu0 %vm6628_vm0, %v7630_v61 }
 0x56e   :  { %3792 = vmatpush1.bf16.msra.mxu1 %v7371_v0  ;;  %5848 = vmatpush3.bf16.msra.mxu0 %v6253_v22  ;;  %v6285_v22 = vld [vmem:[#allocation8 + $0x8] ss:$12 sps:$4 sm:$0xff]  }
 0x56f   :  { %3793 = vmatprep.subr.bf16.mxu1 %v7375_v63  ;;  %5849 = vmatprep.subr.bf16.mxu0 %v7630_v61 }
 0x570   :  { %v6405_v58 = vpop.eup %6404 }
 0x571   :  { %v3377_v2 = vmul.f32 %v6405_v58, %v3376_v53  ;;  %v7642_v53 = vld [vmem:[#allocation26_spill] sm:$0xff] }
 0x572   :  { %3794 = vmatpush1.bf16.msra.mxu1 %v7381_v45  ;;  %5850 = vmatpush3.bf16.msra.mxu0 %v6257_v41 }
 0x573   :  { %v3378_v9 = vadd.f32 %v3377_v2, %v7641_v60  ;;  %3795 = vmatprep.subr.bf16.mxu1 %v7388_v8  ;;  %5851 = vmatprep.subr.bf16.mxu0 %v7630_v61  ;;  %v6407_v10 = vpop.eup %6406 }
 0x574   :  { %v3380_v44 = vsub.f32 1.0, %v6407_v10  ;;  %v3382_v19 = vmul.f32 %v6407_v10, %v7283_v34  ;;  %v6278_v34 = vld [vmem:[#allocation8 + $0xb0] ss:$12 sps:$4 sm:$0xff]  }
 0x575   :  { %6408 = vtanh.f32 %v3378_v9 }
 0x576   :  { %3796 = vmatpush1.bf16.msra.mxu1 %v7391_v57  ;;  %5852 = vmatpush3.bf16.msra.mxu0 %v6261_v7 }
 0x577   :  { %3797 = vmatprep.subr.bf16.mxu1 %v7396_v26  ;;  %5853 = vmatprep.subr.bf16.mxu0 %v7630_v61 }
 0x57a   :  { %3798 = vmatpush1.bf16.msra.mxu1 %v7399_v14  ;;  %5854 = vmatpush3.bf16.msra.mxu0 %v6265_v13 }
 0x57b   :  { %3799 = vmatprep.subr.bf16.mxu1 %v7403_v49  ;;  %5855 = vmatprep.subr.bf16.mxu0 %v7630_v61 }
 0x57e   :  { %3800 = vmatpush1.bf16.msra.mxu1 %v7406_v43  ;;  %5856 = vmatpush3.bf16.msra.mxu0 %v6269_v62 }
 0x57f   :  { %3801 = vmatprep.subr.bf16.mxu1 %v7410_v42  ;;  %5857 = vmatprep.subr.bf16.mxu0 %v7630_v61 }
 0x582   :  { %v6409_v16 = vpop.eup %6408  ;;  %3802 = vmatpush1.bf16.msra.mxu1 %v7413_v56  ;;  %5858 = vmatpush3.bf16.msra.mxu0 %v6273_v52  ;;  %v7643_v52 = vld [vmem:[#allocation28_spill] sm:$0xff] }
 0x583   :  { %3803 = vmatprep.subr.bf16.mxu1 %v7417_v39  ;;  %5859 = vmatprep.subr.bf16.mxu0 %v7630_v61  ;;  %v3381_v28 = vmul.f32 %v6409_v16, %v3380_v44 }
 0x585   :  { %v7425_v15 = vadd.f32 %v3382_v19, %v3381_v28 }
 0x586   :  { %3804 = vmatpush1.bf16.msra.mxu1 %v7420_v17  ;;  %5860 = vmatpush3.bf16.msra.mxu0 %v6277_v12 }
 0x587   :  { %3385 = vst [vmem:[#allocation12 + $0x38] sm:$0xff] %v7425_v15  ;;  %v3628_v32 = vpack.c.bf16 %v7425_v15, %v7425_v15  ;;  %4083 = vmatprep.subr.bf16.mxu1 %v7293_v50  ;;  %5865 = vmatprep.subr.bf16.mxu0 %v7630_v61 }
 0x589   :  { %3822 = vmatmul.mubr.bf16.vlgmr.msra.gmra.mxu1 %v3628_v32  ;;  %5862 = vmatmul.mubr.bf16.vlgmr.msra.gmra.mxu0 %v3628_v32 }
 0x58a   :  { %4084 = vmatpush1.bf16.msra.mxu1 %v7295_v6  ;;  %4115 = vmatprep.mubr.bf16.mxu1 %v7631_v48 }
 0x58b   :  { %4085 = vmatprep.subr.bf16.mxu1 %v7299_v35  ;;  %5881 = vmatprep.mubr.msk.bf16.mxu0 %vm6628_vm0, %v7630_v61 }
 0x58c   :  { %5866 = vmatpush3.bf16.msra.mxu0 %v6278_v34 }
 0x58d   :  { %5867 = vmatprep.subr.bf16.mxu0 %v7630_v61 }
 0x58e   :  { %4086 = vmatpush1.bf16.msra.mxu1 %v7302_v33 }
 0x58f   :  { %4087 = vmatprep.subr.bf16.mxu1 %v7306_v5 }
 0x590   :  { %5868 = vmatpush3.bf16.msra.mxu0 %v6279_v30 }
 0x591   :  { %5869 = vmatprep.subr.bf16.mxu0 %v7630_v61 }
 0x592   :  { %4088 = vmatpush1.bf16.msra.mxu1 %v7309_v11 }
 0x593   :  { %4089 = vmatprep.subr.bf16.mxu1 %v7313_v1 }
 0x594   :  { %5870 = vmatpush3.bf16.msra.mxu0 %v6280_v21 }
 0x595   :  { %5871 = vmatprep.subr.bf16.mxu0 %v7630_v61 }
 0x596   :  { %4090 = vmatpush1.bf16.msra.mxu1 %v7316_v25 }
 0x597   :  { %4091 = vmatprep.subr.bf16.mxu1 %v7320_v38 }
 0x598   :  { %5872 = vmatpush3.bf16.msra.mxu0 %v6281_v37  ;;  %v7644_v37 = vld [vmem:[#allocation19_spill] sm:$0xff] }
 0x599   :  { %5873 = vmatprep.subr.bf16.mxu0 %v7630_v61 }
 0x59a   :  { %4092 = vmatpush1.bf16.msra.mxu1 %v7323_v59 }
 0x59b   :  { %4093 = vmatprep.subr.bf16.mxu1 %v7327_v47 }
 0x59c   :  { %5874 = vmatpush3.bf16.msra.mxu0 %v6282_v40 }
 0x59d   :  { %5875 = vmatprep.subr.bf16.mxu0 %v7630_v61 }
 0x59e   :  { %4094 = vmatpush1.bf16.msra.mxu1 %v7330_v24 }
 0x59f   :  { %4095 = vmatprep.subr.bf16.mxu1 %v7334_v29 }
 0x5a0   :  { %5876 = vmatpush3.bf16.msra.mxu0 %v6283_v51 }
 0x5a1   :  { %5877 = vmatprep.subr.bf16.mxu0 %v7630_v61 }
 0x5a2   :  { %4096 = vmatpush1.bf16.msra.mxu1 %v7337_v31 }
 0x5a3   :  { %4097 = vmatprep.subr.bf16.mxu1 %v7341_v27 }
 0x5a4   :  { %5878 = vmatpush3.bf16.msra.mxu0 %v6284_v18 }
 0x5a5   :  { %5879 = vmatprep.subr.bf16.mxu0 %v7630_v61 }
 0x5a6   :  { %4098 = vmatpush1.bf16.msra.mxu1 %v7344_v23 }
 0x5a7   :  { %4325 = vmatprep.subr.bf16.mxu1 %v7348_v36 }
 0x5a8   :  { %5880 = vmatpush3.bf16.msra.mxu0 %v6285_v22 }
 0x5a9   :  { %5885 = vmatprep.subr.bf16.mxu0 %v7630_v61 }
 0x629   :  { %v3581_v4 = vpop.f32.mrf.mxu1  ;;  %v3622_v41 = vpop.f32.mrf.mxu0 }
 0x62a   :  { %v3876_v58 = vadd.f32 %v3581_v4, %v7642_v53  ;;  %v3890_v21 = vadd.f32 %v7354_v3, %v3622_v41 }
 0x62b   :  { %v3583_v2 = vpop.f32.mrf.mxu1  ;;  %v5843_v7 = vpop.f32.mrf.mxu0 }
 0x62c   :  { %v5373_v60 = vmul.f32 -1.442695, %v3876_v58  ;;  %v3883_v44 = vadd.f32 %v3583_v2, %v7643_v52  ;;  %v7645_v7 = vld [vmem:[#allocation27_spill] sm:$0xff] }
 0x62d   :  { %v3585_v9 = vpop.f32.mrf.mxu1  ;;  %v3625_v13 = vpop.f32.mrf.mxu0 }
 0x62e   :  { %6410 = vpow2.f32 %v5373_v60  ;;  %v5374_v16 = vmul.f32 -1.442695, %v3883_v44 }
 0x62f   :  { %v3586_v62 = vpop.f32.mrf.mxu1  ;;  %v5844_v10 = vpop.f32.mrf.mxu0 }
 0x630   :  { %6412 = vpow2.f32 %v5374_v16  ;;  %v7646_v62 = vld [vmem:[#allocation39_spill] sm:$0xff] }
 0x63b   :  { %v6411_v12 = vpop.eup %6410 }
 0x63c   :  { %v3880_v28 = vadd.f32 1.0, %v6411_v12 }
 0x63d   :  { %v6413_v19 = vpop.eup %6412 }
 0x63e   :  { %6414 = vrcp.f32 %v3880_v28  ;;  %v3887_v32 = vadd.f32 1.0, %v6413_v19 }
 0x640   :  { %6416 = vrcp.f32 %v3887_v32 }
 0x649   :  { %v3823_v34 = vpop.f32.mrf.mxu1  ;;  %v3864_v30 = vpop.f32.mrf.mxu0 }
 0x64a   :  { %v3898_v40 = vadd.f32 %v3823_v34, %v7644_v37 }
 0x64b   :  { %v6415_v51 = vpop.eup %6414  ;;  %v3825_v18 = vpop.f32.mrf.mxu1 }
 0x64c   :  { %v5863_v22 = vpop.f32.mrf.mxu0  ;;  %v3891_v4 = vmul.f32 %v6415_v51, %v3890_v21  ;;  %v5375_v53 = vmul.f32 -1.442695, %v3898_v40  ;;  %v3905_v10 = vadd.f32 %v3825_v18, %v7646_v62  ;;  %v6286_v21 = vld [vmem:[#allocation8 + $0x170] ss:$12 sps:$4 sm:$0xff]   ;;  %v6287_v51 = vld [vmem:[#allocation8 + $0x158] ss:$12 sps:$4 sm:$0xff]  }
 0x64d   :  { %v3827_v58 = vpop.f32.mrf.mxu1  ;;  %v6417_v41 = vpop.eup %6416  ;;  %v6288_v18 = vld [vmem:[#allocation8 + $0x140] ss:$12 sps:$4 sm:$0xff]   ;;  %v3912_v22 = vadd.f32 %v7383_v54, %v3864_v30  ;;  %v6290_v30 = vld [vmem:[#allocation8 + $0x110] ss:$12 sps:$4 sm:$0xff]  }
 0x64e   :  { %v3867_v2 = vpop.f32.mrf.mxu0  ;;  %v3892_v60 = vadd.f32 %v3891_v4, %v7645_v7  ;;  %6418 = vpow2.f32 %v5375_v53  ;;  %v5376_v52 = vmul.f32 -1.442695, %v3905_v10  ;;  %v3894_v12 = vsub.f32 1.0, %v6417_v41  ;;  %v6289_v58 = vld [vmem:[#allocation8 + $0x128] ss:$12 sps:$4 sm:$0xff]  }
 0x64f   :  { %v3828_v9 = vpop.f32.mrf.mxu1  ;;  %v3896_v32 = vmul.f32 %v6417_v41, %v7361_v55  ;;  %v7647_v2 = vld [vmem:[#allocation40_spill] sm:$0xff] }
 0x650   :  { %v5864_v13 = vpop.f32.mrf.mxu0  ;;  %6420 = vtanh.f32 %v3892_v60  ;;  %v6291_v60 = vld [vmem:[#allocation8 + $0xf8] ss:$12 sps:$4 sm:$0xff]  }
 0x651   :  { %6422 = vpow2.f32 %v5376_v52  ;;  %v6292_v13 = vld [vmem:[#allocation8 + $0xe0] ss:$12 sps:$4 sm:$0xff]   ;;  %v6293_v52 = vld [vmem:[#allocation8 + $0xc8] ss:$12 sps:$4 sm:$0xff]  }
 0x65b   :  { %v6419_v44 = vpop.eup %6418 }
 0x65c   :  { %v3902_v16 = vadd.f32 1.0, %v6419_v44 }
 0x65d   :  { %v6421_v28 = vpop.eup %6420 }
 0x65e   :  { %6424 = vrcp.f32 %v3902_v16  ;;  %v3895_v19 = vmul.f32 %v6421_v28, %v3894_v12  ;;  %v6423_v40 = vpop.eup %6422 }
 0x65f   :  { %v3909_v55 = vadd.f32 1.0, %v6423_v40 }
 0x660   :  { %v7467_v34 = vadd.f32 %v3896_v32, %v3895_v19  ;;  %v7649_v19 = vld [vmem:[#allocation31_spill] sm:$0xff] }
 0x661   :  { %6426 = vrcp.f32 %v3909_v55 }
 0x662   :  { %3920 = vst [vmem:[#allocation12 + $0x50] sm:$0xff] %v7467_v34  ;;  %v3922_v37 = vpack.c.bf16 %v7467_v34, %v7467_v34 }
 0x664   :  { %4116 = vmatmul.mubr.bf16.vlgmr.msra.gmra.mxu1 %v3922_v37  ;;  %5882 = vmatmul.mubr.bf16.vlgmr.msra.gmra.mxu0 %v3922_v37 }
 0x665   :  { %4326 = vmatpush1.bf16.msra.mxu1 %v7363_v20  ;;  %5886 = vmatpush3.bf16.msra.mxu0 %v6286_v21 }
 0x666   :  { %4327 = vmatprep.subr.bf16.mxu1 %v7368_v46  ;;  %5887 = vmatprep.subr.bf16.mxu0 %v7630_v61 }
 0x667   :  { %4357 = vmatprep.mubr.bf16.mxu1 %v7631_v48  ;;  %5901 = vmatprep.mubr.msk.bf16.mxu0 %vm6628_vm0, %v7630_v61 }
 0x669   :  { %4328 = vmatpush1.bf16.msra.mxu1 %v7371_v0  ;;  %5888 = vmatpush3.bf16.msra.mxu0 %v6287_v51 }
 0x66a   :  { %4329 = vmatprep.subr.bf16.mxu1 %v7375_v63  ;;  %5889 = vmatprep.subr.bf16.mxu0 %v7630_v61 }
 0x66b   :  { %v6425_v4 = vpop.eup %6424 }
 0x66c   :  { %v3913_v53 = vmul.f32 %v6425_v4, %v3912_v22 }
 0x66d   :  { %4330 = vmatpush1.bf16.msra.mxu1 %v7381_v45  ;;  %5890 = vmatpush3.bf16.msra.mxu0 %v6288_v18 }
 0x66e   :  { %v3914_v7 = vadd.f32 %v3913_v53, %v7647_v2  ;;  %4331 = vmatprep.subr.bf16.mxu1 %v7388_v8  ;;  %5891 = vmatprep.subr.bf16.mxu0 %v7630_v61  ;;  %v6427_v9 = vpop.eup %6426  ;;  %v7650_v53 = vld [vmem:[#allocation18_spill] sm:$0xff] }
 0x66f   :  { %v3916_v62 = vsub.f32 1.0, %v6427_v9  ;;  %v3918_v44 = vmul.f32 %v6427_v9, %v7425_v15 }
 0x670   :  { %6428 = vtanh.f32 %v3914_v7 }
 0x671   :  { %4332 = vmatpush1.bf16.msra.mxu1 %v7391_v57  ;;  %5892 = vmatpush3.bf16.msra.mxu0 %v6289_v58 }
 0x672   :  { %4333 = vmatprep.subr.bf16.mxu1 %v7396_v26  ;;  %5893 = vmatprep.subr.bf16.mxu0 %v7630_v61 }
 0x675   :  { %4334 = vmatpush1.bf16.msra.mxu1 %v7399_v14  ;;  %5894 = vmatpush3.bf16.msra.mxu0 %v6290_v30 }
 0x676   :  { %4335 = vmatprep.subr.bf16.mxu1 %v7403_v49  ;;  %5895 = vmatprep.subr.bf16.mxu0 %v7630_v61 }
 0x679   :  { %4336 = vmatpush1.bf16.msra.mxu1 %v7406_v43  ;;  %5896 = vmatpush3.bf16.msra.mxu0 %v6291_v60 }
 0x67a   :  { %4337 = vmatprep.subr.bf16.mxu1 %v7410_v42  ;;  %5897 = vmatprep.subr.bf16.mxu0 %v7630_v61 }
 0x67d   :  { %v6429_v10 = vpop.eup %6428  ;;  %4338 = vmatpush1.bf16.msra.mxu1 %v7413_v56  ;;  %5898 = vmatpush3.bf16.msra.mxu0 %v6292_v13 }
 0x67e   :  { %4339 = vmatprep.subr.bf16.mxu1 %v7417_v39  ;;  %5899 = vmatprep.subr.bf16.mxu0 %v7630_v61  ;;  %v3917_v41 = vmul.f32 %v6429_v10, %v3916_v62  ;;  %v7651_v10 = vld [vmem:[#allocation30_spill] sm:$0xff] }
 0x680   :  { %v7499_v16 = vadd.f32 %v3918_v44, %v3917_v41 }
 0x681   :  { %4340 = vmatpush1.bf16.msra.mxu1 %v7420_v17  ;;  %5900 = vmatpush3.bf16.msra.mxu0 %v6293_v52 }
 0x682   :  { %3921 = vst [vmem:[#allocation12 + $0x28] sm:$0xff] %v7499_v16  ;;  %v4164_v12 = vpack.c.bf16 %v7499_v16, %v7499_v16  ;;  %4619 = vmatprep.subr.bf16.mxu1 %v7293_v50  ;;  %5905 = vmatprep.subr.bf16.mxu0 %v7630_v61  ;;  %v6294_v50 = vld [vmem:[#allocation8 + $0xb0] ss:$12 sps:$4 sm:$0xff]  }
 0x684   :  { %4358 = vmatmul.mubr.bf16.vlgmr.msra.gmra.mxu1 %v4164_v12  ;;  %5902 = vmatmul.mubr.bf16.vlgmr.msra.gmra.mxu0 %v4164_v12  ;;  %v7652_v12 = vld [vmem:[#allocation37_spill] sm:$0xff] }
 0x685   :  { %4620 = vmatpush1.bf16.msra.mxu1 %v7295_v6  ;;  %4651 = vmatprep.mubr.bf16.mxu1 %v7631_v48  ;;  %v6295_v6 = vld [vmem:[#allocation8 + $0x98] ss:$12 sps:$4 sm:$0xff]  }
 0x686   :  { %4621 = vmatprep.subr.bf16.mxu1 %v7299_v35  ;;  %5921 = vmatprep.mubr.msk.bf16.mxu0 %vm6628_vm0, %v7630_v61  ;;  %v6296_v35 = vld [vmem:[#allocation8 + $0x80] ss:$12 sps:$4 sm:$0xff]  }
 0x687   :  { %5906 = vmatpush3.bf16.msra.mxu0 %v6294_v50 }
 0x688   :  { %5907 = vmatprep.subr.bf16.mxu0 %v7630_v61 }
 0x689   :  { %4622 = vmatpush1.bf16.msra.mxu1 %v7302_v33  ;;  %v6297_v33 = vld [vmem:[#allocation8 + $0x68] ss:$12 sps:$4 sm:$0xff]  }
 0x68a   :  { %4623 = vmatprep.subr.bf16.mxu1 %v7306_v5  ;;  %v6298_v5 = vld [vmem:[#allocation8 + $0x50] ss:$12 sps:$4 sm:$0xff]  }
 0x68b   :  { %5908 = vmatpush3.bf16.msra.mxu0 %v6295_v6 }
 0x68c   :  { %5909 = vmatprep.subr.bf16.mxu0 %v7630_v61 }
 0x68d   :  { %4624 = vmatpush1.bf16.msra.mxu1 %v7309_v11  ;;  %v6299_v11 = vld [vmem:[#allocation8 + $0x38] ss:$12 sps:$4 sm:$0xff]  }
 0x68e   :  { %4625 = vmatprep.subr.bf16.mxu1 %v7313_v1  ;;  %v6300_v1 = vld [vmem:[#allocation8 + $0x20] ss:$12 sps:$4 sm:$0xff]  }
 0x68f   :  { %5910 = vmatpush3.bf16.msra.mxu0 %v6296_v35 }
 0x690   :  { %5911 = vmatprep.subr.bf16.mxu0 %v7630_v61 }
 0x691   :  { %4626 = vmatpush1.bf16.msra.mxu1 %v7316_v25  ;;  %v6301_v25 = vld [vmem:[#allocation8 + $0x8] ss:$12 sps:$4 sm:$0xff]  }
 0x692   :  { %4627 = vmatprep.subr.bf16.mxu1 %v7320_v38 }
 0x693   :  { %5912 = vmatpush3.bf16.msra.mxu0 %v6297_v33 }
 0x694   :  { %5913 = vmatprep.subr.bf16.mxu0 %v7630_v61 }
 0x695   :  { %4628 = vmatpush1.bf16.msra.mxu1 %v7323_v59 }
 0x696   :  { %4629 = vmatprep.subr.bf16.mxu1 %v7327_v47  ;;  %v7648_v47 = vld [vmem:[#allocation29_spill] sm:$0xff] }
 0x697   :  { %5914 = vmatpush3.bf16.msra.mxu0 %v6298_v5 }
 0x698   :  { %5915 = vmatprep.subr.bf16.mxu0 %v7630_v61 }
 0x699   :  { %4630 = vmatpush1.bf16.msra.mxu1 %v7330_v24 }
 0x69a   :  { %4631 = vmatprep.subr.bf16.mxu1 %v7334_v29 }
 0x69b   :  { %5916 = vmatpush3.bf16.msra.mxu0 %v6299_v11 }
 0x69c   :  { %5917 = vmatprep.subr.bf16.mxu0 %v7630_v61 }
 0x69d   :  { %4632 = vmatpush1.bf16.msra.mxu1 %v7337_v31 }
 0x69e   :  { %4633 = vmatprep.subr.bf16.mxu1 %v7341_v27 }
 0x69f   :  { %5918 = vmatpush3.bf16.msra.mxu0 %v6300_v1 }
 0x6a0   :  { %5919 = vmatprep.subr.bf16.mxu0 %v7630_v61 }
 0x6a1   :  { %4634 = vmatpush1.bf16.msra.mxu1 %v7344_v23 }
 0x6a2   :  { %4861 = vmatprep.subr.bf16.mxu1 %v7348_v36 }
 0x6a3   :  { %5920 = vmatpush3.bf16.msra.mxu0 %v6301_v25 }
 0x6a4   :  { %5925 = vmatprep.subr.bf16.mxu0 %v7630_v61 }
 0x724   :  { %v4117_v38 = vpop.f32.mrf.mxu1  ;;  %v4158_v59 = vpop.f32.mrf.mxu0 }
 0x725   :  { %v4412_v24 = vadd.f32 %v4117_v38, %v7648_v47  ;;  %v4426_v4 = vadd.f32 %v7354_v3, %v4158_v59  ;;  %v6302_v47 = vld [vmem:[#allocation8 + $0x170] ss:$12 sps:$4 sm:$0xff]  }
 0x726   :  { %v4119_v29 = vpop.f32.mrf.mxu1  ;;  %v5883_v31 = vpop.f32.mrf.mxu0 }
 0x727   :  { %v5425_v27 = vmul.f32 -1.442695, %v4412_v24  ;;  %v4419_v32 = vadd.f32 %v4119_v29, %v7649_v19  ;;  %v6303_v31 = vld [vmem:[#allocation8 + $0x158] ss:$12 sps:$4 sm:$0xff]  }
 0x728   :  { %v4121_v23 = vpop.f32.mrf.mxu1  ;;  %v4161_v36 = vpop.f32.mrf.mxu0 }
 0x729   :  { %6430 = vpow2.f32 %v5425_v27  ;;  %v5426_v21 = vmul.f32 -1.442695, %v4419_v32  ;;  %v6304_v27 = vld [vmem:[#allocation8 + $0x140] ss:$12 sps:$4 sm:$0xff]  }
 0x72a   :  { %v4122_v15 = vpop.f32.mrf.mxu1  ;;  %v5884_v28 = vpop.f32.mrf.mxu0  ;;  %v7653_v36 = vld [vmem:[#allocation38_spill] sm:$0xff] }
 0x72b   :  { %6432 = vpow2.f32 %v5426_v21 }
 0x736   :  { %v6431_v37 = vpop.eup %6430 }
 0x737   :  { %v4416_v40 = vadd.f32 1.0, %v6431_v37 }
 0x738   :  { %v6433_v51 = vpop.eup %6432 }
 0x739   :  { %6434 = vrcp.f32 %v4416_v40  ;;  %v4423_v55 = vadd.f32 1.0, %v6433_v51 }
 0x73b   :  { %6436 = vrcp.f32 %v4423_v55  ;;  %v7655_v55 = vld [vmem:[#allocation34_spill] sm:$0xff] }
 0x744   :  { %v4359_v18 = vpop.f32.mrf.mxu1  ;;  %v4400_v22 = vpop.f32.mrf.mxu0 }
 0x745   :  { %v4434_v58 = vadd.f32 %v4359_v18, %v7650_v53  ;;  %v4448_v23 = vadd.f32 %v7383_v54, %v4400_v22 }
 0x746   :  { %v6435_v2 = vpop.eup %6434  ;;  %v4361_v7 = vpop.f32.mrf.mxu1 }
 0x747   :  { %v5903_v30 = vpop.f32.mrf.mxu0  ;;  %v4427_v60 = vmul.f32 %v6435_v2, %v4426_v4  ;;  %v5427_v9 = vmul.f32 -1.442695, %v4434_v58  ;;  %v4441_v50 = vadd.f32 %v4361_v7, %v7652_v12 }
 0x748   :  { %v4363_v13 = vpop.f32.mrf.mxu1  ;;  %v6437_v35 = vpop.eup %6436 }
 0x749   :  { %v4403_v62 = vpop.f32.mrf.mxu0  ;;  %v4428_v52 = vadd.f32 %v4427_v60, %v7651_v10  ;;  %6438 = vpow2.f32 %v5427_v9  ;;  %v5428_v6 = vmul.f32 -1.442695, %v4441_v50  ;;  %v4430_v11 = vsub.f32 1.0, %v6437_v35  ;;  %v7656_v9 = vld [vmem:[#allocation17_spill] sm:$0xff] }
 0x74a   :  { %v4364_v41 = vpop.f32.mrf.mxu1  ;;  %v4432_v38 = vmul.f32 %v6437_v35, %v7467_v34 }
 0x74b   :  { %v5904_v44 = vpop.f32.mrf.mxu0  ;;  %6440 = vtanh.f32 %v4428_v52 }
 0x74c   :  { %6442 = vpow2.f32 %v5428_v6  ;;  %v7657_v6 = vld [vmem:[#allocation33_spill] sm:$0xff] }
 0x756   :  { %v6439_v33 = vpop.eup %6438 }
 0x757   :  { %v4438_v5 = vadd.f32 1.0, %v6439_v33 }
 0x758   :  { %v6441_v1 = vpop.eup %6440 }
 0x759   :  { %6444 = vrcp.f32 %v4438_v5  ;;  %v4431_v25 = vmul.f32 %v6441_v1, %v4430_v11  ;;  %v6443_v29 = vpop.eup %6442  ;;  %v7658_v11 = vld [vmem:[#allocation35_spill] sm:$0xff] }
 0x75a   :  { %v4445_v34 = vadd.f32 1.0, %v6443_v29 }
 0x75b   :  { %v7541_v59 = vadd.f32 %v4432_v38, %v4431_v25 }
 0x75c   :  { %6446 = vrcp.f32 %v4445_v34 }
 0x75d   :  { %4456 = vst [vmem:[#allocation12 + $0x60] sm:$0xff] %v7541_v59  ;;  %v4458_v24 = vpack.c.bf16 %v7541_v59, %v7541_v59 }
 0x75f   :  { %4652 = vmatmul.mubr.bf16.vlgmr.msra.gmra.mxu1 %v4458_v24  ;;  %5922 = vmatmul.mubr.bf16.vlgmr.msra.gmra.mxu0 %v4458_v24 }
 0x760   :  { %4862 = vmatpush1.bf16.msra.mxu1 %v7363_v20  ;;  %5926 = vmatpush3.bf16.msra.mxu0 %v6302_v47 }
 0x761   :  { %4863 = vmatprep.subr.bf16.mxu1 %v7368_v46  ;;  %5927 = vmatprep.subr.bf16.mxu0 %v7630_v61 }
 0x762   :  { %4893 = vmatprep.mubr.bf16.mxu1 %v7631_v48  ;;  %5941 = vmatprep.mubr.msk.bf16.mxu0 %vm6628_vm0, %v7630_v61  ;;  %v6305_v48 = vld [vmem:[#allocation8 + $0x128] ss:$12 sps:$4 sm:$0xff]  }
 0x764   :  { %4864 = vmatpush1.bf16.msra.mxu1 %v7371_v0  ;;  %5928 = vmatpush3.bf16.msra.mxu0 %v6303_v31  ;;  %v6306_v0 = vld [vmem:[#allocation8 + $0x110] ss:$12 sps:$4 sm:$0xff]  }
 0x765   :  { %4865 = vmatprep.subr.bf16.mxu1 %v7375_v63  ;;  %5929 = vmatprep.subr.bf16.mxu0 %v7630_v61  ;;  %v6307_v63 = vld [vmem:[#allocation8 + $0xf8] ss:$12 sps:$4 sm:$0xff]  }
 0x766   :  { %v6445_v20 = vpop.eup %6444 }
 0x767   :  { %v4449_v46 = vmul.f32 %v6445_v20, %v4448_v23 }
 0x768   :  { %4866 = vmatpush1.bf16.msra.mxu1 %v7381_v45  ;;  %5930 = vmatpush3.bf16.msra.mxu0 %v6304_v27 }
 0x769   :  { %v4450_v15 = vadd.f32 %v4449_v46, %v7653_v36  ;;  %4867 = vmatprep.subr.bf16.mxu1 %v7388_v8  ;;  %5931 = vmatprep.subr.bf16.mxu0 %v7630_v61  ;;  %v6447_v45 = vpop.eup %6446  ;;  %v6308_v8 = vld [vmem:[#allocation8 + $0xe0] ss:$12 sps:$4 sm:$0xff]  }
 0x76a   :  { %v4454_v28 = vmul.f32 %v6447_v45, %v7499_v16 }
 0x76b   :  { %6448 = vtanh.f32 %v4450_v15  ;;  %v7659_v15 = vld [vmem:[#allocation36_spill] sm:$0xff] }
 0x76c   :  { %4868 = vmatpush1.bf16.msra.mxu1 %v7391_v57  ;;  %5932 = vmatpush3.bf16.msra.mxu0 %v6305_v48  ;;  %v4452_v57 = vsub.f32 1.0, %v6447_v45 }
 0x76d   :  { %4869 = vmatprep.subr.bf16.mxu1 %v7396_v26  ;;  %5933 = vmatprep.subr.bf16.mxu0 %v7630_v61 }
 0x770   :  { %4870 = vmatpush1.bf16.msra.mxu1 %v7399_v14  ;;  %5934 = vmatpush3.bf16.msra.mxu0 %v6306_v0  ;;  %v6309_v14 = vld [vmem:[#allocation8 + $0xc8] ss:$12 sps:$4 sm:$0xff]  }
 0x771   :  { %4871 = vmatprep.subr.bf16.mxu1 %v7403_v49  ;;  %5935 = vmatprep.subr.bf16.mxu0 %v7630_v61 }
 0x774   :  { %4872 = vmatpush1.bf16.msra.mxu1 %v7406_v43  ;;  %5936 = vmatpush3.bf16.msra.mxu0 %v6307_v63 }
 0x775   :  { %4873 = vmatprep.subr.bf16.mxu1 %v7410_v42  ;;  %5937 = vmatprep.subr.bf16.mxu0 %v7630_v61 }
 0x778   :  { %v6449_v26 = vpop.eup %6448  ;;  %4874 = vmatpush1.bf16.msra.mxu1 %v7413_v56  ;;  %5938 = vmatpush3.bf16.msra.mxu0 %v6308_v8 }
 0x779   :  { %4875 = vmatprep.subr.bf16.mxu1 %v7417_v39  ;;  %5939 = vmatprep.subr.bf16.mxu0 %v7630_v61  ;;  %v4453_v49 = vmul.f32 %v6449_v26, %v4452_v57  ;;  %v7654_v39 = vld [vmem:[#allocation32_spill] sm:$0xff] }
 0x77b   :  { %v7573_v43 = vadd.f32 %v4454_v28, %v4453_v49 }
 0x77c   :  { %4876 = vmatpush1.bf16.msra.mxu1 %v7420_v17  ;;  %5940 = vmatpush3.bf16.msra.mxu0 %v6309_v14 }
 0x77d   :  { %4457 = vst [vmem:[#allocation12 + $0x18] sm:$0xff] %v7573_v43  ;;  %v4700_v42 = vpack.c.bf16 %v7573_v43, %v7573_v43 }
 0x77f   :  { %4894 = vmatmul.mubr.bf16.vlgmr.msra.gmra.mxu1 %v4700_v42  ;;  %5942 = vmatmul.mubr.bf16.vlgmr.msra.gmra.mxu0 %v4700_v42 }
 0x81f   :  { %v4653_v56 = vpop.f32.mrf.mxu1  ;;  %v4694_v19 = vpop.f32.mrf.mxu0 }
 0x820   :  { %v4948_v32 = vadd.f32 %v4653_v56, %v7654_v39  ;;  %v4962_v60 = vadd.f32 %v7354_v3, %v4694_v19 }
 0x821   :  { %v4655_v61 = vpop.f32.mrf.mxu1  ;;  %v5923_v21 = vpop.f32.mrf.mxu0 }
 0x822   :  { %v5477_v37 = vmul.f32 -1.442695, %v4948_v32  ;;  %v4955_v18 = vadd.f32 %v4655_v61, %v7655_v55 }
 0x823   :  { %v4657_v16 = vpop.f32.mrf.mxu1  ;;  %v4697_v40 = vpop.f32.mrf.mxu0 }
 0x824   :  { %6450 = vpow2.f32 %v5477_v37  ;;  %v5478_v22 = vmul.f32 -1.442695, %v4955_v18 }
 0x825   :  { %v4658_v51 = vpop.f32.mrf.mxu1  ;;  %v5924_v17 = vpop.f32.mrf.mxu0 }
 0x826   :  { %6452 = vpow2.f32 %v5478_v22 }
 0x831   :  { %v6451_v4 = vpop.eup %6450 }
 0x832   :  { %v4952_v53 = vadd.f32 1.0, %v6451_v4 }
 0x833   :  { %v6453_v58 = vpop.eup %6452 }
 0x834   :  { %6454 = vrcp.f32 %v4952_v53  ;;  %v4959_v2 = vadd.f32 1.0, %v6453_v58 }
 0x836   :  { %6456 = vrcp.f32 %v4959_v2 }
 0x83f   :  { %v4895_v7 = vpop.f32.mrf.mxu1  ;;  %v4936_v30 = vpop.f32.mrf.mxu0 }
 0x840   :  { %v4970_v13 = vadd.f32 %v4895_v7, %v7656_v9  ;;  %v4984_v46 = vadd.f32 %v7383_v54, %v4936_v30 }
 0x841   :  { %v6455_v62 = vpop.eup %6454  ;;  %v4897_v10 = vpop.f32.mrf.mxu1 }
 0x842   :  { %v5943_v52 = vpop.f32.mrf.mxu0  ;;  %v4963_v41 = vmul.f32 %v6455_v62, %v4962_v60  ;;  %v5479_v44 = vmul.f32 -1.442695, %v4970_v13  ;;  %v4977_v1 = vadd.f32 %v4897_v10, %v7658_v11 }
 0x843   :  { %v4899_v12 = vpop.f32.mrf.mxu1  ;;  %v6457_v3 = vpop.eup %6456 }
 0x844   :  { %v4939_v50 = vpop.f32.mrf.mxu0  ;;  %v4964_v35 = vadd.f32 %v4963_v41, %v7657_v6  ;;  %6458 = vpow2.f32 %v5479_v44  ;;  %v5480_v25 = vmul.f32 -1.442695, %v4977_v1  ;;  %v4966_v47 = vsub.f32 1.0, %v6457_v3 }
 0x845   :  { %v4900_v33 = vpop.f32.mrf.mxu1  ;;  %v4968_v34 = vmul.f32 %v6457_v3, %v7541_v59 }
 0x846   :  { %v5944_v5 = vpop.f32.mrf.mxu0  ;;  %6460 = vtanh.f32 %v4964_v35 }
 0x847   :  { %6462 = vpow2.f32 %v5480_v25 }
 0x851   :  { %v6459_v38 = vpop.eup %6458 }
 0x852   :  { %v4974_v24 = vadd.f32 1.0, %v6459_v38 }
 0x853   :  { %v6461_v29 = vpop.eup %6460 }
 0x854   :  { %v4967_v31 = vmul.f32 %v6461_v29, %v4966_v47  ;;  %6464 = vrcp.f32 %v4974_v24  ;;  %v6463_v23 = vpop.eup %6462 }
 0x855   :  { %v4981_v20 = vadd.f32 1.0, %v6463_v23 }
 0x856   :  { %v4969_v27 = vadd.f32 %v4968_v34, %v4967_v31 }
 0x857   :  { %6466 = vrcp.f32 %v4981_v20 }
 0x858   :  { %4992 = vst [vmem:[#allocation12 + $0x70] sm:$0xff] %v4969_v27 }
 0x861   :  { %v6465_v48 = vpop.eup %6464 }
 0x862   :  { %v4985_v36 = vmul.f32 %v6465_v48, %v4984_v46 }
 0x864   :  { %v4986_v0 = vadd.f32 %v4985_v36, %v7659_v15  ;;  %v6467_v63 = vpop.eup %6466 }
 0x865   :  { %v4988_v45 = vsub.f32 1.0, %v6467_v63  ;;  %v4990_v59 = vmul.f32 %v6467_v63, %v7573_v43 }
 0x866   :  { %6468 = vtanh.f32 %v4986_v0 }
 0x873   :  { %v6469_v8 = vpop.eup %6468 }
 0x874   :  { %v4989_v57 = vmul.f32 %v6469_v8, %v4988_v45 }
 0x876   :  { %v4991_v26 = vadd.f32 %v4990_v59, %v4989_v57 }
 0x878   :  { %4993 = vst [vmem:[#allocation12 + $0x8] sm:$0xff] %v4991_v26 }
 0x879   :  { %6598 = shalt.err (!%p6595_p1)
}
 0x87a   :  { %s6630_s22 = smov 256   ;;  %s6631_s23 = smov 16  }
 0x87b   :  { %5005 = dma.vmem_to_hbm [thread:$0]  %s5000_s4, 2048, %s7597_s5, [#allocation5], %s6630_s22, %s6630_s22, %s6631_s23  }
 0x87c   :  { %6613 = dma.done.wait [#allocation5], 2048  }
 0x87d   :  { %6614 = vsyncadd [#allocation5], 4294965248 }
 0x87e   :  { %5009 = vsyncpa [#allocation4], 1 }
 0x87f   :  { %5010 = vsyncpa [#allocation7], 1 }
 0x880   :  { %5011 = vsyncpa [#allocation10], 1 }
 0x881   :  { %5012 = vsyncpa [#allocation5], 1 }

</bundles_post_ra>
